<compile_context>
chip_gen: v7x
topology: tpu7x:2x2x1
jax: 0.10.0
libtpu: 0.0.40
codegen_flags: <defaults>
</compile_context>

<pallas_src>
import functools
from collections import namedtuple

import numpy as np
import jax
import jax.numpy as jnp
from jax.experimental import pallas as pl
from jax.experimental.pallas import tpu as pltpu

LANE = 128
RFCAConfig = namedtuple("RFCAConfig", "c1 c2 ks stride mip")


def _round_up(n, m):
    return ((n + m - 1) // m) * m


def _pick_row_tile(Ho):
    """Largest row-tile (multiple of 8) that splits Ho into >= 2 tiles."""
    for t in (64, 32, 16, 8):
        if Ho % t == 0 and Ho // t >= 2:
            return t
    return Ho


def _apply_act(y, act):
    if act == "silu":
        return y * jax.nn.sigmoid(y)
    if act == "relu":
        return jnp.maximum(y, 0.0)
    return y


# ----------------------------------------------------------------------------
# Pallas kernels
# ----------------------------------------------------------------------------
def _tap_matmul(band, w_ref, k, stride, th, Wo, Cin, Npad):
    """In-kernel im2col: per-tap shifted views of the row band -> MXU matmuls."""
    acc = jnp.zeros((th * Wo, Npad), jnp.float32)
    for ki in range(k):
        for kj in range(k):
            if stride == 1:
                sub = band[ki:ki + th, kj:kj + Wo, :]
            else:
                sub = band[ki:ki + (th - 1) * stride + 1:stride,
                           kj:kj + (Wo - 1) * stride + 1:stride, :]
            acc += jnp.dot(sub.reshape(th * Wo, Cin), w_ref[ki * k + kj],
                           preferred_element_type=jnp.float32)
    return acc


def _conv_kernel(x_ref, w_ref, s_ref, b_ref, o_ref, *, k, stride, th, act):
    """conv(k, stride, pad=k//2) + folded BN + activation for one (batch, row tile)."""
    Wo, Npad = o_ref.shape[2], o_ref.shape[3]
    Cin = x_ref.shape[3]
    nrows = (th - 1) * stride + k
    row0 = pl.program_id(1) * (th * stride)
    if (th * stride) % 8 == 0:
        row0 = pl.multiple_of(row0, 8)
    band = x_ref[0, pl.ds(row0, nrows), :, :]                # (nrows, Wp, Cin) bf16
    acc = _tap_matmul(band, w_ref, k, stride, th, Wo, Cin, Npad)
    y = _apply_act(acc * s_ref[...] + b_ref[...], act)
    o_ref[0] = y.reshape(th, Wo, Npad).astype(o_ref.dtype)


def _gated_conv_kernel(x_ref, ah_ref, aw_ref, w_ref, s_ref, b_ref, o_ref, *,
                       k, stride, th, act):
    """Same as _conv_kernel but the CA gate (x * a_h * a_w) is applied to the
    input band in VMEM, so the gated tensor never exists in HBM."""
    Wo, Npad = o_ref.shape[2], o_ref.shape[3]
    Cin = x_ref.shape[3]
    nrows = (th - 1) * stride + k
    row0 = pl.program_id(1) * (th * stride)
    if (th * stride) % 8 == 0:
        row0 = pl.multiple_of(row0, 8)
    band = x_ref[0, pl.ds(row0, nrows), :, :].astype(jnp.float32)
    gh = ah_ref[0, pl.ds(row0, nrows), :]                    # (nrows, Cin)
    gw = aw_ref[0, :, :]                                     # (Wp,    Cin)
    band = (band * gh[:, None, :] * gw[None, :, :]).astype(jnp.bfloat16)
    acc = _tap_matmul(band, w_ref, k, stride, th, Wo, Cin, Npad)
    y = _apply_act(acc * s_ref[...] + b_ref[...], act)
    o_ref[0] = y.reshape(th, Wo, Npad).astype(o_ref.dtype)


def _rf_down_kernel(g_ref, a_ref, s_ref, b_ref, xd_ref, xh_ref, xw_ref, wsum_ref,
                    *, th, inv_h):
    """Fused: softmax gate x channel->spatial shuffle x convDown(3x3, s=3, p=1)
    + BN + SiLU, with the CAConv H/W average pools in the epilogue.

    Each (branch t, group-conv channel m) value lands on exactly one sub-pixel of
    the 3x up-shuffled image, which the stride-3 convDown reads from exactly one
    of four 2x2 neighbour offsets -> four per-batch mixing matmuls (a_ref)."""
    i = pl.program_id(1)
    W, Npad = xd_ref.shape[2], xd_ref.shape[3]
    Kpad = g_ref.shape[3]
    r0 = pl.program_id(1) * th
    if th % 8 == 0:
        r0 = pl.multiple_of(r0, 8)

    acc = jnp.zeros((th * W, Npad), jnp.float32)
    for u in range(2):
        band = g_ref[0, pl.ds(r0 + u, th), :, :]             # (th, W+1, Kpad) bf16
        for v in range(2):
            sub = band[:, v:v + W, :].reshape(th * W, Kpad)
            acc += jnp.dot(sub, a_ref[0, 2 * u + v],
                           preferred_element_type=jnp.float32)

    y = acc * s_ref[...] + b_ref[...]
    y = y * jax.nn.sigmoid(y)                                # SiLU
    y3 = y.reshape(th, W, Npad)
    xd_ref[0] = y3.astype(xd_ref.dtype)
    xh_ref[0] = jnp.mean(y3, axis=1)                         # pool over W

    @pl.when(i == 0)
    def _():
        wsum_ref[...] = jnp.zeros_like(wsum_ref)

    wsum_ref[...] += jnp.sum(y3, axis=0)                     # pool over H (accumulate)
    xw_ref[0] = wsum_ref[...] * inv_h                        # complete on the last tile


# ----------------------------------------------------------------------------
# Pallas wrappers
# ----------------------------------------------------------------------------
def conv2d_fused(x, w_taps, scale, bias, *, k, stride, act,
                 gate=None, out_dtype=jnp.bfloat16):
    """Conv2d(k, s, pad=k//2) + folded BN + act as one Pallas kernel.
    w_taps: (k*k, Cin, Npad) bf16 with Npad a multiple of 128 (lane-dense out)."""
    b, H, W, Cin = x.shape
    pad = k // 2
    Ho = (H + 2 * pad - k) // stride + 1
    Wo = (W + 2 * pad - k) // stride + 1
    Npad = w_taps.shape[2]
    th = _pick_row_tile(Ho)
    Hp, Wp = H + 2 * pad, W + 2 * pad
    xp = jnp.pad(x.astype(jnp.bfloat16), ((0, 0), (pad, pad), (pad, pad), (0, 0)))

    x_spec = pl.BlockSpec((1, Hp, Wp, Cin), lambda nb, i: (nb, 0, 0, 0))
    w_spec = pl.BlockSpec((k * k, Cin, Npad), lambda nb, i: (0, 0, 0))
    v_spec = pl.BlockSpec((1, Npad), lambda nb, i: (0, 0))
    out_spec = pl.BlockSpec((1, th, Wo, Npad), lambda nb, i: (nb, i, 0, 0))

    if gate is None:
        kernel = functools.partial(_conv_kernel, k=k, stride=stride, th=th, act=act)
        in_specs = [x_spec, w_spec, v_spec, v_spec]
        args = (xp, w_taps, scale, bias)
    else:
        ah, aw = gate                                        # (b, H, cg), (b, W, cg)
        ah_p = jnp.pad(ah, ((0, 0), (pad, pad), (0, Cin - ah.shape[-1])))
        aw_p = jnp.pad(aw, ((0, 0), (pad, pad), (0, Cin - aw.shape[-1])))
        kernel = functools.partial(_gated_conv_kernel, k=k, stride=stride, th=th,
                                   act=act)
        in_specs = [x_spec,
                    pl.BlockSpec((1, Hp, Cin), lambda nb, i: (nb, 0, 0)),
                    pl.BlockSpec((1, Wp, Cin), lambda nb, i: (nb, 0, 0)),
                    w_spec, v_spec, v_spec]
        args = (xp, ah_p, aw_p, w_taps, scale, bias)

    return pl.pallas_call(
        kernel,
        out_shape=jax.ShapeDtypeStruct((b, Ho, Wo, Npad), out_dtype),
        grid=(b, Ho // th),
        in_specs=in_specs,
        out_specs=out_spec,
        compiler_params=pltpu.CompilerParams(
            dimension_semantics=("parallel", "parallel")),
    )(*args)


def rf_down(gconv, A, scale, bias):
    """gate + pixel-shuffle + convDown(3x3, s=3, p=1) + BN + SiLU + H/W pools."""
    b, H, W, Kpad = gconv.shape
    Npad = A.shape[3]
    th = _pick_row_tile(H)
    # one zero row (top) / col (left): the out-of-range shuffle taps of convDown
    gpad = jnp.pad(gconv, ((0, 0), (1, 0), (1, 0), (0, 0)))
    return pl.pallas_call(
        functools.partial(_rf_down_kernel, th=th, inv_h=1.0 / float(H)),
        out_shape=(jax.ShapeDtypeStruct((b, H, W, Npad), jnp.bfloat16),
                   jax.ShapeDtypeStruct((b, H, Npad), jnp.float32),
                   jax.ShapeDtypeStruct((b, W, Npad), jnp.float32)),
        grid=(b, H // th),
        in_specs=[pl.BlockSpec((1, H + 1, W + 1, Kpad), lambda nb, i: (nb, 0, 0, 0)),
                  pl.BlockSpec((1, 4, Kpad, Npad), lambda nb, i: (nb, 0, 0, 0)),
                  pl.BlockSpec((1, Npad), lambda nb, i: (0, 0)),
                  pl.BlockSpec((1, Npad), lambda nb, i: (0, 0))],
        out_specs=[pl.BlockSpec((1, th, W, Npad), lambda nb, i: (nb, i, 0, 0)),
                   pl.BlockSpec((1, th, Npad), lambda nb, i: (nb, i, 0)),
                   pl.BlockSpec((1, W, Npad), lambda nb, i: (nb, 0, 0))],
        scratch_shapes=[pltpu.VMEM((W, Npad), jnp.float32)],
        compiler_params=pltpu.CompilerParams(
            dimension_semantics=("parallel", "arbitrary")),
    )(gpad, A, scale, bias)


# ----------------------------------------------------------------------------
# Plain-JAX glue (tiny, per-sample work) + parameter prep
# ----------------------------------------------------------------------------
def fold_bn(bn, conv_bias=None, eps=1e-5):
    scale = bn["gamma"] / jnp.sqrt(bn["var"] + eps)
    cb = 0.0 if conv_bias is None else conv_bias
    bias = (cb - bn["mean"]) * scale + bn["beta"]
    return scale, bias


def grouped_to_dense(w, cin, groups, k):
    """Grouped conv weight (Cout, 1, k, k), groups==cin -> dense (k*k*cin, Cout)."""
    cout = w.shape[0]
    out_per_g = cout // groups
    oc = np.arange(cout)
    E = (oc[None, :] // out_per_g == np.arange(cin)[:, None]).astype(np.float32)
    blocks = [E * w[:, 0, i, j][None, :] for i in range(k) for j in range(k)]
    return jnp.concatenate(blocks, axis=0)


def tiny_group_branch(y, w, ln_w, ln_b, k, eps=1e-5):
    """Conv_L(c1, 3c1, k, groups=c1) on the (b, c1) pooled vector: only the center
    tap hits the 1x1 input; then LayerNorm((3c1,1,1)) + SiLU."""
    center = w[:, 0, k // 2, k // 2]                         # (3c1,)
    z = jnp.repeat(y, 3, axis=1) * center[None, :]           # (b, 3c1)
    mu = jnp.mean(z, axis=1, keepdims=True)
    var = jnp.mean((z - mu) ** 2, axis=1, keepdims=True)
    z = (z - mu) / jnp.sqrt(var + eps) * ln_w[None, :] + ln_b[None, :]
    return z * jax.nn.sigmoid(z)


def build_mix_weights(G, w_cd, c1, Kpad, Npad):
    """Fold the three softmax gates and the convDown weights into four per-batch
    (3c1 -> c1) mixing matrices, one per 2x2 neighbour offset of the shuffle."""
    c3 = 3 * c1
    t_idx, m_idx = np.meshgrid(np.arange(3), np.arange(c3), indexing="ij")
    idx = t_idx * c3 + m_idx                  # flat channel index after torch.cat
    oc = idx // 9                             # .view(b, c1, 3, 3, H, W) decomposition
    r = (idx // 3) % 3
    s = idx % 3
    u = np.where(r == 2, 0, 1)                # neighbour offset feeding sub-row r
    v = np.where(s == 2, 0, 1)
    rp = np.array([1, 2, 0])[r]               # convDown kernel tap hit by (r, s)
    sp = np.array([1, 2, 0])[s]
    off_onehot = (np.arange(4)[:, None, None] == (u * 2 + v)[None]).astype(np.float32)
    wg = w_cd[:, oc, rp, sp]                  # (c1, 3, 3c1)
    A = jnp.einsum("btm,otm,ctm->bomc", G, off_onehot, wg)   # (b, 4, 3c1, c1)
    A = jnp.pad(A, ((0, 0), (0, 0), (0, Kpad - c3), (0, Npad - c1)))
    return A.astype(jnp.bfloat16)


def ca_attention(xh, xw, pp):
    """CAConv 1x1 convs on the pooled stats (tiny; plain JAX so XLA fuses them)."""
    b, H, _ = xh.shape
    y = jnp.concatenate([xh, xw], axis=1)                    # (b, H+W, c1)
    y = y @ pp["ca_conv1_w_mat"]
    y = y * pp["ca_bn1_scale"] + pp["ca_bn1_bias"]
    y = y * jnp.clip(y + 3.0, 0.0, 6.0) * (1.0 / 6.0)        # h_swish
    ah = jax.nn.sigmoid(y[:, :H] @ pp["ca_convh_w_mat"] + pp["ca_convh_b"])
    aw = jax.nn.sigmoid(y[:, H:] @ pp["ca_convw_w_mat"] + pp["ca_convw_b"])
    return ah, aw                                            # (b,H,c1), (b,W,c1)


def init_params(key, c1, c2, ks):
    mip = max(8, c1 // 32)
    c3 = 3 * c1
    keys = iter(jax.random.split(key, 64))

    def rnd(shape, scale=0.1):
        return jax.random.normal(next(keys), shape, jnp.float32) * scale

    def bn_params(c):
        return dict(gamma=1.0 + rnd((c,)), beta=rnd((c,)),
                    mean=rnd((c,)), var=1.0 + 0.5 * jnp.abs(rnd((c,))))

    p = {}
    for name, k in (("gc1", 1), ("gc2", 3), ("gc3", 5)):
        p[f"{name}_w"] = rnd((c3, 1, k, k))
        p[f"{name}_ln_w"] = 1.0 + rnd((c3,))
        p[f"{name}_ln_b"] = rnd((c3,))
    p["gc_w"] = rnd((c3, 1, 3, 3))
    p["gc_bn"] = bn_params(c3)
    p["cd_w"] = rnd((c1, c1, 3, 3))
    p["cd_bn"] = bn_params(c1)
    p["ca_conv1_w"] = rnd((mip, c1, 1, 1)); p["ca_conv1_b"] = rnd((mip,))
    p["ca_bn1"] = bn_params(mip)
    p["ca_convh_w"] = rnd((c1, mip, 1, 1)); p["ca_convh_b"] = rnd((c1,))
    p["ca_convw_w"] = rnd((c1, mip, 1, 1)); p["ca_convw_b"] = rnd((c1,))
    p["ca_conv2_w"] = rnd((c2, c1, ks, ks)); p["ca_conv2_b"] = rnd((c2,))
    p["ca_bn2"] = bn_params(c2)
    return p, mip


def prepare_params(p, c1, c2, ks):
    """Pad all matmul N dims to multiples of 128, fold BN, cast weights to bf16."""
    c3 = 3 * c1
    c3p, c1p, c2p = _round_up(c3, LANE), _round_up(c1, LANE), _round_up(c2, LANE)
    pp = {}
    # group_conv (3x3, groups=c1): dense tap-ordered weight, N padded, bf16
    w = jnp.pad(grouped_to_dense(p["gc_w"], c1, c1, 3), ((0, 0), (0, c3p - c3)))
    pp["gc_w"] = w.reshape(9, c1, c3p).astype(jnp.bfloat16)
    s, bi = fold_bn(p["gc_bn"])
    pp["gc_scale"] = jnp.pad(s, (0, c3p - c3))[None, :]
    pp["gc_bias"] = jnp.pad(bi, (0, c3p - c3))[None, :]
    # convDown: raw weight kept for the data-dependent mixing matrices + folded BN
    pp["cd_w"] = p["cd_w"]
    s, bi = fold_bn(p["cd_bn"])
    pp["cd_scale"] = jnp.pad(s, (0, c1p - c1))[None, :]
    pp["cd_bias"] = jnp.pad(bi, (0, c1p - c1))[None, :]
    # tiny pooled-vector branches
    for name in ("gc1", "gc2", "gc3"):
        pp[f"{name}_w"] = p[f"{name}_w"]
        pp[f"{name}_ln_w"] = p[f"{name}_ln_w"]
        pp[f"{name}_ln_b"] = p[f"{name}_ln_b"]
    # CAConv 1x1 convs (plain JAX)
    pp["ca_conv1_w_mat"] = p["ca_conv1_w"][:, :, 0, 0].T
    s, bi = fold_bn(p["ca_bn1"], p["ca_conv1_b"])
    pp["ca_bn1_scale"], pp["ca_bn1_bias"] = s, bi
    pp["ca_convh_w_mat"] = p["ca_convh_w"][:, :, 0, 0].T
    pp["ca_convh_b"] = p["ca_convh_b"]
    pp["ca_convw_w_mat"] = p["ca_convw_w"][:, :, 0, 0].T
    pp["ca_convw_b"] = p["ca_convw_b"]
    # final ks x ks conv: pad Cin to c1p, tap-ordered rows, N padded, bf16
    wf = jnp.pad(p["ca_conv2_w"], ((0, 0), (0, c1p - c1), (0, 0), (0, 0)))
    wf = jnp.transpose(wf, (2, 3, 1, 0)).reshape(ks * ks, c1p, c2)
    pp["f_w"] = jnp.pad(wf, ((0, 0), (0, 0), (0, c2p - c2))).astype(jnp.bfloat16)
    s, bi = fold_bn(p["ca_bn2"], p["ca_conv2_b"])
    pp["f_scale"] = jnp.pad(s, (0, c2p - c2))[None, :]
    pp["f_bias"] = jnp.pad(bi, (0, c2p - c2))[None, :]
    return pp


# ----------------------------------------------------------------------------
# Forward
# ----------------------------------------------------------------------------
def rfca_forward(x, pp, cfg):
    """x: NHWC (b, H, W, c1) -> NCHW (b, c2, Hf, Wf)."""
    b, H, W, c1 = x.shape
    c2, ks, stride = cfg.c2, cfg.ks, cfg.stride

    # 1+2. global avg-pool + tiny grouped-conv/LayerNorm/SiLU branches + softmax
    y = jnp.mean(x, axis=(1, 2))                                  # (b, c1)
    g1 = tiny_group_branch(y, pp["gc1_w"], pp["gc1_ln_w"], pp["gc1_ln_b"], 1)
    g2 = tiny_group_branch(y, pp["gc2_w"], pp["gc2_ln_w"], pp["gc2_ln_b"], 3)
    g3 = tiny_group_branch(y, pp["gc3_w"], pp["gc3_ln_w"], pp["gc3_ln_b"], 5)
    G = jax.nn.softmax(jnp.stack([g1, g2, g3], axis=1), axis=-1)  # (b, 3, 3c1)

    # 3. grouped 3x3 conv + BN + SiLU (Pallas; im2col fused, bf16, lane-dense out)
    gconv = conv2d_fused(x, pp["gc_w"], pp["gc_scale"], pp["gc_bias"],
                         k=3, stride=1, act="silu")               # (b,H,W,c3pad) bf16

    # 4-6. softmax gate + channel->spatial shuffle + convDown(3x3,s3) + BN + SiLU,
    #      folded into 4 per-batch mixing matmuls; CA H/W pools in the epilogue.
    Kpad = pp["gc_w"].shape[2]
    Npad = pp["cd_scale"].shape[1]
    A = build_mix_weights(G, pp["cd_w"], c1, Kpad, Npad)
    xd, xh, xw = rf_down(gconv, A, pp["cd_scale"], pp["cd_bias"])

    # 7. CA attention vectors from the pooled stats (tiny; plain JAX)
    ah, aw = ca_attention(xh[:, :, :c1], xw[:, :, :c1], pp)

    # 8. final ks x ks conv + BN + ReLU with the (a_h, a_w) gate fused in-kernel
    out = conv2d_fused(xd, pp["f_w"], pp["f_scale"], pp["f_bias"],
                       k=ks, stride=stride, act="relu",
                       gate=(ah, aw), out_dtype=jnp.float32)      # (b,Hf,Wf,c2pad)
    return out[:, :, :, :c2].transpose(0, 3, 1, 2)                # -> NCHW


# ----------------------------------------------------------------------------
if __name__ == "__main__":
    c1, c2, kernel_size, stride = 4, 8, 3, 1
    b, H, W = 2, 16, 16

    key = jax.random.PRNGKey(0)
    kx, kp = jax.random.split(key)
    # NHWC input (equivalent PyTorch NCHW input shape is (2, 4, 16, 16))
    x = jax.random.normal(kx, (b, H, W, c1), jnp.float32)
    raw_params, mip = init_params(kp, c1, c2, kernel_size)
    pp = prepare_params(raw_params, c1, c2, kernel_size)
    cfg = RFCAConfig(c1=c1, c2=c2, ks=kernel_size, stride=stride, mip=mip)

    fwd = jax.jit(rfca_forward, static_argnums=(2,))
    out = jax.block_until_ready(fwd(x, pp, cfg))
    assert out.shape == (b, c2, H, W), out.shape
    assert bool(jnp.all(jnp.isfinite(out)))
    print("KERNEL_OK")
</pallas_src>

<mosaic_0001>
module attributes {stable_mosaic.version = 11 : i64} {
  func.func @_conv_kernel(%arg0: i32, %arg1: i32, %arg2: memref<1x18x18x4xbf16, #tpu.memory_space<vmem>>, %arg3: memref<9x4x128xbf16, #tpu.memory_space<vmem>>, %arg4: memref<1x128xf32, #tpu.memory_space<vmem>>, %arg5: memref<1x128xf32, #tpu.memory_space<vmem>>, %arg6: memref<1x8x16x128xbf16, #tpu.memory_space<vmem>>) attributes {dimension_semantics = [#tpu.dimension_semantics<parallel>, #tpu.dimension_semantics<parallel>], iteration_bounds = array<i64: 2, 2>, scalar_prefetch = 0 : i64, scratch_operands = 0 : i64, tpu.core_type = #tpu.core_type<tc>, window_params = [{transform_indices = @transform_0, window_bounds = array<i64: 1, 18, 18, 4>}, {pipeline_mode = #tpu.pipeline_mode<synchronous>, transform_indices = @transform_1, window_bounds = array<i64: 9, 4, 128>}, {pipeline_mode = #tpu.pipeline_mode<synchronous>, transform_indices = @transform_2, window_bounds = array<i64: 1, 128>}, {pipeline_mode = #tpu.pipeline_mode<synchronous>, transform_indices = @transform_3, window_bounds = array<i64: 1, 128>}, {transform_indices = @transform_4, window_bounds = array<i64: 1, 8, 16, 128>}]} {
    %c8_i32 = arith.constant 8 : i32
    %0 = arith.muli %arg1, %c8_i32 : i32
    %1 = tpu.assume_multiple %0, 8 : i32
    %c0 = arith.constant 0 : index
    %2 = arith.index_cast %1 : i32 to index
    %c0_0 = arith.constant 0 : index
    %c0_1 = arith.constant 0 : index
    %3 = vector.load %arg2[%c0, %2, %c0_0, %c0_1] : memref<1x18x18x4xbf16, #tpu.memory_space<vmem>>, vector<1x10x18x4xbf16>
    %4 = vector.shape_cast %3 : vector<1x10x18x4xbf16> to vector<10x18x4xbf16>
    %cst = arith.constant 0.000000e+00 : f32
    %5 = vector.broadcast %cst : f32 to vector<128x128xf32>
    %6 = vector.extract_strided_slice %4 {offsets = [0, 0, 0], sizes = [8, 16, 4], strides = [1, 1, 1]} : vector<10x18x4xbf16> to vector<8x16x4xbf16>
    %7 = vector.shape_cast %6 : vector<8x16x4xbf16> to vector<128x4xbf16>
    %c0_2 = arith.constant 0 : index
    %c0_3 = arith.constant 0 : index
    %c0_4 = arith.constant 0 : index
    %8 = vector.load %arg3[%c0_2, %c0_3, %c0_4] : memref<9x4x128xbf16, #tpu.memory_space<vmem>>, vector<1x4x128xbf16>
    %9 = vector.shape_cast %8 : vector<1x4x128xbf16> to vector<4x128xbf16>
    %cst_5 = arith.constant dense<0.000000e+00> : vector<128x128xf32>
    %10 = tpu.matmul %7, %9, %cst_5 {dimension_numbers = #tpu.dot_dimension_numbers<[1], [0], [0], [1], [0, 0, 1, 1], [], []>} : vector<128x4xbf16>, vector<4x128xbf16>, vector<128x128xf32> -> vector<128x128xf32>
    %11 = arith.addf %5, %10 : vector<128x128xf32>
    %12 = vector.extract_strided_slice %4 {offsets = [0, 1, 0], sizes = [8, 16, 4], strides = [1, 1, 1]} : vector<10x18x4xbf16> to vector<8x16x4xbf16>
    %13 = vector.shape_cast %12 : vector<8x16x4xbf16> to vector<128x4xbf16>
    %c1 = arith.constant 1 : index
    %c0_6 = arith.constant 0 : index
    %c0_7 = arith.constant 0 : index
    %14 = vector.load %arg3[%c1, %c0_6, %c0_7] : memref<9x4x128xbf16, #tpu.memory_space<vmem>>, vector<1x4x128xbf16>
    %15 = vector.shape_cast %14 : vector<1x4x128xbf16> to vector<4x128xbf16>
    %cst_8 = arith.constant dense<0.000000e+00> : vector<128x128xf32>
    %16 = tpu.matmul %13, %15, %cst_8 {dimension_numbers = #tpu.dot_dimension_numbers<[1], [0], [0], [1], [0, 0, 1, 1], [], []>} : vector<128x4xbf16>, vector<4x128xbf16>, vector<128x128xf32> -> vector<128x128xf32>
    %17 = arith.addf %11, %16 : vector<128x128xf32>
    %18 = vector.extract_strided_slice %4 {offsets = [0, 2, 0], sizes = [8, 16, 4], strides = [1, 1, 1]} : vector<10x18x4xbf16> to vector<8x16x4xbf16>
    %19 = vector.shape_cast %18 : vector<8x16x4xbf16> to vector<128x4xbf16>
    %c2 = arith.constant 2 : index
    %c0_9 = arith.constant 0 : index
    %c0_10 = arith.constant 0 : index
    %20 = vector.load %arg3[%c2, %c0_9, %c0_10] : memref<9x4x128xbf16, #tpu.memory_space<vmem>>, vector<1x4x128xbf16>
    %21 = vector.shape_cast %20 : vector<1x4x128xbf16> to vector<4x128xbf16>
    %cst_11 = arith.constant dense<0.000000e+00> : vector<128x128xf32>
    %22 = tpu.matmul %19, %21, %cst_11 {dimension_numbers = #tpu.dot_dimension_numbers<[1], [0], [0], [1], [0, 0, 1, 1], [], []>} : vector<128x4xbf16>, vector<4x128xbf16>, vector<128x128xf32> -> vector<128x128xf32>
    %23 = arith.addf %17, %22 : vector<128x128xf32>
    %24 = vector.extract_strided_slice %4 {offsets = [1, 0, 0], sizes = [8, 16, 4], strides = [1, 1, 1]} : vector<10x18x4xbf16> to vector<8x16x4xbf16>
    %25 = vector.shape_cast %24 : vector<8x16x4xbf16> to vector<128x4xbf16>
    %c3 = arith.constant 3 : index
    %c0_12 = arith.constant 0 : index
    %c0_13 = arith.constant 0 : index
    %26 = vector.load %arg3[%c3, %c0_12, %c0_13] : memref<9x4x128xbf16, #tpu.memory_space<vmem>>, vector<1x4x128xbf16>
    %27 = vector.shape_cast %26 : vector<1x4x128xbf16> to vector<4x128xbf16>
    %cst_14 = arith.constant dense<0.000000e+00> : vector<128x128xf32>
    %28 = tpu.matmul %25, %27, %cst_14 {dimension_numbers = #tpu.dot_dimension_numbers<[1], [0], [0], [1], [0, 0, 1, 1], [], []>} : vector<128x4xbf16>, vector<4x128xbf16>, vector<128x128xf32> -> vector<128x128xf32>
    %29 = arith.addf %23, %28 : vector<128x128xf32>
    %30 = vector.extract_strided_slice %4 {offsets = [1, 1, 0], sizes = [8, 16, 4], strides = [1, 1, 1]} : vector<10x18x4xbf16> to vector<8x16x4xbf16>
    %31 = vector.shape_cast %30 : vector<8x16x4xbf16> to vector<128x4xbf16>
    %c4 = arith.constant 4 : index
    %c0_15 = arith.constant 0 : index
    %c0_16 = arith.constant 0 : index
    %32 = vector.load %arg3[%c4, %c0_15, %c0_16] : memref<9x4x128xbf16, #tpu.memory_space<vmem>>, vector<1x4x128xbf16>
    %33 = vector.shape_cast %32 : vector<1x4x128xbf16> to vector<4x128xbf16>
    %cst_17 = arith.constant dense<0.000000e+00> : vector<128x128xf32>
    %34 = tpu.matmul %31, %33, %cst_17 {dimension_numbers = #tpu.dot_dimension_numbers<[1], [0], [0], [1], [0, 0, 1, 1], [], []>} : vector<128x4xbf16>, vector<4x128xbf16>, vector<128x128xf32> -> vector<128x128xf32>
    %35 = arith.addf %29, %34 : vector<128x128xf32>
    %36 = vector.extract_strided_slice %4 {offsets = [1, 2, 0], sizes = [8, 16, 4], strides = [1, 1, 1]} : vector<10x18x4xbf16> to vector<8x16x4xbf16>
    %37 = vector.shape_cast %36 : vector<8x16x4xbf16> to vector<128x4xbf16>
    %c5 = arith.constant 5 : index
    %c0_18 = arith.constant 0 : index
    %c0_19 = arith.constant 0 : index
    %38 = vector.load %arg3[%c5, %c0_18, %c0_19] : memref<9x4x128xbf16, #tpu.memory_space<vmem>>, vector<1x4x128xbf16>
    %39 = vector.shape_cast %38 : vector<1x4x128xbf16> to vector<4x128xbf16>
    %cst_20 = arith.constant dense<0.000000e+00> : vector<128x128xf32>
    %40 = tpu.matmul %37, %39, %cst_20 {dimension_numbers = #tpu.dot_dimension_numbers<[1], [0], [0], [1], [0, 0, 1, 1], [], []>} : vector<128x4xbf16>, vector<4x128xbf16>, vector<128x128xf32> -> vector<128x128xf32>
    %41 = arith.addf %35, %40 : vector<128x128xf32>
    %42 = vector.extract_strided_slice %4 {offsets = [2, 0, 0], sizes = [8, 16, 4], strides = [1, 1, 1]} : vector<10x18x4xbf16> to vector<8x16x4xbf16>
    %43 = vector.shape_cast %42 : vector<8x16x4xbf16> to vector<128x4xbf16>
    %c6 = arith.constant 6 : index
    %c0_21 = arith.constant 0 : index
    %c0_22 = arith.constant 0 : index
    %44 = vector.load %arg3[%c6, %c0_21, %c0_22] : memref<9x4x128xbf16, #tpu.memory_space<vmem>>, vector<1x4x128xbf16>
    %45 = vector.shape_cast %44 : vector<1x4x128xbf16> to vector<4x128xbf16>
    %cst_23 = arith.constant dense<0.000000e+00> : vector<128x128xf32>
    %46 = tpu.matmul %43, %45, %cst_23 {dimension_numbers = #tpu.dot_dimension_numbers<[1], [0], [0], [1], [0, 0, 1, 1], [], []>} : vector<128x4xbf16>, vector<4x128xbf16>, vector<128x128xf32> -> vector<128x128xf32>
    %47 = arith.addf %41, %46 : vector<128x128xf32>
    %48 = vector.extract_strided_slice %4 {offsets = [2, 1, 0], sizes = [8, 16, 4], strides = [1, 1, 1]} : vector<10x18x4xbf16> to vector<8x16x4xbf16>
    %49 = vector.shape_cast %48 : vector<8x16x4xbf16> to vector<128x4xbf16>
    %c7 = arith.constant 7 : index
    %c0_24 = arith.constant 0 : index
    %c0_25 = arith.constant 0 : index
    %50 = vector.load %arg3[%c7, %c0_24, %c0_25] : memref<9x4x128xbf16, #tpu.memory_space<vmem>>, vector<1x4x128xbf16>
    %51 = vector.shape_cast %50 : vector<1x4x128xbf16> to vector<4x128xbf16>
    %cst_26 = arith.constant dense<0.000000e+00> : vector<128x128xf32>
    %52 = tpu.matmul %49, %51, %cst_26 {dimension_numbers = #tpu.dot_dimension_numbers<[1], [0], [0], [1], [0, 0, 1, 1], [], []>} : vector<128x4xbf16>, vector<4x128xbf16>, vector<128x128xf32> -> vector<128x128xf32>
    %53 = arith.addf %47, %52 : vector<128x128xf32>
    %54 = vector.extract_strided_slice %4 {offsets = [2, 2, 0], sizes = [8, 16, 4], strides = [1, 1, 1]} : vector<10x18x4xbf16> to vector<8x16x4xbf16>
    %55 = vector.shape_cast %54 : vector<8x16x4xbf16> to vector<128x4xbf16>
    %c8 = arith.constant 8 : index
    %c0_27 = arith.constant 0 : index
    %c0_28 = arith.constant 0 : index
    %56 = vector.load %arg3[%c8, %c0_27, %c0_28] : memref<9x4x128xbf16, #tpu.memory_space<vmem>>, vector<1x4x128xbf16>
    %57 = vector.shape_cast %56 : vector<1x4x128xbf16> to vector<4x128xbf16>
    %cst_29 = arith.constant dense<0.000000e+00> : vector<128x128xf32>
    %58 = tpu.matmul %55, %57, %cst_29 {dimension_numbers = #tpu.dot_dimension_numbers<[1], [0], [0], [1], [0, 0, 1, 1], [], []>} : vector<128x4xbf16>, vector<4x128xbf16>, vector<128x128xf32> -> vector<128x128xf32>
    %59 = arith.addf %53, %58 : vector<128x128xf32>
    %c0_30 = arith.constant 0 : index
    %c0_31 = arith.constant 0 : index
    %60 = vector.load %arg4[%c0_30, %c0_31] : memref<1x128xf32, #tpu.memory_space<vmem>>, vector<1x128xf32>
    %61 = vector.broadcast %60 : vector<1x128xf32> to vector<128x128xf32>
    %62 = arith.mulf %59, %61 : vector<128x128xf32>
    %c0_32 = arith.constant 0 : index
    %c0_33 = arith.constant 0 : index
    %63 = vector.load %arg5[%c0_32, %c0_33] : memref<1x128xf32, #tpu.memory_space<vmem>>, vector<1x128xf32>
    %64 = vector.broadcast %63 : vector<1x128xf32> to vector<128x128xf32>
    %65 = arith.addf %62, %64 : vector<128x128xf32>
    %66 = arith.negf %65 : vector<128x128xf32>
    %67 = math.exp %66 : vector<128x128xf32>
    %cst_34 = arith.constant 1.000000e+00 : f32
    %68 = vector.broadcast %cst_34 : f32 to vector<128x128xf32>
    %69 = arith.addf %68, %67 : vector<128x128xf32>
    %70 = arith.divf %68, %69 : vector<128x128xf32>
    %71 = arith.mulf %65, %70 : vector<128x128xf32>
    %72 = vector.shape_cast %71 : vector<128x128xf32> to vector<8x16x128xf32>
    %73 = arith.truncf %72 : vector<8x16x128xf32> to vector<8x16x128xbf16>
    %c0_35 = arith.constant 0 : index
    %c0_36 = arith.constant 0 : index
    %c0_37 = arith.constant 0 : index
    %c0_38 = arith.constant 0 : index
    %74 = vector.load %arg6[%c0_35, %c0_36, %c0_37, %c0_38] : memref<1x8x16x128xbf16, #tpu.memory_space<vmem>>, vector<1x8x16x128xbf16>
    %75 = vector.shape_cast %74 : vector<1x8x16x128xbf16> to vector<8x16x128xbf16>
    %76 = vector.shape_cast %73 : vector<8x16x128xbf16> to vector<1x8x16x128xbf16>
    tpu.vector_store %arg6[%c0_35, %c0_36, %c0_37, %c0_38], %76 {strides = array<i32>} : memref<1x8x16x128xbf16, #tpu.memory_space<vmem>>, vector<1x8x16x128xbf16>,
    return
  }
  func.func @transform_0(%arg0: i32, %arg1: i32) -> (i32, i32, i32, i32) {
    %c0_i32 = arith.constant 0 : i32
    %c0_i32_0 = arith.constant 0 : i32
    %c0_i32_1 = arith.constant 0 : i32
    %c0_i32_2 = arith.constant 0 : i32
    return %arg0, %c0_i32, %c0_i32_0, %c0_i32_1 : i32, i32, i32, i32
  }
  func.func @transform_1(%arg0: i32, %arg1: i32) -> (i32, i32, i32) {
    %c0_i32 = arith.constant 0 : i32
    %c0_i32_0 = arith.constant 0 : i32
    %c0_i32_1 = arith.constant 0 : i32
    %c0_i32_2 = arith.constant 0 : i32
    return %c0_i32, %c0_i32_0, %c0_i32_1 : i32, i32, i32
  }
  func.func @transform_2(%arg0: i32, %arg1: i32) -> (i32, i32) {
    %c0_i32 = arith.constant 0 : i32
    %c0_i32_0 = arith.constant 0 : i32
    %c0_i32_1 = arith.constant 0 : i32
    return %c0_i32, %c0_i32_0 : i32, i32
  }
  func.func @transform_3(%arg0: i32, %arg1: i32) -> (i32, i32) {
    %c0_i32 = arith.constant 0 : i32
    %c0_i32_0 = arith.constant 0 : i32
    %c0_i32_1 = arith.constant 0 : i32
    return %c0_i32, %c0_i32_0 : i32, i32
  }
  func.func @transform_4(%arg0: i32, %arg1: i32) -> (i32, i32, i32, i32) {
    %c0_i32 = arith.constant 0 : i32
    %c0_i32_0 = arith.constant 0 : i32
    %c0_i32_1 = arith.constant 0 : i32
    return %arg0, %arg1, %c0_i32, %c0_i32_0 : i32, i32, i32, i32
  }
}

module attributes {stable_mosaic.version = 11 : i64} {
  func.func @_rf_down_kernel(%arg0: i32, %arg1: i32, %arg2: memref<1x17x17x128xbf16, #tpu.memory_space<vmem>>, %arg3: memref<1x4x128x128xbf16, #tpu.memory_space<vmem>>, %arg4: memref<1x128xf32, #tpu.memory_space<vmem>>, %arg5: memref<1x128xf32, #tpu.memory_space<vmem>>, %arg6: memref<1x8x16x128xbf16, #tpu.memory_space<vmem>>, %arg7: memref<1x8x128xf32, #tpu.memory_space<vmem>>, %arg8: memref<1x16x128xf32, #tpu.memory_space<vmem>>, %arg9: memref<16x128xf32, #tpu.memory_space<vmem>>) attributes {dimension_semantics = [#tpu.dimension_semantics<parallel>, #tpu.dimension_semantics<arbitrary>], iteration_bounds = array<i64: 2, 2>, scalar_prefetch = 0 : i64, scratch_operands = 1 : i64, tpu.core_type = #tpu.core_type<tc>, window_params = [{transform_indices = @transform_0, window_bounds = array<i64: 1, 17, 17, 128>}, {transform_indices = @transform_1, window_bounds = array<i64: 1, 4, 128, 128>}, {pipeline_mode = #tpu.pipeline_mode<synchronous>, transform_indices = @transform_2, window_bounds = array<i64: 1, 128>}, {pipeline_mode = #tpu.pipeline_mode<synchronous>, transform_indices = @transform_3, window_bounds = array<i64: 1, 128>}, {transform_indices = @transform_4, window_bounds = array<i64: 1, 8, 16, 128>}, {transform_indices = @transform_5, window_bounds = array<i64: 1, 8, 128>}, {transform_indices = @transform_6, window_bounds = array<i64: 1, 16, 128>}]} {
    %c8_i32 = arith.constant 8 : i32
    %0 = arith.muli %arg1, %c8_i32 : i32
    %1 = tpu.assume_multiple %0, 8 : i32
    %cst = arith.constant 0.000000e+00 : f32
    %2 = vector.broadcast %cst : f32 to vector<128x128xf32>
    %c0_i32 = arith.constant 0 : i32
    %3 = arith.addi %1, %c0_i32 : i32
    %c0 = arith.constant 0 : index
    %4 = arith.index_cast %3 : i32 to index
    %c0_0 = arith.constant 0 : index
    %c0_1 = arith.constant 0 : index
    %5 = vector.load %arg2[%c0, %4, %c0_0, %c0_1] : memref<1x17x17x128xbf16, #tpu.memory_space<vmem>>, vector<1x8x17x128xbf16>
    %6 = vector.shape_cast %5 : vector<1x8x17x128xbf16> to vector<8x17x128xbf16>
    %7 = vector.extract_strided_slice %6 {offsets = [0, 0, 0], sizes = [8, 16, 128], strides = [1, 1, 1]} : vector<8x17x128xbf16> to vector<8x16x128xbf16>
    %8 = vector.shape_cast %7 : vector<8x16x128xbf16> to vector<128x128xbf16>
    %c0_2 = arith.constant 0 : index
    %c0_3 = arith.constant 0 : index
    %c0_4 = arith.constant 0 : index
    %c0_5 = arith.constant 0 : index
    %9 = vector.load %arg3[%c0_2, %c0_3, %c0_4, %c0_5] : memref<1x4x128x128xbf16, #tpu.memory_space<vmem>>, vector<1x1x128x128xbf16>
    %10 = vector.shape_cast %9 : vector<1x1x128x128xbf16> to vector<128x128xbf16>
    %cst_6 = arith.constant dense<0.000000e+00> : vector<128x128xf32>
    %11 = tpu.matmul %8, %10, %cst_6 {dimension_numbers = #tpu.dot_dimension_numbers<[1], [0], [0], [1], [0, 0, 1, 1], [], []>} : vector<128x128xbf16>, vector<128x128xbf16>, vector<128x128xf32> -> vector<128x128xf32>
    %12 = arith.addf %2, %11 : vector<128x128xf32>
    %13 = vector.extract_strided_slice %6 {offsets = [0, 1, 0], sizes = [8, 16, 128], strides = [1, 1, 1]} : vector<8x17x128xbf16> to vector<8x16x128xbf16>
    %14 = vector.shape_cast %13 : vector<8x16x128xbf16> to vector<128x128xbf16>
    %c0_7 = arith.constant 0 : index
    %c1 = arith.constant 1 : index
    %c0_8 = arith.constant 0 : index
    %c0_9 = arith.constant 0 : index
    %15 = vector.load %arg3[%c0_7, %c1, %c0_8, %c0_9] : memref<1x4x128x128xbf16, #tpu.memory_space<vmem>>, vector<1x1x128x128xbf16>
    %16 = vector.shape_cast %15 : vector<1x1x128x128xbf16> to vector<128x128xbf16>
    %cst_10 = arith.constant dense<0.000000e+00> : vector<128x128xf32>
    %17 = tpu.matmul %14, %16, %cst_10 {dimension_numbers = #tpu.dot_dimension_numbers<[1], [0], [0], [1], [0, 0, 1, 1], [], []>} : vector<128x128xbf16>, vector<128x128xbf16>, vector<128x128xf32> -> vector<128x128xf32>
    %18 = arith.addf %12, %17 : vector<128x128xf32>
    %c1_i32 = arith.constant 1 : i32
    %19 = arith.addi %1, %c1_i32 : i32
    %c0_11 = arith.constant 0 : index
    %20 = arith.index_cast %19 : i32 to index
    %c0_12 = arith.constant 0 : index
    %c0_13 = arith.constant 0 : index
    %21 = vector.load %arg2[%c0_11, %20, %c0_12, %c0_13] : memref<1x17x17x128xbf16, #tpu.memory_space<vmem>>, vector<1x8x17x128xbf16>
    %22 = vector.shape_cast %21 : vector<1x8x17x128xbf16> to vector<8x17x128xbf16>
    %23 = vector.extract_strided_slice %22 {offsets = [0, 0, 0], sizes = [8, 16, 128], strides = [1, 1, 1]} : vector<8x17x128xbf16> to vector<8x16x128xbf16>
    %24 = vector.shape_cast %23 : vector<8x16x128xbf16> to vector<128x128xbf16>
    %c0_14 = arith.constant 0 : index
    %c2 = arith.constant 2 : index
    %c0_15 = arith.constant 0 : index
    %c0_16 = arith.constant 0 : index
    %25 = vector.load %arg3[%c0_14, %c2, %c0_15, %c0_16] : memref<1x4x128x128xbf16, #tpu.memory_space<vmem>>, vector<1x1x128x128xbf16>
    %26 = vector.shape_cast %25 : vector<1x1x128x128xbf16> to vector<128x128xbf16>
    %cst_17 = arith.constant dense<0.000000e+00> : vector<128x128xf32>
    %27 = tpu.matmul %24, %26, %cst_17 {dimension_numbers = #tpu.dot_dimension_numbers<[1], [0], [0], [1], [0, 0, 1, 1], [], []>} : vector<128x128xbf16>, vector<128x128xbf16>, vector<128x128xf32> -> vector<128x128xf32>
    %28 = arith.addf %18, %27 : vector<128x128xf32>
    %29 = vector.extract_strided_slice %22 {offsets = [0, 1, 0], sizes = [8, 16, 128], strides = [1, 1, 1]} : vector<8x17x128xbf16> to vector<8x16x128xbf16>
    %30 = vector.shape_cast %29 : vector<8x16x128xbf16> to vector<128x128xbf16>
    %c0_18 = arith.constant 0 : index
    %c3 = arith.constant 3 : index
    %c0_19 = arith.constant 0 : index
    %c0_20 = arith.constant 0 : index
    %31 = vector.load %arg3[%c0_18, %c3, %c0_19, %c0_20] : memref<1x4x128x128xbf16, #tpu.memory_space<vmem>>, vector<1x1x128x128xbf16>
    %32 = vector.shape_cast %31 : vector<1x1x128x128xbf16> to vector<128x128xbf16>
    %cst_21 = arith.constant dense<0.000000e+00> : vector<128x128xf32>
    %33 = tpu.matmul %30, %32, %cst_21 {dimension_numbers = #tpu.dot_dimension_numbers<[1], [0], [0], [1], [0, 0, 1, 1], [], []>} : vector<128x128xbf16>, vector<128x128xbf16>, vector<128x128xf32> -> vector<128x128xf32>
    %34 = arith.addf %28, %33 : vector<128x128xf32>
    %c0_22 = arith.constant 0 : index
    %c0_23 = arith.constant 0 : index
    %35 = vector.load %arg4[%c0_22, %c0_23] : memref<1x128xf32, #tpu.memory_space<vmem>>, vector<1x128xf32>
    %36 = vector.broadcast %35 : vector<1x128xf32> to vector<128x128xf32>
    %37 = arith.mulf %34, %36 : vector<128x128xf32>
    %c0_24 = arith.constant 0 : index
    %c0_25 = arith.constant 0 : index
    %38 = vector.load %arg5[%c0_24, %c0_25] : memref<1x128xf32, #tpu.memory_space<vmem>>, vector<1x128xf32>
    %39 = vector.broadcast %38 : vector<1x128xf32> to vector<128x128xf32>
    %40 = arith.addf %37, %39 : vector<128x128xf32>
    %41 = arith.negf %40 : vector<128x128xf32>
    %42 = math.exp %41 : vector<128x128xf32>
    %cst_26 = arith.constant 1.000000e+00 : f32
    %43 = vector.broadcast %cst_26 : f32 to vector<128x128xf32>
    %44 = arith.addf %43, %42 : vector<128x128xf32>
    %45 = arith.divf %43, %44 : vector<128x128xf32>
    %46 = arith.mulf %40, %45 : vector<128x128xf32>
    %47 = vector.shape_cast %46 : vector<128x128xf32> to vector<8x16x128xf32>
    %48 = arith.truncf %47 : vector<8x16x128xf32> to vector<8x16x128xbf16>
    %c0_27 = arith.constant 0 : index
    %c0_28 = arith.constant 0 : index
    %c0_29 = arith.constant 0 : index
    %c0_30 = arith.constant 0 : index
    %49 = vector.load %arg6[%c0_27, %c0_28, %c0_29, %c0_30] : memref<1x8x16x128xbf16, #tpu.memory_space<vmem>>, vector<1x8x16x128xbf16>
    %50 = vector.shape_cast %49 : vector<1x8x16x128xbf16> to vector<8x16x128xbf16>
    %51 = vector.shape_cast %48 : vector<8x16x128xbf16> to vector<1x8x16x128xbf16>
    tpu.vector_store %arg6[%c0_27, %c0_28, %c0_29, %c0_30], %51 {strides = array<i32>} : memref<1x8x16x128xbf16, #tpu.memory_space<vmem>>, vector<1x8x16x128xbf16>,
    %cst_31 = arith.constant dense<0.000000e+00> : vector<8x128xf32>
    %52 = vector.multi_reduction <add>, %47, %cst_31 [1] : vector<8x16x128xf32> to vector<8x128xf32>
    %cst_32 = arith.constant 1.600000e+01 : f32
    %53 = vector.broadcast %cst_32 : f32 to vector<8x128xf32>
    %54 = arith.divf %52, %53 : vector<8x128xf32>
    %c0_33 = arith.constant 0 : index
    %c0_34 = arith.constant 0 : index
    %c0_35 = arith.constant 0 : index
    %55 = vector.load %arg7[%c0_33, %c0_34, %c0_35] : memref<1x8x128xf32, #tpu.memory_space<vmem>>, vector<1x8x128xf32>
    %56 = vector.shape_cast %55 : vector<1x8x128xf32> to vector<8x128xf32>
    %57 = vector.shape_cast %54 : vector<8x128xf32> to vector<1x8x128xf32>
    tpu.vector_store %arg7[%c0_33, %c0_34, %c0_35], %57 {strides = array<i32>} : memref<1x8x128xf32, #tpu.memory_space<vmem>>, vector<1x8x128xf32>,
    %c0_i32_36 = arith.constant 0 : i32
    %58 = arith.cmpi eq, %arg1, %c0_i32_36 : i32
    %59 = arith.extui %58 : i1 to i32
    %c0_i32_37 = arith.constant 0 : i32
    %60 = arith.cmpi ne, %59, %c0_i32_37 : i32
    scf.if %60 {
      %cst_49 = arith.constant 0.000000e+00 : f32
      %71 = vector.broadcast %cst_49 : f32 to vector<16x128xf32>
      %c0_50 = arith.constant 0 : index
      %c0_51 = arith.constant 0 : index
      %72 = vector.load %arg9[%c0_50, %c0_51] : memref<16x128xf32, #tpu.memory_space<vmem>>, vector<16x128xf32>
      tpu.vector_store %arg9[%c0_50, %c0_51], %71 {strides = array<i32>} : memref<16x128xf32, #tpu.memory_space<vmem>>, vector<16x128xf32>,
    } else {
    }
    %c0_38 = arith.constant 0 : index
    %c0_39 = arith.constant 0 : index
    %61 = vector.load %arg9[%c0_38, %c0_39] : memref<16x128xf32, #tpu.memory_space<vmem>>, vector<16x128xf32>
    %cst_40 = arith.constant dense<0.000000e+00> : vector<16x128xf32>
    %62 = vector.multi_reduction <add>, %47, %cst_40 [0] : vector<8x16x128xf32> to vector<16x128xf32>
    %63 = arith.addf %61, %62 : vector<16x128xf32>
    %c0_41 = arith.constant 0 : index
    %c0_42 = arith.constant 0 : index
    %64 = vector.load %arg9[%c0_41, %c0_42] : memref<16x128xf32, #tpu.memory_space<vmem>>, vector<16x128xf32>
    tpu.vector_store %arg9[%c0_41, %c0_42], %63 {strides = array<i32>} : memref<16x128xf32, #tpu.memory_space<vmem>>, vector<16x128xf32>,
    %c0_43 = arith.constant 0 : index
    %c0_44 = arith.constant 0 : index
    %65 = vector.load %arg9[%c0_43, %c0_44] : memref<16x128xf32, #tpu.memory_space<vmem>>, vector<16x128xf32>
    %cst_45 = arith.constant 6.250000e-02 : f32
    %66 = vector.broadcast %cst_45 : f32 to vector<16x128xf32>
    %67 = arith.mulf %65, %66 : vector<16x128xf32>
    %c0_46 = arith.constant 0 : index
    %c0_47 = arith.constant 0 : index
    %c0_48 = arith.constant 0 : index
    %68 = vector.load %arg8[%c0_46, %c0_47, %c0_48] : memref<1x16x128xf32, #tpu.memory_space<vmem>>, vector<1x16x128xf32>
    %69 = vector.shape_cast %68 : vector<1x16x128xf32> to vector<16x128xf32>
    %70 = vector.shape_cast %67 : vector<16x128xf32> to vector<1x16x128xf32>
    tpu.vector_store %arg8[%c0_46, %c0_47, %c0_48], %70 {strides = array<i32>} : memref<1x16x128xf32, #tpu.memory_space<vmem>>, vector<1x16x128xf32>,
    return
  }
  func.func @transform_0(%arg0: i32, %arg1: i32) -> (i32, i32, i32, i32) {
    %c0_i32 = arith.constant 0 : i32
    %c0_i32_0 = arith.constant 0 : i32
    %c0_i32_1 = arith.constant 0 : i32
    %c0_i32_2 = arith.constant 0 : i32
    return %arg0, %c0_i32, %c0_i32_0, %c0_i32_1 : i32, i32, i32, i32
  }
  func.func @transform_1(%arg0: i32, %arg1: i32) -> (i32, i32, i32, i32) {
    %c0_i32 = arith.constant 0 : i32
    %c0_i32_0 = arith.constant 0 : i32
    %c0_i32_1 = arith.constant 0 : i32
    %c0_i32_2 = arith.constant 0 : i32
    return %arg0, %c0_i32, %c0_i32_0, %c0_i32_1 : i32, i32, i32, i32
  }
  func.func @transform_2(%arg0: i32, %arg1: i32) -> (i32, i32) {
    %c0_i32 = arith.constant 0 : i32
    %c0_i32_0 = arith.constant 0 : i32
    %c0_i32_1 = arith.constant 0 : i32
    return %c0_i32, %c0_i32_0 : i32, i32
  }
  func.func @transform_3(%arg0: i32, %arg1: i32) -> (i32, i32) {
    %c0_i32 = arith.constant 0 : i32
    %c0_i32_0 = arith.constant 0 : i32
    %c0_i32_1 = arith.constant 0 : i32
    return %c0_i32, %c0_i32_0 : i32, i32
  }
  func.func @transform_4(%arg0: i32, %arg1: i32) -> (i32, i32, i32, i32) {
    %c0_i32 = arith.constant 0 : i32
    %c0_i32_0 = arith.constant 0 : i32
    %c0_i32_1 = arith.constant 0 : i32
    return %arg0, %arg1, %c0_i32, %c0_i32_0 : i32, i32, i32, i32
  }
  func.func @transform_5(%arg0: i32, %arg1: i32) -> (i32, i32, i32) {
    %c0_i32 = arith.constant 0 : i32
    %c0_i32_0 = arith.constant 0 : i32
    return %arg0, %arg1, %c0_i32 : i32, i32, i32
  }
  func.func @transform_6(%arg0: i32, %arg1: i32) -> (i32, i32, i32) {
    %c0_i32 = arith.constant 0 : i32
    %c0_i32_0 = arith.constant 0 : i32
    %c0_i32_1 = arith.constant 0 : i32
    return %arg0, %c0_i32, %c0_i32_0 : i32, i32, i32
  }
}

module attributes {stable_mosaic.version = 11 : i64} {
  func.func @_gated_conv_kernel(%arg0: i32, %arg1: i32, %arg2: memref<1x18x18x128xbf16, #tpu.memory_space<vmem>>, %arg3: memref<1x18x128xf32, #tpu.memory_space<vmem>>, %arg4: memref<1x18x128xf32, #tpu.memory_space<vmem>>, %arg5: memref<9x128x128xbf16, #tpu.memory_space<vmem>>, %arg6: memref<1x128xf32, #tpu.memory_space<vmem>>, %arg7: memref<1x128xf32, #tpu.memory_space<vmem>>, %arg8: memref<1x8x16x128xf32, #tpu.memory_space<vmem>>) attributes {dimension_semantics = [#tpu.dimension_semantics<parallel>, #tpu.dimension_semantics<parallel>], iteration_bounds = array<i64: 2, 2>, scalar_prefetch = 0 : i64, scratch_operands = 0 : i64, tpu.core_type = #tpu.core_type<tc>, window_params = [{transform_indices = @transform_0, window_bounds = array<i64: 1, 18, 18, 128>}, {transform_indices = @transform_1, window_bounds = array<i64: 1, 18, 128>}, {transform_indices = @transform_2, window_bounds = array<i64: 1, 18, 128>}, {pipeline_mode = #tpu.pipeline_mode<synchronous>, transform_indices = @transform_3, window_bounds = array<i64: 9, 128, 128>}, {pipeline_mode = #tpu.pipeline_mode<synchronous>, transform_indices = @transform_4, window_bounds = array<i64: 1, 128>}, {pipeline_mode = #tpu.pipeline_mode<synchronous>, transform_indices = @transform_5, window_bounds = array<i64: 1, 128>}, {transform_indices = @transform_6, window_bounds = array<i64: 1, 8, 16, 128>}]} {
    %c8_i32 = arith.constant 8 : i32
    %0 = arith.muli %arg1, %c8_i32 : i32
    %1 = tpu.assume_multiple %0, 8 : i32
    %c0 = arith.constant 0 : index
    %2 = arith.index_cast %1 : i32 to index
    %c0_0 = arith.constant 0 : index
    %c0_1 = arith.constant 0 : index
    %3 = vector.load %arg2[%c0, %2, %c0_0, %c0_1] : memref<1x18x18x128xbf16, #tpu.memory_space<vmem>>, vector<1x10x18x128xbf16>
    %4 = vector.shape_cast %3 : vector<1x10x18x128xbf16> to vector<10x18x128xbf16>
    %5 = arith.extf %4 : vector<10x18x128xbf16> to vector<10x18x128xf32>
    %c0_2 = arith.constant 0 : index
    %6 = arith.index_cast %1 : i32 to index
    %c0_3 = arith.constant 0 : index
    %7 = vector.load %arg3[%c0_2, %6, %c0_3] : memref<1x18x128xf32, #tpu.memory_space<vmem>>, vector<1x10x128xf32>
    %8 = vector.shape_cast %7 : vector<1x10x128xf32> to vector<10x128xf32>
    %c0_4 = arith.constant 0 : index
    %c0_5 = arith.constant 0 : index
    %c0_6 = arith.constant 0 : index
    %9 = vector.load %arg4[%c0_4, %c0_5, %c0_6] : memref<1x18x128xf32, #tpu.memory_space<vmem>>, vector<1x18x128xf32>
    %10 = vector.shape_cast %9 : vector<1x18x128xf32> to vector<18x128xf32>
    %11 = vector.shape_cast %8 : vector<10x128xf32> to vector<10x1x128xf32>
    %12 = vector.broadcast %11 : vector<10x1x128xf32> to vector<10x18x128xf32>
    %13 = arith.mulf %5, %12 : vector<10x18x128xf32>
    %14 = vector.shape_cast %10 : vector<18x128xf32> to vector<1x18x128xf32>
    %15 = vector.broadcast %14 : vector<1x18x128xf32> to vector<10x18x128xf32>
    %16 = arith.mulf %13, %15 : vector<10x18x128xf32>
    %17 = arith.truncf %16 : vector<10x18x128xf32> to vector<10x18x128xbf16>
    %cst = arith.constant 0.000000e+00 : f32
    %18 = vector.broadcast %cst : f32 to vector<128x128xf32>
    %19 = vector.extract_strided_slice %17 {offsets = [0, 0, 0], sizes = [8, 16, 128], strides = [1, 1, 1]} : vector<10x18x128xbf16> to vector<8x16x128xbf16>
    %20 = vector.shape_cast %19 : vector<8x16x128xbf16> to vector<128x128xbf16>
    %c0_7 = arith.constant 0 : index
    %c0_8 = arith.constant 0 : index
    %c0_9 = arith.constant 0 : index
    %21 = vector.load %arg5[%c0_7, %c0_8, %c0_9] : memref<9x128x128xbf16, #tpu.memory_space<vmem>>, vector<1x128x128xbf16>
    %22 = vector.shape_cast %21 : vector<1x128x128xbf16> to vector<128x128xbf16>
    %cst_10 = arith.constant dense<0.000000e+00> : vector<128x128xf32>
    %23 = tpu.matmul %20, %22, %cst_10 {dimension_numbers = #tpu.dot_dimension_numbers<[1], [0], [0], [1], [0, 0, 1, 1], [], []>} : vector<128x128xbf16>, vector<128x128xbf16>, vector<128x128xf32> -> vector<128x128xf32>
    %24 = arith.addf %18, %23 : vector<128x128xf32>
    %25 = vector.extract_strided_slice %17 {offsets = [0, 1, 0], sizes = [8, 16, 128], strides = [1, 1, 1]} : vector<10x18x128xbf16> to vector<8x16x128xbf16>
    %26 = vector.shape_cast %25 : vector<8x16x128xbf16> to vector<128x128xbf16>
    %c1 = arith.constant 1 : index
    %c0_11 = arith.constant 0 : index
    %c0_12 = arith.constant 0 : index
    %27 = vector.load %arg5[%c1, %c0_11, %c0_12] : memref<9x128x128xbf16, #tpu.memory_space<vmem>>, vector<1x128x128xbf16>
    %28 = vector.shape_cast %27 : vector<1x128x128xbf16> to vector<128x128xbf16>
    %cst_13 = arith.constant dense<0.000000e+00> : vector<128x128xf32>
    %29 = tpu.matmul %26, %28, %cst_13 {dimension_numbers = #tpu.dot_dimension_numbers<[1], [0], [0], [1], [0, 0, 1, 1], [], []>} : vector<128x128xbf16>, vector<128x128xbf16>, vector<128x128xf32> -> vector<128x128xf32>
    %30 = arith.addf %24, %29 : vector<128x128xf32>
    %31 = vector.extract_strided_slice %17 {offsets = [0, 2, 0], sizes = [8, 16, 128], strides = [1, 1, 1]} : vector<10x18x128xbf16> to vector<8x16x128xbf16>
    %32 = vector.shape_cast %31 : vector<8x16x128xbf16> to vector<128x128xbf16>
    %c2 = arith.constant 2 : index
    %c0_14 = arith.constant 0 : index
    %c0_15 = arith.constant 0 : index
    %33 = vector.load %arg5[%c2, %c0_14, %c0_15] : memref<9x128x128xbf16, #tpu.memory_space<vmem>>, vector<1x128x128xbf16>
    %34 = vector.shape_cast %33 : vector<1x128x128xbf16> to vector<128x128xbf16>
    %cst_16 = arith.constant dense<0.000000e+00> : vector<128x128xf32>
    %35 = tpu.matmul %32, %34, %cst_16 {dimension_numbers = #tpu.dot_dimension_numbers<[1], [0], [0], [1], [0, 0, 1, 1], [], []>} : vector<128x128xbf16>, vector<128x128xbf16>, vector<128x128xf32> -> vector<128x128xf32>
    %36 = arith.addf %30, %35 : vector<128x128xf32>
    %37 = vector.extract_strided_slice %17 {offsets = [1, 0, 0], sizes = [8, 16, 128], strides = [1, 1, 1]} : vector<10x18x128xbf16> to vector<8x16x128xbf16>
    %38 = vector.shape_cast %37 : vector<8x16x128xbf16> to vector<128x128xbf16>
    %c3 = arith.constant 3 : index
    %c0_17 = arith.constant 0 : index
    %c0_18 = arith.constant 0 : index
    %39 = vector.load %arg5[%c3, %c0_17, %c0_18] : memref<9x128x128xbf16, #tpu.memory_space<vmem>>, vector<1x128x128xbf16>
    %40 = vector.shape_cast %39 : vector<1x128x128xbf16> to vector<128x128xbf16>
    %cst_19 = arith.constant dense<0.000000e+00> : vector<128x128xf32>
    %41 = tpu.matmul %38, %40, %cst_19 {dimension_numbers = #tpu.dot_dimension_numbers<[1], [0], [0], [1], [0, 0, 1, 1], [], []>} : vector<128x128xbf16>, vector<128x128xbf16>, vector<128x128xf32> -> vector<128x128xf32>
    %42 = arith.addf %36, %41 : vector<128x128xf32>
    %43 = vector.extract_strided_slice %17 {offsets = [1, 1, 0], sizes = [8, 16, 128], strides = [1, 1, 1]} : vector<10x18x128xbf16> to vector<8x16x128xbf16>
    %44 = vector.shape_cast %43 : vector<8x16x128xbf16> to vector<128x128xbf16>
    %c4 = arith.constant 4 : index
    %c0_20 = arith.constant 0 : index
    %c0_21 = arith.constant 0 : index
    %45 = vector.load %arg5[%c4, %c0_20, %c0_21] : memref<9x128x128xbf16, #tpu.memory_space<vmem>>, vector<1x128x128xbf16>
    %46 = vector.shape_cast %45 : vector<1x128x128xbf16> to vector<128x128xbf16>
    %cst_22 = arith.constant dense<0.000000e+00> : vector<128x128xf32>
    %47 = tpu.matmul %44, %46, %cst_22 {dimension_numbers = #tpu.dot_dimension_numbers<[1], [0], [0], [1], [0, 0, 1, 1], [], []>} : vector<128x128xbf16>, vector<128x128xbf16>, vector<128x128xf32> -> vector<128x128xf32>
    %48 = arith.addf %42, %47 : vector<128x128xf32>
    %49 = vector.extract_strided_slice %17 {offsets = [1, 2, 0], sizes = [8, 16, 128], strides = [1, 1, 1]} : vector<10x18x128xbf16> to vector<8x16x128xbf16>
    %50 = vector.shape_cast %49 : vector<8x16x128xbf16> to vector<128x128xbf16>
    %c5 = arith.constant 5 : index
    %c0_23 = arith.constant 0 : index
    %c0_24 = arith.constant 0 : index
    %51 = vector.load %arg5[%c5, %c0_23, %c0_24] : memref<9x128x128xbf16, #tpu.memory_space<vmem>>, vector<1x128x128xbf16>
    %52 = vector.shape_cast %51 : vector<1x128x128xbf16> to vector<128x128xbf16>
    %cst_25 = arith.constant dense<0.000000e+00> : vector<128x128xf32>
    %53 = tpu.matmul %50, %52, %cst_25 {dimension_numbers = #tpu.dot_dimension_numbers<[1], [0], [0], [1], [0, 0, 1, 1], [], []>} : vector<128x128xbf16>, vector<128x128xbf16>, vector<128x128xf32> -> vector<128x128xf32>
    %54 = arith.addf %48, %53 : vector<128x128xf32>
    %55 = vector.extract_strided_slice %17 {offsets = [2, 0, 0], sizes = [8, 16, 128], strides = [1, 1, 1]} : vector<10x18x128xbf16> to vector<8x16x128xbf16>
    %56 = vector.shape_cast %55 : vector<8x16x128xbf16> to vector<128x128xbf16>
    %c6 = arith.constant 6 : index
    %c0_26 = arith.constant 0 : index
    %c0_27 = arith.constant 0 : index
    %57 = vector.load %arg5[%c6, %c0_26, %c0_27] : memref<9x128x128xbf16, #tpu.memory_space<vmem>>, vector<1x128x128xbf16>
    %58 = vector.shape_cast %57 : vector<1x128x128xbf16> to vector<128x128xbf16>
    %cst_28 = arith.constant dense<0.000000e+00> : vector<128x128xf32>
    %59 = tpu.matmul %56, %58, %cst_28 {dimension_numbers = #tpu.dot_dimension_numbers<[1], [0], [0], [1], [0, 0, 1, 1], [], []>} : vector<128x128xbf16>, vector<128x128xbf16>, vector<128x128xf32> -> vector<128x128xf32>
    %60 = arith.addf %54, %59 : vector<128x128xf32>
    %61 = vector.extract_strided_slice %17 {offsets = [2, 1, 0], sizes = [8, 16, 128], strides = [1, 1, 1]} : vector<10x18x128xbf16> to vector<8x16x128xbf16>
    %62 = vector.shape_cast %61 : vector<8x16x128xbf16> to vector<128x128xbf16>
    %c7 = arith.constant 7 : index
    %c0_29 = arith.constant 0 : index
    %c0_30 = arith.constant 0 : index
    %63 = vector.load %arg5[%c7, %c0_29, %c0_30] : memref<9x128x128xbf16, #tpu.memory_space<vmem>>, vector<1x128x128xbf16>
    %64 = vector.shape_cast %63 : vector<1x128x128xbf16> to vector<128x128xbf16>
    %cst_31 = arith.constant dense<0.000000e+00> : vector<128x128xf32>
    %65 = tpu.matmul %62, %64, %cst_31 {dimension_numbers = #tpu.dot_dimension_numbers<[1], [0], [0], [1], [0, 0, 1, 1], [], []>} : vector<128x128xbf16>, vector<128x128xbf16>, vector<128x128xf32> -> vector<128x128xf32>
    %66 = arith.addf %60, %65 : vector<128x128xf32>
    %67 = vector.extract_strided_slice %17 {offsets = [2, 2, 0], sizes = [8, 16, 128], strides = [1, 1, 1]} : vector<10x18x128xbf16> to vector<8x16x128xbf16>
    %68 = vector.shape_cast %67 : vector<8x16x128xbf16> to vector<128x128xbf16>
    %c8 = arith.constant 8 : index
    %c0_32 = arith.constant 0 : index
    %c0_33 = arith.constant 0 : index
    %69 = vector.load %arg5[%c8, %c0_32, %c0_33] : memref<9x128x128xbf16, #tpu.memory_space<vmem>>, vector<1x128x128xbf16>
    %70 = vector.shape_cast %69 : vector<1x128x128xbf16> to vector<128x128xbf16>
    %cst_34 = arith.constant dense<0.000000e+00> : vector<128x128xf32>
    %71 = tpu.matmul %68, %70, %cst_34 {dimension_numbers = #tpu.dot_dimension_numbers<[1], [0], [0], [1], [0, 0, 1, 1], [], []>} : vector<128x128xbf16>, vector<128x128xbf16>, vector<128x128xf32> -> vector<128x128xf32>
    %72 = arith.addf %66, %71 : vector<128x128xf32>
    %c0_35 = arith.constant 0 : index
    %c0_36 = arith.constant 0 : index
    %73 = vector.load %arg6[%c0_35, %c0_36] : memref<1x128xf32, #tpu.memory_space<vmem>>, vector<1x128xf32>
    %74 = vector.broadcast %73 : vector<1x128xf32> to vector<128x128xf32>
    %75 = arith.mulf %72, %74 : vector<128x128xf32>
    %c0_37 = arith.constant 0 : index
    %c0_38 = arith.constant 0 : index
    %76 = vector.load %arg7[%c0_37, %c0_38] : memref<1x128xf32, #tpu.memory_space<vmem>>, vector<1x128xf32>
    %77 = vector.broadcast %76 : vector<1x128xf32> to vector<128x128xf32>
    %78 = arith.addf %75, %77 : vector<128x128xf32>
    %cst_39 = arith.constant 0.000000e+00 : f32
    %79 = vector.broadcast %cst_39 : f32 to vector<128x128xf32>
    %80 = arith.maximumf %78, %79 : vector<128x128xf32>
    %81 = vector.shape_cast %80 : vector<128x128xf32> to vector<8x16x128xf32>
    %c0_40 = arith.constant 0 : index
    %c0_41 = arith.constant 0 : index
    %c0_42 = arith.constant 0 : index
    %c0_43 = arith.constant 0 : index
    %82 = vector.load %arg8[%c0_40, %c0_41, %c0_42, %c0_43] : memref<1x8x16x128xf32, #tpu.memory_space<vmem>>, vector<1x8x16x128xf32>
    %83 = vector.shape_cast %82 : vector<1x8x16x128xf32> to vector<8x16x128xf32>
    %84 = vector.shape_cast %81 : vector<8x16x128xf32> to vector<1x8x16x128xf32>
    tpu.vector_store %arg8[%c0_40, %c0_41, %c0_42, %c0_43], %84 {strides = array<i32>} : memref<1x8x16x128xf32, #tpu.memory_space<vmem>>, vector<1x8x16x128xf32>,
    return
  }
  func.func @transform_0(%arg0: i32, %arg1: i32) -> (i32, i32, i32, i32) {
    %c0_i32 = arith.constant 0 : i32
    %c0_i32_0 = arith.constant 0 : i32
    %c0_i32_1 = arith.constant 0 : i32
    %c0_i32_2 = arith.constant 0 : i32
    return %arg0, %c0_i32, %c0_i32_0, %c0_i32_1 : i32, i32, i32, i32
  }
  func.func @transform_1(%arg0: i32, %arg1: i32) -> (i32, i32, i32) {
    %c0_i32 = arith.constant 0 : i32
    %c0_i32_0 = arith.constant 0 : i32
    %c0_i32_1 = arith.constant 0 : i32
    return %arg0, %c0_i32, %c0_i32_0 : i32, i32, i32
  }
  func.func @transform_2(%arg0: i32, %arg1: i32) -> (i32, i32, i32) {
    %c0_i32 = arith.constant 0 : i32
    %c0_i32_0 = arith.constant 0 : i32
    %c0_i32_1 = arith.constant 0 : i32
    return %arg0, %c0_i32, %c0_i32_0 : i32, i32, i32
  }
  func.func @transform_3(%arg0: i32, %arg1: i32) -> (i32, i32, i32) {
    %c0_i32 = arith.constant 0 : i32
    %c0_i32_0 = arith.constant 0 : i32
    %c0_i32_1 = arith.constant 0 : i32
    %c0_i32_2 = arith.constant 0 : i32
    return %c0_i32, %c0_i32_0, %c0_i32_1 : i32, i32, i32
  }
  func.func @transform_4(%arg0: i32, %arg1: i32) -> (i32, i32) {
    %c0_i32 = arith.constant 0 : i32
    %c0_i32_0 = arith.constant 0 : i32
    %c0_i32_1 = arith.constant 0 : i32
    return %c0_i32, %c0_i32_0 : i32, i32
  }
  func.func @transform_5(%arg0: i32, %arg1: i32) -> (i32, i32) {
    %c0_i32 = arith.constant 0 : i32
    %c0_i32_0 = arith.constant 0 : i32
    %c0_i32_1 = arith.constant 0 : i32
    return %c0_i32, %c0_i32_0 : i32, i32
  }
  func.func @transform_6(%arg0: i32, %arg1: i32) -> (i32, i32, i32, i32) {
    %c0_i32 = arith.constant 0 : i32
    %c0_i32_0 = arith.constant 0 : i32
    %c0_i32_1 = arith.constant 0 : i32
    return %arg0, %arg1, %c0_i32, %c0_i32_0 : i32, i32, i32, i32
  }
}

</mosaic_0001>

<bundles_post_ra>
// kernel: rfca_forward.3
= control target key start
LH: loop header
LB: loop body
LE: loop exit
PB: predicated region body
PF: predicated region fallthrough
CT: control target
= control target key end

     0   :  { %s2941_s15 = smov 0   ;;  %s2943_s16 = smov 0   ;;  %s3674_s0 = inlined_call_operand.vmem [shape: bf16[2,18,18,4], index: 0, kind: input, shape index: {}]   ;;  %s3675_s1 = inlined_call_operand.vmem [shape: bf16[9,4,128], index: 1, kind: input, shape index: {}]   ;;  %s3676_s2 = inlined_call_operand.vmem [shape: f32[1,128], index: 2, kind: input, shape index: {}]   ;;  %s3677_s3 = inlined_call_operand.vmem [shape: f32[1,128], index: 3, kind: input, shape index: {}]   ;;  %s3678_s4 = inlined_call_operand.vmem [shape: bf16[2,16,16,128], index: 4, kind: output, shape index: {}]  }
   0x1   :  { %s2945_s17 = smov 0   ;;  %s2947_s18 = smov 0  }
   0x2   :  { %s2949_s19 = smov 0  }
   0x3 LB: > { %s23_s20 = sadd.s32 1, %s2906_s17  ;;  %s26_s21 = sadd.s32 1, %s2910_s18  ;;  %s2914_s19 = sphi %s2949_s19, %s14_s19   ;;  %s2910_s18 = sphi %s2947_s18, %s3687_s18   ;;  %s2906_s17 = sphi %s2945_s17, %s3686_s17   ;;  %s2902_s16 = sphi %s2943_s16, %s3685_s16   ;;  %s2898_s15 = sphi %s2941_s15, %s3684_s15  }
   0x4   : > { %p24_p0 = scmp.ge.s32.totalorder %s23_s20, 2  ;;  %p2149_p1 = scmp.ge.s32.totalorder %s2914_s19, 1 }
   0x5   : > { %p176_p2 = scmp.lt.s32.totalorder %s2914_s19, 5 }
   0x6   : > { %s3689_s20 = smov (%p24_p0, %s23_s20), 0  ;;  %s3691_s21 = smov (!%p24_p0, %s26_s21), %s2910_s18 }
   0x7   : > { %p177_p3 = pnand %p2149_p1, %p176_p2  ;;  %p28_p4 = scmp.ge.s32.totalorder %s3691_s21, 2 }
   0x8   : > { %v2158_v0 = vld [vmem:[%s3675_s1 + $0x2] sm:$0x3] (!%p177_p3)  ;;  %vm505_vm0 = vcmask (!%p177_p3), 1041408   ;;  %v2979_v1 = vld [vmem:[%s3675_s1 + $0x8] sm:$0x3] (!%p177_p3)  ;;  %p207_p5 = scmp.lt.s32.totalorder (!%p177_p3), %s2902_s16, 1 }
   0x9   : > { %s3693_s21 = smov (%p28_p4, %s3691_s21), 0  ;;  %180 = sbr.rel (%p177_p3) target bundleno = 433 (0x1b1), region = 36 }
   0xa   : > { %2751 = vmatprep.subr.msk.bf16.mxu1 (!%p177_p3), %vm505_vm0, %v2158_v0  ;;  %2755 = vmatprep.subr.msk.bf16.mxu0 (!%p177_p3), %vm505_vm0, %v2979_v1  ;;  %v507_v2 = vsel (!%p177_p3), %vm505_vm0, %v2158_v0, 0  ;;  %v2987_v3 = vsel (!%p177_p3), %vm505_vm0, %v2979_v1, 0  ;;  %v258_v4 = vld [vmem:[%s3675_s1] sm:$0x3] (!%p177_p3)  ;;  %s2314_s28 = smul.u32 (!%p177_p3), 96, %s2898_s15  ;;  %vm480_vm3 = vcmask (!%p177_p3), 31744  }
   0xb   : > { %2460 = vmatpush3.bf16.msra.mxu1 (!%p177_p3), %v507_v2  ;;  %2532 = vmatpush3.bf16.msra.mxu0 (!%p177_p3), %v2987_v3  ;;  %v2237_v5 = vld [vmem:[%s3675_s1 + $0xa] sm:$0x3] (!%p177_p3)  ;;  %vm259_vm1 = vsmask.f32 (!%p177_p3), 3328  ;;  %vm260_vm2 = vsmask.f32 (!%p177_p3), 7440 }
   0xc   : > { %2752 = vmatprep.subr.msk.bf16.mxu1 (!%p177_p3), %vm505_vm0, %v258_v4  ;;  %2757 = vmatprep.subr.msk.bf16.mxu0 (!%p177_p3), %vm505_vm0, %v2237_v5  ;;  %v3008_v6 = vsel (!%p177_p3), %vm505_vm0, %v258_v4, 0  ;;  %v3034_v18 = vsel (!%p177_p3), %vm505_vm0, %v2237_v5, 0  ;;  %v3039_v23 = vld [vmem:[%s3675_s1 + $0xc] sm:$0x3] (!%p177_p3)  ;;  %vm3051_vm4 = vmor (!%p177_p3), %vm259_vm1, %vm260_vm2  ;;  %vm778_vm5 = vcmask (!%p177_p3), 1042432   ;;  %vm779_vm6 = vcmask (!%p177_p3), 1046532  }
   0xd   : > { %v3060_v38 = vsel (!%p177_p3), %vm505_vm0, %v3039_v23, 0  ;;  %vm3134_vm7 = vmor (!%p177_p3), %vm778_vm5, %vm779_vm6 }
  0x10   : > { %s3695_s16 = smov (!%p207_p5, %s2902_s16), 1 }
  0x11   : > { %s2761_s5 = smul.u32 216, %s3695_s16  ;;  %s2153_s7 = sshll.u32 %s3695_s16, 5 }
  0x13   : > { %s211_s8 = scalar_lea.vmem %s3674_s0, %s2761_s5  ;;  %s2151_s5 = sshll.u32 %s2898_s15, 3 }
  0x14   : > { %s3005_s9 = scalar_lea.vmem %s211_s8, %s2314_s28  ;;  %p3575_p6 = scmp.lt.s32.totalorder %s2151_s5, 15 }
  0x15   : > { %v3011_v7 = vld [vmem:[%s3005_s9] sm:$0xf]  ;;  %v3014_v8 = vld [vmem:[%s3005_s9 + $0x4] sm:$0xf]  ;;  %v3017_v9 = vld [vmem:[%s3005_s9 + $0x8] sm:$0x1] }
  0x16   : > { %v263_v10 = vshrl.u32 %v3011_v7, 16  ;;  %v266_v11 = vshll.u32 %v3011_v7, 16  ;;  %v272_v12 = vshll.u32 %v3014_v8, 16  ;;  %v276_v13 = vshrl.u32 %v3014_v8, 16  ;;  %v3024_v14 = vld [vmem:[%s3005_s9 + $0xc] sm:$0xf] }
  0x17   : > { %v282_v15 = vshll.u32 %v3017_v9, 16  ;;  %v3028_v16 = vld [vmem:[%s3005_s9 + $0x10] sm:$0xf]  ;;  %v3031_v17 = vld [vmem:[%s3005_s9 + $0x14] sm:$0x1]  ;;  %v287_v25 = vshrl.u32 %v3024_v14, 16 }
  0x18   : > { %v265_v19 = vrot.slane %v263_v10, 4  ;;  %v268_v20 = vrot.slane %v266_v11, 5  ;;  %v274_v21 = vrot.slane %v272_v12, 5  ;;  %v278_v22 = vrot.slane %v276_v13, 4  ;;  %v3047_v32 = vld [vmem:[%s3005_s9 + $0x18] sm:$0xf] }
  0x19   : > { %v284_v24 = vrot.slane %v282_v15, 5  ;;  %v290_v26 = vshll.u32 %v3024_v14, 16  ;;  %v296_v27 = vshll.u32 %v3028_v16, 16  ;;  %v300_v30 = vshrl.u32 %v3028_v16, 16  ;;  %v3056_v37 = vld [vmem:[%s3005_s9 + $0x1c] sm:$0xf] }
  0x1a   : > { %v269_v28 = vor.u32 %v268_v20, %v265_v19  ;;  %v279_v29 = vor.u32 %v278_v22, %v274_v21  ;;  %v306_v31 = vshll.u32 %v3031_v17, 16  ;;  %v289_v34 = vrot.slane %v287_v25, 4  ;;  %v3064_v45 = vld [vmem:[%s3005_s9 + $0x20] sm:$0x1]  ;;  %v3074_v56 = vld [vmem:[%s3005_s9 + $0x24] sm:$0xf] }
  0x1b   : > { %v292_v35 = vrot.slane %v290_v26, 5  ;;  %v298_v36 = vrot.slane %v296_v27, 5  ;;  %v302_v41 = vrot.slane %v300_v30, 4  ;;  %v793_v44 = vrot.slane %v3031_v17, 5  ;;  %v3079_v61 = vld [vmem:[%s3005_s9 + $0x28] sm:$0xf] }
  0x1c   : > { %v270_v39 = vrot.slane %v269_v28, 4  ;;  %v280_v40 = vrot.slane %v279_v29, 4  ;;  %v308_v42 = vrot.slane %v306_v31, 5  ;;  %v311_v46 = vshrl.u32 %v3047_v32, 16  ;;  %v3087_v4 = vld [vmem:[%s3005_s9 + $0x2c] sm:$0x1] }
  0x1d   : > { %v293_v43 = vor.u32 %v292_v35, %v289_v34  ;;  %v314_v47 = vshll.u32 %v3047_v32, 16  ;;  %v303_v50 = vor.u32 %v302_v41, %v298_v36  ;;  %v320_v51 = vshll.u32 %v3056_v37, 16  ;;  %v3093_v13 = vld [vmem:[%s3005_s9 + $0x30] sm:$0xf]  ;;  %v3100_v22 = vld [vmem:[%s3675_s1 + $0x4] sm:$0x3] }
  0x1e   : > { %v275_v48 = vsel %vm3051_vm4, %v270_v39, %v274_v21  ;;  %v285_v49 = vsel %vm3051_vm4, %v280_v40, %v284_v24  ;;  %v313_v54 = vrot.slane %v311_v46, 4  ;;  %v324_v59 = vshrl.u32 %v3056_v37, 16  ;;  %v3105_v28 = vld [vmem:[%s3005_s9 + $0x34] sm:$0xf]  ;;  %v3112_v34 = vld [vmem:[%s3005_s9 + $0x38] sm:$0x1] }
  0x1f   : > { %v2159_v52 = vcombine.low %v275_v48, %v285_v49  ;;  %v294_v53 = vrot.slane %v293_v43, 4  ;;  %v316_v55 = vrot.slane %v314_v47, 5  ;;  %v304_v57 = vrot.slane %v303_v50, 4  ;;  %s3697_s5 = smov (!%p3575_p6, %s2151_s5), 15 }
  0x20   : > { %v322_v58 = vrot.slane %v320_v51, 5  ;;  %v330_v60 = vshll.u32 %v3064_v45, 16  ;;  %v797_v0 = vrot.slane %v3056_v37, 5  ;;  %v800_v2 = vrot.slane %v3064_v45, 5  ;;  %v3125_v51 = vld [vmem:[%s3005_s9 + $0x3c] sm:$0xf] }
  0x21   : > { %2461 = vmatprep.mubr.msk.bf16.mxu1 %vm480_vm3, %v2159_v52  ;;  %v299_v62 = vsel %vm3051_vm4, %v294_v53, %v298_v36  ;;  %v317_v63 = vor.u32 %v316_v55, %v313_v54  ;;  %v309_v5 = vsel %vm3051_vm4, %v304_v57, %v308_v42  ;;  %v326_v10 = vrot.slane %v324_v59, 4  ;;  %v3130_v57 = vld [vmem:[%s3005_s9 + $0x40] sm:$0xf]  ;;  %s2152_s15 = sshll.u32 %s3697_s5, 1 }
  0x22   : > { %v332_v11 = vrot.slane %v330_v60, 5  ;;  %v335_v12 = vshrl.u32 %v3074_v56, 16  ;;  %v2160_v15 = vcombine.low %v299_v62, %v309_v5  ;;  %v338_v20 = vshll.u32 %v3074_v56, 16  ;;  %s3609_s16 = sadd.s32 %s2153_s7, %s2152_s15 }
  0x23   : > { %v318_v19 = vrot.slane %v317_v63, 4  ;;  %v344_v21 = vshll.u32 %v3079_v61, 16  ;;  %v327_v24 = vor.u32 %v326_v10, %v322_v58  ;;  %v348_v26 = vshrl.u32 %v3079_v61, 16  ;;  %s2154_s8 = sshll.u32 %s3609_s16, 2 }
  0x24   : > { %v337_v25 = vrot.slane %v335_v12, 4  ;;  %v354_v27 = vshll.u32 %v3087_v4, 16  ;;  %2533 = vmatprep.mubr.msk.bf16.mxu0 %vm480_vm3, %v2160_v15  ;;  %2462 = vmatmul.mubr.msk.bf16.vlgmr.msra.gmra.mrb[0].mxu1 %vm480_vm3, %v2160_v15  ;;  %v340_v30 = vrot.slane %v338_v20, 5  ;;  %v359_v35 = vshrl.u32 %v3093_v13, 16  ;;  %v3151_v20 = vld [vmem:[%s3005_s9 + $0x44] sm:$0x1]  ;;  %s3636_s11 = scalar_lea.vmem %s3678_s4, %s2154_s8 }
  0x25   : > { %v323_v29 = vsel %vm3051_vm4, %v318_v19, %v322_v58  ;;  %v346_v31 = vrot.slane %v344_v21, 5  ;;  %2478 = vmatpush3.bf16.msra.mxu1 %v3008_v6  ;;  %v328_v36 = vrot.slane %v327_v24, 4  ;;  %v350_v39 = vrot.slane %v348_v26, 4 }
  0x26   : > { %v356_v40 = vrot.slane %v354_v27, 5  ;;  %v362_v41 = vshll.u32 %v3093_v13, 16  ;;  %v341_v42 = vor.u32 %v340_v30, %v337_v25  ;;  %v361_v43 = vrot.slane %v359_v35, 4  ;;  %2753 = vmatprep.subr.msk.bf16.mxu1 %vm505_vm0, %v3100_v22 }
  0x27   : > { %v368_v46 = vshll.u32 %v3105_v28, 16  ;;  %v372_v47 = vshrl.u32 %v3105_v28, 16  ;;  %v333_v48 = vsel %vm3051_vm4, %v328_v36, %v332_v11  ;;  %v351_v49 = vor.u32 %v350_v39, %v346_v31  ;;  %v3164_v36 = vld [vmem:[%s3005_s9 + $0x48] sm:$0xf] }
  0x28   : > { %v364_v6 = vrot.slane %v362_v41, 5  ;;  %v378_v50 = vshll.u32 %v3112_v34, 16  ;;  %v3127_v52 = vcombine.low %v323_v29, %v333_v48  ;;  %v342_v53 = vrot.slane %v341_v42, 4  ;;  %v3179_v42 = vld [vmem:[%s3005_s9 + $0x4c] sm:$0xf] }
  0x29   : > { %v370_v54 = vrot.slane %v368_v46, 5  ;;  %v374_v55 = vrot.slane %v372_v47, 4  ;;  %v352_v58 = vrot.slane %v351_v49, 4  ;;  %v2192_v63 = vrot.slane %v3024_v14, 9 }
  0x2a   : > { %v365_v59 = vor.u32 %v364_v6, %v361_v43  ;;  %v380_v60 = vrot.slane %v378_v50, 5  ;;  %2534 = vmatmul.mubr.msk.bf16.vlgmr.msra.gmra.mrb[0].mxu0 %vm480_vm3, %v3127_v52  ;;  %2465 = vmatprep.mubr.msk.bf16.mxu1 %vm480_vm3, %v3127_v52  ;;  %v347_v5 = vsel %vm3051_vm4, %v342_v53, %v346_v31  ;;  %v790_v11 = vrot.slane %v3028_v16, 5 }
  0x2b   : > { %v375_v10 = vor.u32 %v374_v55, %v370_v54  ;;  %v383_v12 = vshrl.u32 %v3125_v51, 16  ;;  %2550 = vmatpush3.bf16.msra.mxu0 %v3034_v18  ;;  %v357_v15 = vsel %vm3051_vm4, %v352_v58, %v356_v40  ;;  %v386_v21 = vshll.u32 %v3125_v51, 16 }
  0x2c   : > { %v366_v19 = vrot.slane %v365_v59, 4  ;;  %v392_v24 = vshll.u32 %v3130_v57, 16  ;;  %v3155_v25 = vcombine.low %v347_v5, %v357_v15  ;;  %v791_v27 = vsel %vm3134_vm7, %v2192_v63, %v790_v11  ;;  %2758 = vmatprep.subr.msk.bf16.mxu0 %vm505_vm0, %v3039_v23 }
  0x2d   : > { %v376_v26 = vrot.slane %v375_v10, 4  ;;  %v792_v29 = vrot.slane %v790_v11, 4  ;;  %v385_v30 = vrot.slane %v383_v12, 4  ;;  %v388_v31 = vrot.slane %v386_v21, 5 }
  0x2e   : > { %v371_v18 = vsel %vm3051_vm4, %v366_v19, %v370_v54  ;;  %v394_v35 = vrot.slane %v392_v24, 5  ;;  %2537 = vmatprep.mubr.msk.bf16.mxu0 %vm480_vm3, %v3155_v25  ;;  %2466 = vmatmul.mubr.msk.bf16.gmra.mrb[4].mxu1 %vm480_vm3, %v3155_v25  ;;  %v396_v40 = vshrl.u32 %v3130_v57, 16  ;;  %v402_v41 = vshll.u32 %v3151_v20, 16  ;;  %v3196_v54 = vld [vmem:[%s3005_s9 + $0x50] sm:$0x1] }
  0x2f   : > { %v381_v39 = vsel %vm3051_vm4, %v376_v26, %v380_v60  ;;  %v794_v23 = vsel %vm3134_vm7, %v792_v29, %v793_v44  ;;  %v389_v47 = vor.u32 %v388_v31, %v385_v30  ;;  %v2193_v48 = vrot.slane %v3047_v32, 9  ;;  %v3221_v29 = vld [vmem:[%s3005_s9 + $0x58] sm:$0xf] }
  0x30   : > { %v3181_v43 = vcombine.low %v371_v18, %v381_v39  ;;  %v3183_v46 = vcombine.low %v791_v27, %v794_v23  ;;  %v398_v49 = vrot.slane %v396_v40, 4  ;;  %v404_v17 = vrot.slane %v402_v41, 5  ;;  %v3227_v39 = vld [vmem:[%s3005_s9 + $0x5c] sm:$0x1] }
  0x31   : > { %v799_v6 = vrot.slane %v797_v0, 4  ;;  %v407_v44 = vshrl.u32 %v3164_v36, 16  ;;  %v390_v50 = vrot.slane %v389_v47, 4  ;;  %v798_v53 = vsel %vm3134_vm7, %v2193_v48, %v797_v0  ;;  %v3208_v0 = vld [vmem:[%s3005_s9 + $0x54] sm:$0xf] }
  0x32   : > { %2469 = vmatprep.mubr.msk.bf16.mxu1 %vm480_vm3, %v3181_v43  ;;  %v410_v55 = vshll.u32 %v3164_v36, 16  ;;  %v416_v58 = vshll.u32 %v3179_v42, 16  ;;  %2538 = vmatmul.mubr.msk.bf16.gmra.mrb[4].mxu0 %vm480_vm3, %v3181_v43  ;;  %v399_v59 = vor.u32 %v398_v49, %v394_v35  ;;  %v420_v5 = vshrl.u32 %v3179_v42, 16 }
  0x33   : > { %v801_v60 = vsel %vm3134_vm7, %v799_v6, %v800_v2  ;;  %v409_v63 = vrot.slane %v407_v44, 4  ;;  %2551 = vmatprep.mubr.msk.bf16.mxu0 %vm480_vm3, %v3183_v46  ;;  %v395_v10 = vsel %vm3051_vm4, %v390_v50, %v394_v35  ;;  %v426_v2 = vshll.u32 %v3196_v54, 16 }
  0x34   : > { %v3214_v11 = vcombine.low %v798_v53, %v801_v60  ;;  %v412_v12 = vrot.slane %v410_v55, 5  ;;  %v418_v45 = vrot.slane %v416_v58, 5  ;;  %v400_v15 = vrot.slane %v399_v59, 4  ;;  %v3246_v58 = vld [vmem:[%s3675_s1 + $0xe] sm:$0x3] }
  0x35   : > { %v422_v19 = vrot.slane %v420_v5, 4  ;;  %v2194_v21 = vrot.slane %v3074_v56, 9  ;;  %v804_v26 = vrot.slane %v3079_v61, 5  ;;  %v807_v27 = vrot.slane %v3087_v4, 5 }
  0x36   : > { %v413_v24 = vor.u32 %v412_v12, %v409_v63  ;;  %v431_v18 = vshrl.u32 %v3208_v0, 16  ;;  %v405_v30 = vsel %vm3051_vm4, %v400_v15, %v404_v17  ;;  %v428_v35 = vrot.slane %v426_v2, 5 }
  0x37   : > { %v423_v31 = vor.u32 %v422_v19, %v418_v45  ;;  %v434_v23 = vshll.u32 %v3208_v0, 16  ;;  %v3230_v40 = vcombine.low %v395_v10, %v405_v30  ;;  %v805_v47 = vsel %vm3134_vm7, %v2194_v21, %v804_v26 }
  0x38   : > { %v414_v41 = vrot.slane %v413_v24, 4  ;;  %v806_v4 = vrot.slane %v804_v26, 4  ;;  %v433_v49 = vrot.slane %v431_v18, 4  ;;  %v440_v44 = vshll.u32 %v3221_v29, 16 }
  0x39   : > { %v424_v48 = vrot.slane %v423_v31, 4  ;;  %v436_v6 = vrot.slane %v434_v23, 5  ;;  %2470 = vmatmul.mubr.msk.bf16.gmra.mrb[8].mxu1 %vm480_vm3, %v3230_v40  ;;  %v444_v53 = vshrl.u32 %v3221_v29, 16  ;;  %v450_v55 = vshll.u32 %v3227_v39, 16 }
  0x3a   : > { %v419_v17 = vsel %vm3051_vm4, %v414_v41, %v418_v45  ;;  %v808_v50 = vsel %vm3134_vm7, %v806_v4, %v807_v27  ;;  %2552 = vmatmul.mubr.msk.bf16.vlgmr.msra.gmra.mrb[0].mxu0 %vm480_vm3, %v3214_v11  ;;  %v442_v5 = vrot.slane %v440_v44, 5  ;;  %v2195_v45 = vrot.slane %v3093_v13, 9 }
  0x3b   : > { %v429_v59 = vsel %vm3051_vm4, %v424_v48, %v428_v35  ;;  %v3252_v60 = vcombine.low %v805_v47, %v808_v50  ;;  %v437_v63 = vor.u32 %v436_v6, %v433_v49  ;;  %2568 = vmatpush3.bf16.msra.mxu0 %v3060_v38  ;;  %v446_v12 = vrot.slane %v444_v53, 4  ;;  %v3290_v53 = vld [vmem:[%s3005_s9 + $0x64] sm:$0xf] }
  0x3c   : > { %v3255_v10 = vcombine.low %v419_v17, %v429_v59  ;;  %v811_v19 = vrot.slane %v3105_v28, 5  ;;  %v814_v2 = vrot.slane %v3112_v34, 5  ;;  %v2196_v21 = vrot.slane %v3125_v51, 9  ;;  %2759 = vmatprep.subr.msk.bf16.mxu0 %vm505_vm0, %v3246_v58 }
  0x3d   : > { %2555 = vmatprep.mubr.msk.bf16.mxu0 %vm480_vm3, %v3252_v60  ;;  %v438_v15 = vrot.slane %v437_v63, 4  ;;  %v447_v38 = vor.u32 %v446_v12, %v442_v5  ;;  %v452_v24 = vrot.slane %v450_v55, 5  ;;  %v818_v26 = vrot.slane %v3130_v57, 5 }
  0x3e   : > { %2473 = vmatprep.mubr.msk.bf16.mxu1 %vm480_vm3, %v3255_v10  ;;  %v821_v27 = vrot.slane %v3151_v20, 5  ;;  %v812_v18 = vsel %vm3134_vm7, %v2195_v45, %v811_v19  ;;  %v813_v30 = vrot.slane %v811_v19, 4  ;;  %v2175_v34 = vcombine.low %v3011_v7, %v3014_v8  ;;  %v3312_v19 = vld [vmem:[%s3005_s9 + $0x68] sm:$0x1] }
  0x3f   : > { %v825_v31 = vrot.slane %v3179_v42, 5  ;;  %v443_v35 = vsel %vm3051_vm4, %v438_v15, %v442_v5  ;;  %v448_v23 = vrot.slane %v447_v38, 4  ;;  %v819_v41 = vsel %vm3134_vm7, %v2196_v21, %v818_v26  ;;  %v3301_v5 = vld [vmem:[%s3005_s9 + $0x60] sm:$0xf] }
  0x40   : > { %v820_v47 = vrot.slane %v818_v26, 4  ;;  %v815_v20 = vsel %vm3134_vm7, %v813_v30, %v814_v2  ;;  %v2197_v4 = vrot.slane %v3164_v36, 9  ;;  %v828_v49 = vrot.slane %v3196_v54, 5 }
  0x41   : > { %v827_v48 = vrot.slane %v825_v31, 4  ;;  %v453_v6 = vsel %vm3051_vm4, %v448_v23, %v452_v24  ;;  %v3284_v44 = vcombine.low %v812_v18, %v815_v20  ;;  %v2198_v50 = vrot.slane %v3208_v0, 9  ;;  %v3337_v23 = vld [vmem:[%s3005_s9 + $0x70] sm:$0xf] }
  0x42   : > { %v822_v17 = vsel %vm3134_vm7, %v820_v47, %v821_v27  ;;  %v3292_v55 = vcombine.low %v443_v35, %v453_v6  ;;  %v832_v63 = vrot.slane %v3221_v29, 5  ;;  %v835_v54 = vrot.slane %v3227_v39, 5 }
  0x43   : > { %v3294_v59 = vcombine.low %v819_v41, %v822_v17  ;;  %2556 = vmatmul.mubr.msk.bf16.gmra.mrb[4].mxu0 %vm480_vm3, %v3284_v44  ;;  %v826_v12 = vsel %vm3134_vm7, %v2197_v4, %v825_v31  ;;  %v829_v45 = vsel %vm3134_vm7, %v827_v48, %v828_v49  ;;  %v1280_v39 = vrot.slane %v3290_v53, 5  ;;  %v257_v49 = vld [vmem:[%s3005_s9 + $0x74] sm:$0x1] }
  0x44   : > { %2474 = vmatmul.mubr.msk.bf16.gmra.mrb[12].mxu1 %vm480_vm3, %v3292_v55  ;;  %v834_v15 = vrot.slane %v832_v63, 4  ;;  %v833_v2 = vsel %vm3134_vm7, %v2198_v50, %v832_v63  ;;  %v786_v21 = vrot.slane %v3017_v9, 5  ;;  %v2236_v24 = vrot.slane %v3301_v5, 9 }
  0x45   : > { %2559 = vmatprep.mubr.msk.bf16.mxu0 %vm480_vm3, %v3294_v59  ;;  %2479 = vmatprep.mubr.msk.bf16.mxu1 %vm480_vm3, %v2175_v34  ;;  %v2191_v26 = vrot.slane %v3011_v7, 9  ;;  %v3323_v27 = vcombine.low %v826_v12, %v829_v45  ;;  %v1282_v18 = vrot.slane %v1280_v39, 4  ;;  %v1283_v30 = vrot.slane %v3312_v19, 5  ;;  %v3328_v34 = vld [vmem:[%s3005_s9 + $0x6c] sm:$0xf] }
  0x46   : > { %v836_v38 = vsel %vm3134_vm7, %v834_v15, %v835_v54  ;;  %v783_v31 = vrot.slane %v3014_v8, 5  ;;  %v3332_v9 = vcombine.low %v3024_v14, %v3028_v16  ;;  %v1536_v7 = vshrl.u32 %v3328_v34, 16 }
  0x47   : > { %v3334_v35 = vcombine.low %v833_v2, %v836_v38  ;;  %v1539_v41 = vshll.u32 %v3328_v34, 16  ;;  %v3343_v47 = vcombine.low %v3047_v32, %v3056_v37  ;;  %v1549_v4 = vshrl.u32 %v3337_v23, 16  ;;  %v2216_v37 = vld [vmem:[%s3675_s1 + $0x6] sm:$0x3] }
  0x48   : > { %v784_v8 = vsel %vm3134_vm7, %v2191_v26, %v783_v31  ;;  %v785_v20 = vrot.slane %v783_v31, 4  ;;  %v888_v14 = vsel %vm505_vm0, %v3100_v22, 0  ;;  %v1281_v16 = vsel %vm3134_vm7, %v2236_v24, %v1280_v39 }
  0x49   : > { %v1284_v48 = vsel %vm3134_vm7, %v1282_v18, %v1283_v30  ;;  %v1538_v6 = vrot.slane %v1536_v7, 4  ;;  %v1541_v17 = vrot.slane %v1539_v41, 5  ;;  %v1545_v63 = vshll.u32 %v3337_v23, 16 }
  0x4a   : > { %v787_v32 = vsel %vm3134_vm7, %v785_v20, %v786_v21  ;;  %v1551_v54 = vrot.slane %v1549_v4, 4  ;;  %v3369_v12 = vcombine.low %v1281_v16, %v1284_v48  ;;  %v1555_v45 = vshll.u32 %v257_v49, 16 }
  0x4b   : > { %2560 = vmatmul.mubr.msk.bf16.gmra.mrb[8].mxu0 %vm480_vm3, %v3323_v27  ;;  %v2200_v22 = vcombine.low %v784_v8, %v787_v32  ;;  %v1542_v50 = vor.u32 %v1541_v17, %v1538_v6  ;;  %v2267_v15 = vrot.slane %v3328_v34, 9  ;;  %v1547_v2 = vrot.slane %v1545_v63, 5 }
  0x4c   : > { %2480 = vmatmul.mubr.msk.bf16.vlgmr.msra.gmra.mrb[0].mxu1 %vm480_vm3, %v3332_v9  ;;  %2563 = vmatprep.mubr.msk.bf16.mxu0 %vm480_vm3, %v3334_v35  ;;  %v1686_v21 = vrot.slane %v3337_v23, 5  ;;  %v1689_v38 = vrot.slane %v257_v49, 5  ;;  %v3376_v24 = vcombine.low %v3074_v56, %v3079_v61  ;;  %v3380_v26 = vcombine.low %v3093_v13, %v3105_v28 }
  0x4d   : > { %2496 = vmatpush3.bf16.msra.mxu1 %v888_v14  ;;  %2483 = vmatprep.mubr.msk.bf16.mxu1 %vm480_vm3, %v3343_v47  ;;  %v1543_v39 = vrot.slane %v1542_v50, 4  ;;  %v1557_v18 = vrot.slane %v1555_v45, 5  ;;  %v1552_v31 = vor.u32 %v1551_v54, %v1547_v2  ;;  %v3406_v62 = vcombine.low %v3125_v51, %v3130_v57  ;;  %v2268_v14 = vld [vmem:[%s3675_s1 + $0x10] sm:$0x3] }
  0x4e   : > { %2754 = vmatprep.subr.msk.bf16.mxu1 %vm505_vm0, %v2216_v37  ;;  %v3386_v7 = vsel %vm3134_vm7, %v2267_v15, %v1686_v21  ;;  %v1688_v41 = vrot.slane %v1686_v21, 4  ;;  %v1568_v20 = vsel %vm505_vm0, %v3246_v58, 0  ;;  %v3412_v4 = vcombine.low %v3164_v36, %v3179_v42 }
  0x4f   : > { %v1548_v30 = vsel %vm3051_vm4, %v1543_v39, %v1547_v2  ;;  %v1553_v8 = vrot.slane %v1552_v31, 4  ;;  %v2182_v51 = vcombine.low %v3208_v0, %v3221_v29  ;;  %v2217_v57 = vcombine.low %v3301_v5, %v3290_v53 }
  0x50   : > { %v3392_v56 = vsel %vm3134_vm7, %v1688_v41, %v1689_v38  ;;  %v1014_v36 = vsel %vm505_vm0, %v2216_v37, 0  ;;  %v2248_v42 = vcombine.low %v3328_v34, %v3337_v23  ;;  %v1133_v0 = vshll.u32 %v3301_v5, 16 }
  0x51   : > { %v2269_v61 = vcombine.low %v3386_v7, %v3392_v56  ;;  %v1558_v13 = vsel %vm3051_vm4, %v1553_v8, %v1557_v18  ;;  %v1143_v29 = vshrl.u32 %v3290_v53, 16  ;;  %v1700_v58 = vsel %vm505_vm0, %v2268_v14, 0 }
  0x52   : > { %v2258_v28 = vcombine.low %v1548_v30, %v1558_v13  ;;  %v1135_v23 = vrot.slane %v1133_v0, 5 }
  0x53   : > { %2564 = vmatmul.mubr.msk.bf16.gmra.mrb[12].mxu0 %vm480_vm3, %v3369_v12  ;;  %v1145_v48 = vrot.slane %v1143_v29, 4 }
  0x54   : > { %2484 = vmatmul.mubr.msk.bf16.gmra.mrb[4].mxu1 %vm480_vm3, %v3376_v24  ;;  %2569 = vmatprep.mubr.msk.bf16.mxu0 %vm480_vm3, %v3343_v47 }
  0x55   : > { %2487 = vmatprep.mubr.msk.bf16.mxu1 %vm480_vm3, %v3380_v26 }
  0x5b   : > { %2570 = vmatmul.mubr.msk.bf16.vlgmr.msra.gmra.mrb[0].mxu0 %vm480_vm3, %v3376_v24 }
  0x5c   : > { %2488 = vmatmul.mubr.msk.bf16.gmra.mrb[8].mxu1 %vm480_vm3, %v3406_v62  ;;  %2586 = vmatpush3.bf16.msra.mxu0 %v1568_v20 }
  0x5d   : > { %2491 = vmatprep.mubr.msk.bf16.mxu1 %vm480_vm3, %v3412_v4  ;;  %2573 = vmatprep.mubr.msk.bf16.mxu0 %vm480_vm3, %v3380_v26 }
  0x5e   : > { %2760 = vmatprep.subr.msk.bf16.mxu0 %vm505_vm0, %v2268_v14 }
  0x63   : > { %2574 = vmatmul.mubr.msk.bf16.gmra.mrb[4].mxu0 %vm480_vm3, %v3406_v62 }
  0x64   : > { %2492 = vmatmul.mubr.msk.bf16.gmra.mrb[12].mxu1 %vm480_vm3, %v2182_v51  ;;  %2577 = vmatprep.mubr.msk.bf16.mxu0 %vm480_vm3, %v3412_v4 }
  0x65   : > { %2497 = vmatprep.mubr.msk.bf16.mxu1 %vm480_vm3, %v2200_v22 }
  0x6b   : > { %2578 = vmatmul.mubr.msk.bf16.gmra.mrb[8].mxu0 %vm480_vm3, %v2182_v51 }
  0x6c   : > { %2498 = vmatmul.mubr.msk.bf16.vlgmr.msra.gmra.mrb[0].mxu1 %vm480_vm3, %v3183_v46  ;;  %2581 = vmatprep.mubr.msk.bf16.mxu0 %vm480_vm3, %v2217_v57  ;;  %v1130_v46 = vshrl.u32 %v3301_v5, 16  ;;  %v1149_v5 = vshll.u32 %v3312_v19, 16 }
  0x6d   : > { %2514 = vmatpush3.bf16.msra.mxu1 %v1014_v36  ;;  %2501 = vmatprep.mubr.msk.bf16.mxu1 %vm480_vm3, %v3214_v11 }
  0x6e   : > { %2756 = vmatprep.subr.msk.bf16.mxu1 %vm505_vm0, %v2979_v1  ;;  %v1139_v1 = vshll.u32 %v3290_v53, 16  ;;  %v1132_v34 = vrot.slane %v1130_v46, 4  ;;  %v1151_v49 = vrot.slane %v1149_v5, 5 }
  0x70   : > { %v1141_v16 = vrot.slane %v1139_v1, 5 }
  0x72   : > { %v1146_v53 = vor.u32 %v1145_v48, %v1141_v16 }
  0x73   : > { %2582 = vmatmul.mubr.msk.bf16.gmra.mrb[12].mxu0 %vm480_vm3, %v2248_v42 }
  0x74   : > { %2502 = vmatmul.mubr.msk.bf16.gmra.mrb[4].mxu1 %vm480_vm3, %v3252_v60  ;;  %2587 = vmatprep.mubr.msk.bf16.mxu0 %vm480_vm3, %v3127_v52  ;;  %v1136_v52 = vor.u32 %v1135_v23, %v1132_v34  ;;  %v1147_v37 = vrot.slane %v1146_v53, 4 }
  0x75   : > { %2505 = vmatprep.mubr.msk.bf16.mxu1 %vm480_vm3, %v3284_v44 }
  0x76   : > { %v1137_v32 = vrot.slane %v1136_v52, 4 }
  0x7b   : > { %2588 = vmatmul.mubr.msk.bf16.vlgmr.msra.gmra.mrb[0].mxu0 %vm480_vm3, %v3155_v25  ;;  %v1142_v25 = vsel %vm3051_vm4, %v1137_v32, %v1141_v16 }
  0x7c   : > { %2506 = vmatmul.mubr.msk.bf16.gmra.mrb[8].mxu1 %vm480_vm3, %v3294_v59  ;;  %2604 = vmatpush3.bf16.msra.mxu0 %v1700_v58 }
  0x7d   : > { %2509 = vmatprep.mubr.msk.bf16.mxu1 %vm480_vm3, %v3323_v27  ;;  %2591 = vmatprep.mubr.msk.bf16.mxu0 %vm480_vm3, %v3181_v43  ;;  %v1152_v43 = vsel %vm3051_vm4, %v1147_v37, %v1151_v49 }
  0x7e   : > { %v2227_v19 = vcombine.low %v1142_v25, %v1152_v43 }
  0x83   : > { %2592 = vmatmul.mubr.msk.bf16.gmra.mrb[4].mxu0 %vm480_vm3, %v3230_v40 }
  0x84   : > { %2510 = vmatmul.mubr.msk.bf16.gmra.mrb[12].mxu1 %vm480_vm3, %v3334_v35  ;;  %2595 = vmatprep.mubr.msk.bf16.mxu0 %vm480_vm3, %v3255_v10 }
  0x85   : > { %2515 = vmatprep.mubr.msk.bf16.mxu1 %vm480_vm3, %v3332_v9 }
  0x8b   : > { %2596 = vmatmul.mubr.msk.bf16.gmra.mrb[8].mxu0 %vm480_vm3, %v3292_v55 }
  0x8c   : > { %2516 = vmatmul.mubr.msk.bf16.vlgmr.msra.gmra.mrb[0].mxu1 %vm480_vm3, %v3343_v47  ;;  %2599 = vmatprep.mubr.msk.bf16.mxu0 %vm480_vm3, %v2227_v19  ;;  %v3530_v47 = vld [vmem:[%s3677_s3] ss:$0 sm:$0xff] }
  0x8d   : > { %2622 = vmatpush3.bf16.msra.mxu1 %v2987_v3  ;;  %2519 = vmatprep.mubr.msk.bf16.mxu1 %vm480_vm3, %v3376_v24 }
  0x93   : > { %2600 = vmatmul.mubr.msk.bf16.gmra.mrb[12].mxu0 %vm480_vm3, %v2258_v28 }
  0x94   : > { %2520 = vmatmul.mubr.msk.bf16.gmra.mrb[4].mxu1 %vm480_vm3, %v3380_v26  ;;  %2605 = vmatprep.mubr.msk.bf16.mxu0 %vm480_vm3, %v3214_v11 }
  0x95   : > { %2523 = vmatprep.mubr.msk.bf16.mxu1 %vm480_vm3, %v3406_v62 }
  0x9b   : > { %2606 = vmatmul.mubr.msk.bf16.vlgmr.msra.gmra.mrb[0].mxu0 %vm480_vm3, %v3252_v60 }
  0x9c   : > { %2524 = vmatmul.mubr.msk.bf16.gmra.mrb[8].mxu1 %vm480_vm3, %v3412_v4  ;;  %2609 = vmatprep.mubr.msk.bf16.mxu0 %vm480_vm3, %v3284_v44 }
  0x9d   : > { %2527 = vmatprep.mubr.msk.bf16.mxu1 %vm480_vm3, %v2182_v51 }
  0xa3   : > { %2610 = vmatmul.mubr.msk.bf16.gmra.mrb[4].mxu0 %vm480_vm3, %v3294_v59 }
  0xa4   : > { %2528 = vmatmul.mubr.msk.bf16.gmra.mrb[12].mxu1 %vm480_vm3, %v2217_v57  ;;  %2613 = vmatprep.mubr.msk.bf16.mxu0 %vm480_vm3, %v3323_v27 }
  0xa5   : > { %2541 = vmatprep.mubr.msk.bf16.mxu1 %vm480_vm3, %v3230_v40 }
  0xab   : > { %2614 = vmatmul.mubr.msk.bf16.gmra.mrb[8].mxu0 %vm480_vm3, %v3334_v35 }
  0xac   : > { %2542 = vmatmul.mubr.msk.bf16.vlgmr.msra.gmra.mrb[8].mxu1 %vm480_vm3, %v3255_v10  ;;  %2617 = vmatprep.mubr.msk.bf16.mxu0 %vm480_vm3, %v3369_v12 }
  0xad   : > { %2545 = vmatprep.mubr.msk.bf16.mxu1 %vm480_vm3, %v3292_v55  ;;  %v3525_v55 = vld [vmem:[%s3676_s2] ss:$0 sm:$0xff] }
  0xb3   : > { %2618 = vmatmul.mubr.msk.bf16.gmra.mrb[12].mxu0 %vm480_vm3, %v2269_v61 }
  0xb4   : > { %2546 = vmatmul.mubr.msk.bf16.gmra.mrb[12].mxu1 %vm480_vm3, %v2227_v19 }
 0x15f   : > { %v2517_v3 = vpop.f32.mrb[0].mxu1 }
 0x160   : > { %v1050_v33 = vpop.f32.mrb[1].mxu1 }
 0x161   : > { %v2518_v11 = vpop.f32.mrb[2].mxu1 }
 0x162   : > { %v1053_v40 = vpop.f32.mrb[3].mxu1 }
 0x167   : > { %v2521_v60 = vpop.f32.mrb[4].mxu1 }
 0x168   : > { %v1066_v44 = vpop.f32.mrb[5].mxu1 }
 0x169   : > { %v2522_v10 = vpop.f32.mrb[6].mxu1 }
 0x16a   : > { %v1069_v59 = vpop.f32.mrb[7].mxu1 }
 0x16e   : > { %v2607_v27 = vpop.f32.mrb[0].mxu0 }
 0x16f   : > { %v2623_v9 = vadd.f32 %v2607_v27, %v2517_v3  ;;  %v1736_v35 = vpop.f32.mrb[1].mxu0 }
 0x170   : > { %v2624_v6 = vadd.f32 %v1736_v35, %v1050_v33  ;;  %v2608_v17 = vpop.f32.mrb[2].mxu0 }
 0x171   : > { %v1824_v22 = vmul.f32 %v2623_v9, %v3525_v55  ;;  %v2625_v50 = vadd.f32 %v2608_v17, %v2518_v11  ;;  %v1739_v63 = vpop.f32.mrb[3].mxu0 }
 0x172   : > { %v1822_v54 = vmul.f32 %v2624_v6, %v3525_v55  ;;  %v2626_v12 = vadd.f32 %v1739_v63, %v1053_v40 }
 0x173   : > { %v3535_v45 = vadd.f32 %v3530_v47, %v1824_v22  ;;  %v1825_v15 = vmul.f32 %v2625_v50, %v3525_v55 }
 0x174   : > { %v3539_v39 = vadd.f32 %v3530_v47, %v1822_v54  ;;  %v1823_v2 = vmul.f32 %v2626_v12, %v3525_v55 }
 0x175   : > { %v2282_v21 = vmul.f32 -1.442695, %v3535_v45  ;;  %v3544_v38 = vadd.f32 %v3530_v47, %v1825_v15 }
 0x176   : > { %v2280_v24 = vmul.f32 -1.442695, %v3539_v39  ;;  %v3548_v26 = vadd.f32 %v3530_v47, %v1823_v2  ;;  %v2611_v18 = vpop.f32.mrb[4].mxu0 }
 0x177   : > { %2812 = vpow2.f32 %v2282_v21  ;;  %v2283_v30 = vmul.f32 -1.442695, %v3544_v38  ;;  %v2627_v31 = vadd.f32 %v2611_v18, %v2521_v60  ;;  %v1752_v7 = vpop.f32.mrb[5].mxu0 }
 0x178   : > { %2814 = vpow2.f32 %v2280_v24  ;;  %v2281_v41 = vmul.f32 -1.442695, %v3548_v26  ;;  %v2628_v8 = vadd.f32 %v1752_v7, %v1066_v44  ;;  %v2612_v56 = vpop.f32.mrb[6].mxu0 }
 0x179   : > { %2816 = vpow2.f32 %v2283_v30  ;;  %v1828_v61 = vmul.f32 %v2627_v31, %v3525_v55  ;;  %v2629_v13 = vadd.f32 %v2612_v56, %v2522_v10  ;;  %v1755_v28 = vpop.f32.mrb[7].mxu0 }
 0x17a   : > { %2818 = vpow2.f32 %v2281_v41  ;;  %v1826_v62 = vmul.f32 %v2628_v8, %v3525_v55  ;;  %v2630_v20 = vadd.f32 %v1755_v28, %v1069_v59 }
 0x17b   : > { %v3555_v4 = vadd.f32 %v3530_v47, %v1828_v61  ;;  %v1829_v14 = vmul.f32 %v2629_v13, %v3525_v55 }
 0x17c   : > { %v3559_v51 = vadd.f32 %v3530_v47, %v1826_v62  ;;  %v1827_v57 = vmul.f32 %v2630_v20, %v3525_v55 }
 0x17d   : > { %v2286_v36 = vmul.f32 -1.442695, %v3555_v4  ;;  %v3564_v42 = vadd.f32 %v3530_v47, %v1829_v14 }
 0x17e   : > { %v2284_v46 = vmul.f32 -1.442695, %v3559_v51  ;;  %v3569_v0 = vadd.f32 %v3530_v47, %v1827_v57  ;;  %v2615_v1 = vpop.f32.mrb[8].mxu0 }
 0x17f   : > { %2820 = vpow2.f32 %v2286_v36  ;;  %v2287_v29 = vmul.f32 -1.442695, %v3564_v42  ;;  %v2543_v58 = vpop.f32.mrb[8].mxu1  ;;  %v1768_v34 = vpop.f32.mrb[9].mxu0 }
 0x180   : > { %2822 = vpow2.f32 %v2284_v46  ;;  %v2285_v23 = vmul.f32 -1.442695, %v3569_v0  ;;  %v2631_v16 = vadd.f32 %v2615_v1, %v2543_v58  ;;  %v1230_v48 = vpop.f32.mrb[9].mxu1  ;;  %v2616_v52 = vpop.f32.mrb[10].mxu0 }
 0x181   : > { %v2813_v53 = vpop.eup %2812  ;;  %2824 = vpow2.f32 %v2287_v29  ;;  %v2632_v5 = vadd.f32 %v1768_v34, %v1230_v48  ;;  %v2544_v32 = vpop.f32.mrb[10].mxu1 }
 0x182   : > { %v1771_v37 = vpop.f32.mrb[11].mxu0  ;;  %v2815_v49 = vpop.eup %2814  ;;  %v1911_v25 = vadd.f32 1.0, %v2813_v53  ;;  %2826 = vpow2.f32 %v2285_v23  ;;  %v1832_v43 = vmul.f32 %v2631_v16, %v3525_v55  ;;  %v2633_v19 = vadd.f32 %v2616_v52, %v2544_v32 }
 0x183   : > { %v1233_v3 = vpop.f32.mrb[11].mxu1  ;;  %v2817_v33 = vpop.eup %2816  ;;  %v1909_v11 = vadd.f32 1.0, %v2815_v49  ;;  %v1830_v40 = vmul.f32 %v2632_v5, %v3525_v55 }
 0x184   : > { %v2634_v60 = vadd.f32 %v1771_v37, %v1233_v3  ;;  %v2819_v44 = vpop.eup %2818  ;;  %2828 = vrcp.f32 %v1911_v25  ;;  %v1912_v10 = vadd.f32 1.0, %v2817_v33  ;;  %v3582_v59 = vadd.f32 %v3530_v47, %v1832_v43 }
 0x185   : > { %v1833_v27 = vmul.f32 %v2633_v19, %v3525_v55  ;;  %2830 = vrcp.f32 %v1909_v11  ;;  %v1910_v9 = vadd.f32 1.0, %v2819_v44  ;;  %v3592_v35 = vadd.f32 %v3530_v47, %v1830_v40 }
 0x186   : > { %v1831_v6 = vmul.f32 %v2634_v60, %v3525_v55  ;;  %2832 = vrcp.f32 %v1912_v10  ;;  %v2290_v17 = vmul.f32 -1.442695, %v3582_v59  ;;  %v2619_v50 = vpop.f32.mrb[12].mxu0 }
 0x187   : > { %v3597_v22 = vadd.f32 %v3530_v47, %v1833_v27  ;;  %2834 = vrcp.f32 %v1910_v9  ;;  %v2288_v63 = vmul.f32 -1.442695, %v3592_v35  ;;  %v2547_v12 = vpop.f32.mrb[12].mxu1  ;;  %v1784_v15 = vpop.f32.mrb[13].mxu0 }
 0x188   : > { %v3601_v54 = vadd.f32 %v3530_v47, %v1831_v6  ;;  %2836 = vpow2.f32 %v2290_v17  ;;  %v2635_v21 = vadd.f32 %v2619_v50, %v2547_v12  ;;  %v1246_v24 = vpop.f32.mrb[13].mxu1  ;;  %v2620_v18 = vpop.f32.mrb[14].mxu0 }
 0x189   : > { %v2291_v2 = vmul.f32 -1.442695, %v3597_v22  ;;  %v2821_v30 = vpop.eup %2820  ;;  %2838 = vpow2.f32 %v2288_v63  ;;  %v2636_v7 = vadd.f32 %v1784_v15, %v1246_v24  ;;  %v2548_v41 = vpop.f32.mrb[14].mxu1 }
 0x18a   : > { %v2289_v31 = vmul.f32 -1.442695, %v3601_v54  ;;  %v1787_v8 = vpop.f32.mrb[15].mxu0  ;;  %v2823_v56 = vpop.eup %2822  ;;  %v1915_v61 = vadd.f32 1.0, %v2821_v30  ;;  %v1836_v13 = vmul.f32 %v2635_v21, %v3525_v55  ;;  %v2637_v28 = vadd.f32 %v2620_v18, %v2548_v41 }
 0x18b   : > { %2840 = vpow2.f32 %v2291_v2  ;;  %v1249_v62 = vpop.f32.mrb[15].mxu1  ;;  %v2825_v20 = vpop.eup %2824  ;;  %v1913_v14 = vadd.f32 1.0, %v2823_v56  ;;  %v1834_v57 = vmul.f32 %v2636_v7, %v3525_v55 }
 0x18c   : > { %2842 = vpow2.f32 %v2289_v31  ;;  %v2638_v36 = vadd.f32 %v1787_v8, %v1249_v62  ;;  %v2827_v46 = vpop.eup %2826  ;;  %v1916_v1 = vadd.f32 1.0, %v2825_v20  ;;  %v3612_v29 = vadd.f32 %v3530_v47, %v1836_v13 }
 0x18d   : > { %2844 = vrcp.f32 %v1915_v61  ;;  %v1837_v58 = vmul.f32 %v2637_v28, %v3525_v55  ;;  %v1914_v34 = vadd.f32 1.0, %v2827_v46  ;;  %v3616_v23 = vadd.f32 %v3530_v47, %v1834_v57 }
 0x18e   : > { %2846 = vrcp.f32 %v1913_v14  ;;  %v1835_v16 = vmul.f32 %v2638_v36, %v3525_v55  ;;  %v2829_v48 = vpop.eup %2828  ;;  %v2294_v52 = vmul.f32 -1.442695, %v3612_v29 }
 0x18f   : > { %2848 = vrcp.f32 %v1916_v1  ;;  %v3621_v53 = vadd.f32 %v3530_v47, %v1837_v58  ;;  %v2831_v5 = vpop.eup %2830  ;;  %v2292_v32 = vmul.f32 -1.442695, %v3616_v23  ;;  %v1959_v43 = vmul.f32 %v2829_v48, %v3535_v45 }
 0x190   : > { %2850 = vrcp.f32 %v1914_v34  ;;  %v3626_v37 = vadd.f32 %v3530_v47, %v1835_v16  ;;  %v2833_v49 = vpop.eup %2832  ;;  %v1957_v11 = vmul.f32 %v2831_v5, %v3539_v39 }
 0x191   : > { %2852 = vpow2.f32 %v2294_v52  ;;  %v2295_v25 = vmul.f32 -1.442695, %v3621_v53  ;;  %v2835_v55 = vpop.eup %2834  ;;  %v1960_v19 = vmul.f32 %v2833_v49, %v3544_v38 }
 0x192   : > { %2854 = vpow2.f32 %v2292_v32  ;;  %v2293_v3 = vmul.f32 -1.442695, %v3626_v37  ;;  %v2837_v33 = vpop.eup %2836  ;;  %v1958_v47 = vmul.f32 %v2835_v55, %v3548_v26 }
 0x193   : > { %2856 = vpow2.f32 %v2295_v25  ;;  %v2839_v40 = vpop.eup %2838  ;;  %v2339_v45 = vpack.c.bf16 %v1960_v19, %v1959_v43  ;;  %v1919_v60 = vadd.f32 1.0, %v2837_v33 }
 0x194   : > { %2858 = vpow2.f32 %v2293_v3  ;;  %v2334_v44 = vpack.c.bf16 %v1958_v47, %v1957_v11  ;;  %v1917_v10 = vadd.f32 1.0, %v2839_v40 }
 0x195   : > { %v2841_v38 = vpop.eup %2840  ;;  %2371 = vst [vmem:[%s3636_s11 + $0x8] sm:$0xff] %v2339_v45   ;;  %2860 = vrcp.f32 %v1919_v60 }
 0x196   : > { %v2843_v27 = vpop.eup %2842  ;;  %v1920_v39 = vadd.f32 1.0, %v2841_v38  ;;  %2335 = vst [vmem:[%s3636_s11] sm:$0xff] %v2334_v44   ;;  %2862 = vrcp.f32 %v1917_v10 }
 0x197   : > { %v2845_v9 = vpop.eup %2844  ;;  %v1918_v6 = vadd.f32 1.0, %v2843_v27 }
 0x198   : > { %v2847_v17 = vpop.eup %2846  ;;  %2864 = vrcp.f32 %v1920_v39  ;;  %v1963_v63 = vmul.f32 %v2845_v9, %v3555_v4 }
 0x199   : > { %v2849_v26 = vpop.eup %2848  ;;  %2866 = vrcp.f32 %v1918_v6  ;;  %v1961_v2 = vmul.f32 %v2847_v17, %v3559_v51 }
 0x19a   : > { %v2851_v50 = vpop.eup %2850  ;;  %v1964_v12 = vmul.f32 %v2849_v26, %v3564_v42 }
 0x19b   : > { %v2853_v15 = vpop.eup %2852  ;;  %v1962_v21 = vmul.f32 %v2851_v50, %v3569_v0 }
 0x19c   : > { %v2855_v24 = vpop.eup %2854  ;;  %v2349_v18 = vpack.c.bf16 %v1964_v12, %v1963_v63  ;;  %v1923_v30 = vadd.f32 1.0, %v2853_v15 }
 0x19d   : > { %v2857_v31 = vpop.eup %2856  ;;  %v2344_v7 = vpack.c.bf16 %v1962_v21, %v1961_v2  ;;  %v1921_v41 = vadd.f32 1.0, %v2855_v24 }
 0x19e   : > { %v2859_v8 = vpop.eup %2858  ;;  %2373 = vst [vmem:[%s3636_s11 + $0x18] sm:$0xff] %v2349_v18   ;;  %2868 = vrcp.f32 %v1923_v30  ;;  %v1924_v56 = vadd.f32 1.0, %v2857_v31 }
 0x19f   : > { %2372 = vst [vmem:[%s3636_s11 + $0x10] sm:$0xff] %v2344_v7   ;;  %2870 = vrcp.f32 %v1921_v41  ;;  %v1922_v4 = vadd.f32 1.0, %v2859_v8  ;;  %v2861_v42 = vpop.eup %2860 }
 0x1a0   : > { %2872 = vrcp.f32 %v1924_v56  ;;  %v2863_v51 = vpop.eup %2862  ;;  %v1967_v13 = vmul.f32 %v2861_v42, %v3582_v59 }
 0x1a1   : > { %2874 = vrcp.f32 %v1922_v4  ;;  %v1965_v62 = vmul.f32 %v2863_v51, %v3592_v35 }
 0x1a2   : > { %v2865_v0 = vpop.eup %2864 }
 0x1a3   : > { %v2867_v61 = vpop.eup %2866  ;;  %v1968_v28 = vmul.f32 %v2865_v0, %v3597_v22 }
 0x1a4   : > { %v1966_v20 = vmul.f32 %v2867_v61, %v3601_v54 }
 0x1a5   : > { %v2359_v14 = vpack.c.bf16 %v1968_v28, %v1967_v13 }
 0x1a6   : > { %v2354_v57 = vpack.c.bf16 %v1966_v20, %v1965_v62 }
 0x1a7   : > { %2375 = vst [vmem:[%s3636_s11 + $0x28] sm:$0xff] %v2359_v14  }
 0x1a8   : > { %v2869_v36 = vpop.eup %2868  ;;  %2374 = vst [vmem:[%s3636_s11 + $0x20] sm:$0xff] %v2354_v57  }
 0x1a9   : > { %v2871_v46 = vpop.eup %2870  ;;  %v1971_v34 = vmul.f32 %v2869_v36, %v3612_v29 }
 0x1aa   : > { %v2873_v1 = vpop.eup %2872  ;;  %v1969_v22 = vmul.f32 %v2871_v46, %v3616_v23 }
 0x1ab   : > { %v2875_v58 = vpop.eup %2874  ;;  %v1972_v59 = vmul.f32 %v2873_v1, %v3621_v53 }
 0x1ac   : > { %v1970_v35 = vmul.f32 %v2875_v58, %v3626_v37 }
 0x1ad   : > { %v2369_v16 = vpack.c.bf16 %v1972_v59, %v1971_v34 }
 0x1ae   : > { %v2364_v48 = vpack.c.bf16 %v1970_v35, %v1969_v22 }
 0x1af   : > { %2377 = vst [vmem:[%s3636_s11 + $0x38] sm:$0xff] %v2369_v16  }
 0x1b0   : > { %2376 = vst [vmem:[%s3636_s11 + $0x30] sm:$0xff] %v2364_v48  }
 0x1b1 PF: > { %s14_s19 = sadd.s32 1, %s2914_s19   ;;  %s3684_s15 = smov %s2906_s17 }
 0x1b2   : > { %p11_p7 = scmp.ge.s32.totalorder %s14_s19, 6   ;;  %s3685_s16 = smov %s2910_s18 }
 0x1b3   : > { %s3686_s17 = smov %s3689_s20  ;;  %s3687_s18 = smov %s3693_s21 }
 0x1b4   :  { %13 = sbr.rel (!%p11_p7) target bundleno = 3 (0x3), region = 75 }

// kernel: rfca_forward.4
= control target key start
LH: loop header
LB: loop body
LE: loop exit
PB: predicated region body
PF: predicated region fallthrough
CT: control target
= control target key end

     0   :  { %s2890_s21 = smov 0   ;;  %s2892_s22 = smov 0   ;;  %s3550_s0 = inlined_call_operand.vmem [shape: bf16[2,17,17,128], index: 0, kind: input, shape index: {}]   ;;  %s3551_s1 = inlined_call_operand.vmem [shape: bf16[2,4,128,128], index: 1, kind: input, shape index: {}]   ;;  %s3552_s2 = inlined_call_operand.vmem [shape: f32[1,128], index: 2, kind: input, shape index: {}]   ;;  %s3553_s3 = inlined_call_operand.vmem [shape: f32[1,128], index: 3, kind: input, shape index: {}]   ;;  %s3554_s4 = inlined_call_operand.vmem [shape: bf16[2,16,16,128], index: 4, kind: output, shape index: {0}]   ;;  %s3555_s5 = inlined_call_operand.vmem [shape: f32[2,16,128], index: 5, kind: output, shape index: {1}]   ;;  %s3556_s6 = inlined_call_operand.vmem [shape: f32[2,16,128], index: 6, kind: output, shape index: {2}]  }
   0x1   :  { %s2894_s23 = smov 0   ;;  %s2896_s24 = smov 0  }
   0x2   :  { %s2898_s25 = smov 0  }
   0x3 LB: > { %s26_s26 = sadd.s32 1, %s2844_s23  ;;  %s29_s27 = sadd.s32 1, %s2848_s24  ;;  %s2852_s25 = sphi %s2898_s25, %s17_s25   ;;  %s2848_s24 = sphi %s2896_s24, %s3569_s24   ;;  %s2844_s23 = sphi %s2894_s23, %s3568_s23   ;;  %s2840_s22 = sphi %s2892_s22, %s3567_s22   ;;  %s2836_s21 = sphi %s2890_s21, %s3566_s21  }
   0x4   : > { %p27_p0 = scmp.ge.s32.totalorder %s26_s26, 2  ;;  %p2164_p1 = scmp.ge.s32.totalorder %s2852_s25, 1 }
   0x5   : > { %p243_p2 = scmp.lt.s32.totalorder %s2852_s25, 5 }
   0x6   : > { %s3571_s26 = smov (%p27_p0, %s26_s26), 0  ;;  %s3573_s27 = smov (!%p27_p0, %s29_s27), %s2848_s24 }
   0x7   : > { %p244_p3 = pnand %p2164_p1, %p243_p2  ;;  %p31_p4 = scmp.ge.s32.totalorder %s3573_s27, 2 }
   0x9   : > { %s3575_s27 = smov (%p31_p4, %s3573_s27), 0  ;;  %247 = sbr.rel (%p244_p3) target bundleno = 412 (0x19c), region = 36 }
  0x10   : > { %p296_p5 = scmp.lt.s32.totalorder %s2840_s22, 1  ;;  %s2356_s13 = smul.u32 96, %s2836_s21  ;;  %vm375_vm0 = vsmask.f32 3328  ;;  %vm376_vm1 = vsmask.f32 7440 }
  0x11   : > { %vm2981_vm2 = vmor %vm375_vm0, %vm376_vm1  ;;  %vm1924_vm3 = vcmask 1041409   ;;  %vm1926_vm4 = vcmask 1042434   ;;  %vm1928_vm5 = vcmask 1043459   ;;  %p319_p7 = scmp.lt.s32.totalorder %s2836_s21, 1  ;;  %vm1930_vm6 = vcmask 1044484   ;;  %p2351_p8 = scmp.ne.s32.totalorder %s2836_s21, 0 }
  0x12   : > { %s3577_s22 = smov (!%p296_p5, %s2840_s22), 1  ;;  %vm1932_vm7 = vcmask 1045509   ;;  %vm1934_vm8 = vcmask 1046534   ;;  %vm1936_vm9 = vcmask 1047559  }
  0x13   : > { %s2354_s28 = sshll.u32 %s3577_s22, 8  ;;  %s2355_s29 = sshll.u32 %s3577_s22, 4 }
  0x14   : > { %s2929_s8 = scalar_lea.vmem %s3551_s1, %s2354_s28  ;;  %s2934_s11 = scalar_lea.vmem %s3556_s6, %s2355_s29 }
  0x15   : > { %v2702_v0 = vld [vmem:[%s2929_s8 + $0x40] sm:$0xff]   ;;  %v2704_v2 = vld [vmem:[%s2929_s8 + $0x48] sm:$0xff]   ;;  %v2706_v4 = vld [vmem:[%s2929_s8 + $0x50] sm:$0xff]   ;;  %s2660_s12 = smul.u32 204, %s3577_s22  ;;  %s2168_s29 = sshll.u32 %s2836_s21, 3 }
  0x16   : > { %v2703_v1 = vld [vmem:[%s2929_s8 + $0x80] sm:$0xff]   ;;  %2484 = vmatprep.subr.bf16.mxu1 %v2702_v0  ;;  %v2705_v3 = vld [vmem:[%s2929_s8 + $0x88] sm:$0xff]   ;;  %v2707_v5 = vld [vmem:[%s2929_s8 + $0x90] sm:$0xff]   ;;  %p3365_p6 = scmp.lt.s32.totalorder %s2168_s29, 15 }
  0x17   : > { %2548 = vmatprep.subr.bf16.mxu0 %v2703_v1  ;;  %2485 = vmatpush3.bf16.msra.mxu1 %v2702_v0  ;;  %v2708_v6 = vld [vmem:[%s2929_s8 + $0x58] sm:$0xff]   ;;  %s300_s16 = scalar_lea.vmem %s3550_s0, %s2660_s12  ;;  %v2710_v8 = vld [vmem:[%s2929_s8 + $0x60] sm:$0xff]   ;;  %v2712_v10 = vld [vmem:[%s2929_s8 + $0x68] sm:$0xff]  }
  0x18   : > { %2549 = vmatpush3.bf16.msra.mxu0 %v2703_v1  ;;  %2486 = vmatprep.subr.bf16.mxu1 %v2704_v2  ;;  %v2709_v7 = vld [vmem:[%s2929_s8 + $0x98] sm:$0xff]   ;;  %v2711_v9 = vld [vmem:[%s2929_s8 + $0xa0] sm:$0xff]   ;;  %s2951_s17 = scalar_lea.vmem %s300_s16, %s2356_s13  ;;  %v2713_v11 = vld [vmem:[%s2929_s8 + $0xa8] sm:$0xff]   ;;  %s3579_s29 = smov (!%p3365_p6, %s2168_s29), 15 }
  0x19   : > { %2550 = vmatprep.subr.bf16.mxu0 %v2705_v3  ;;  %v2956_v12 = vld [vmem:[%s2951_s17] sm:$0xf]  ;;  %v2959_v13 = vld [vmem:[%s2951_s17 + $0x4] sm:$0xf]  ;;  %v337_v14 = vld [vmem:[%s2951_s17 + $0x8] sm:$0x1] }
  0x1a   : > { %v379_v15 = vshrl.u32 %v2956_v12, 16  ;;  %v382_v16 = vshll.u32 %v2956_v12, 16  ;;  %v388_v17 = vshll.u32 %v2959_v13, 16  ;;  %v392_v18 = vshrl.u32 %v2959_v13, 16  ;;  %v2229_v19 = vld [vmem:[%s2951_s17 + $0xc] sm:$0xf] }
  0x1b   : > { %2487 = vmatpush3.bf16.msra.mxu1 %v2704_v2  ;;  %v398_v20 = vshll.u32 %v337_v14, 16  ;;  %v2230_v21 = vld [vmem:[%s2951_s17 + $0x10] sm:$0xf]  ;;  %v1212_v22 = vshrl.u32 %v2229_v19, 16  ;;  %v1215_v23 = vshll.u32 %v2229_v19, 16  ;;  %v2716_v39 = vld [vmem:[%s2929_s8 + $0x78] sm:$0xff]  }
  0x1c   : > { %2551 = vmatpush3.bf16.msra.mxu0 %v2705_v3  ;;  %2488 = vmatprep.subr.bf16.mxu1 %v2706_v4  ;;  %v381_v24 = vrot.slane %v379_v15, 4  ;;  %v384_v25 = vrot.slane %v382_v16, 5  ;;  %v390_v26 = vrot.slane %v388_v17, 5  ;;  %v394_v27 = vrot.slane %v392_v18, 4  ;;  %v2969_v28 = vld [vmem:[%s2951_s17 + $0xc] sm:$0xf] }
  0x1d   : > { %2552 = vmatprep.subr.bf16.mxu0 %v2707_v5  ;;  %v2714_v29 = vld [vmem:[%s2929_s8 + $0x70] sm:$0xff]   ;;  %v400_v30 = vrot.slane %v398_v20, 5  ;;  %v2269_v31 = vcombine.low %v2229_v19, %v2230_v21  ;;  %v2972_v32 = vrot.slane %v1212_v22, 4  ;;  %v1221_v37 = vshll.u32 %v2230_v21, 16  ;;  %v2717_v45 = vld [vmem:[%s2929_s8 + $0xb8] sm:$0xff]   ;;  %v3006_v63 = vld [vmem:[%s2929_s8] sm:$0xff]  }
  0x1e   : > { %v2975_v33 = vld [vmem:[%s2951_s17 + $0x10] sm:$0xf]  ;;  %v385_v35 = vor.u32 %v384_v25, %v381_v24  ;;  %v395_v36 = vor.u32 %v394_v27, %v390_v26  ;;  %v1225_v38 = vshrl.u32 %v2230_v21, 16  ;;  %v2985_v41 = vrot.slane %v1215_v23, 5  ;;  %v340_v50 = vld [vmem:[%s2951_s17 + $0x14] sm:$0x1] }
  0x1f   : > { %2489 = vmatpush3.bf16.msra.mxu1 %v2706_v4  ;;  %v2715_v34 = vld [vmem:[%s2929_s8 + $0xb0] sm:$0xff]   ;;  %2564 = vmatprep.mubr.bf16.mxu0 %v2269_v31  ;;  %v403_v42 = vshrl.u32 %v2969_v28, 16  ;;  %v406_v43 = vshll.u32 %v2969_v28, 16  ;;  %v412_v44 = vshll.u32 %v2975_v33, 16  ;;  %v2991_v48 = vrot.slane %v1221_v37, 5  ;;  %v2721_v4 = vld [vmem:[%s2929_s8 + $0xc0] sm:$0xff]  }
  0x20   : > { %2553 = vmatpush3.bf16.msra.mxu0 %v2707_v5  ;;  %2490 = vmatprep.subr.bf16.mxu1 %v2708_v6  ;;  %v386_v46 = vrot.slane %v385_v35, 4  ;;  %v396_v47 = vrot.slane %v395_v36, 4  ;;  %v2993_v49 = vrot.slane %v1225_v38, 4  ;;  %v2232_v53 = vld [vmem:[%s2951_s17 + $0x18] sm:$0xf]  ;;  %v416_v58 = vshrl.u32 %v2975_v33, 16 }
  0x21   : > { %2554 = vmatprep.subr.bf16.mxu0 %v2709_v7  ;;  %v405_v51 = vrot.slane %v403_v42, 4  ;;  %v408_v52 = vrot.slane %v406_v43, 5  ;;  %v2233_v54 = vld [vmem:[%s2951_s17 + $0x1c] sm:$0xf]  ;;  %v414_v57 = vrot.slane %v412_v44, 5  ;;  %v1218_v60 = vor.u32 %v2985_v41, %v2972_v32  ;;  %v2723_v36 = vld [vmem:[%s2929_s8 + $0xc8] sm:$0xff]  }
  0x22   : > { %v391_v55 = vsel %vm2981_vm2, %v386_v46, %v390_v26  ;;  %v401_v56 = vsel %vm2981_vm2, %v396_v47, %v400_v30  ;;  %v422_v62 = vshll.u32 %v340_v50, 16  ;;  %v1228_v0 = vor.u32 %v2993_v49, %v2991_v48  ;;  %v3012_v15 = vld [vmem:[%s2951_s17 + $0x18] sm:$0xf]  ;;  %v3015_v16 = vld [vmem:[%s2951_s17 + $0x1c] sm:$0xf]  ;;  %v2722_v44 = vld [vmem:[%s2929_s8 + $0x8] sm:$0xff]  }
  0x23   : > { %2491 = vmatpush3.bf16.msra.mxu1 %v2708_v6  ;;  %v2195_v59 = vcombine.low %v391_v55, %v401_v56  ;;  %v409_v61 = vor.u32 %v408_v52, %v405_v51  ;;  %v418_v1 = vrot.slane %v416_v58, 4  ;;  %v1236_v2 = vshrl.u32 %v2232_v53, 16  ;;  %v343_v20 = vld [vmem:[%s2951_s17 + $0x20] sm:$0x1]  ;;  %v3026_v26 = vld [vmem:[%s2951_s17 + $0x24] sm:$0xf] }
  0x24   : > { %2555 = vmatpush3.bf16.msra.mxu0 %v2709_v7  ;;  %2492 = vmatprep.subr.bf16.mxu1 %v2710_v8  ;;  %v1239_v3 = vshll.u32 %v2232_v53, 16  ;;  %v424_v6 = vrot.slane %v422_v62, 5  ;;  %v1245_v7 = vshll.u32 %v2233_v54, 16  ;;  %v427_v21 = vshrl.u32 %v3012_v15, 16  ;;  %v2236_v32 = vld [vmem:[%s2951_s17 + $0x28] sm:$0xf] }
  0x25   : > { %2556 = vmatprep.subr.bf16.mxu0 %v2711_v9  ;;  %v410_v5 = vrot.slane %v409_v61, 4  ;;  %2500 = vmatprep.mubr.bf16.mxu1 %v2195_v59  ;;  %v430_v24 = vshll.u32 %v3012_v15, 16  ;;  %v436_v25 = vshll.u32 %v3015_v16, 16  ;;  %v440_v30 = vshrl.u32 %v3015_v16, 16  ;;  %v3050_v51 = vld [vmem:[%s2951_s17 + $0x28] sm:$0xf] }
  0x26   : > { %v1241_v14 = vrot.slane %v1239_v3, 5  ;;  %v3019_v18 = vrot.slane %v1245_v7, 5  ;;  %v446_v31 = vshll.u32 %v343_v20, 16  ;;  %v3040_v41 = vrot.slane %v1228_v0, 4  ;;  %v2727_v52 = vld [vmem:[%s2929_s8 + $0xd0] sm:$0xff]   ;;  %s2169_s7 = sshll.u32 %s3579_s29, 1 }
  0x27   : > { %2493 = vmatpush3.bf16.msra.mxu1 %v2710_v8  ;;  %v1249_v8 = vshrl.u32 %v2233_v54, 16  ;;  %v415_v17 = vsel %vm2981_vm2, %v410_v5, %v414_v57  ;;  %v432_v37 = vrot.slane %v430_v24, 5  ;;  %v438_v38 = vrot.slane %v436_v25, 5  ;;  %v346_v55 = vld [vmem:[%s2951_s17 + $0x2c] sm:$0x1]  ;;  %s320_s15 = scalar_select %p319_p7, %s2836_s21, 1 }
  0x28   : > { %2557 = vmatpush3.bf16.msra.mxu0 %v2711_v9  ;;  %2494 = vmatprep.subr.bf16.mxu1 %v2712_v10  ;;  %v419_v9 = vor.u32 %v418_v1, %v414_v57  ;;  %v2271_v49 = vcombine.low %v3026_v26, %v2236_v32  ;;  %v1260_v50 = vshrl.u32 %v3026_v26, 16  ;;  %v2725_v57 = vld [vmem:[%s2929_s8 + $0x10] sm:$0xff]   ;;  %v1263_v59 = vshll.u32 %v3026_v26, 16  ;;  %s2172_s16 = sshll.u32 %s3577_s22, 1 }
  0x29   : > { %2558 = vmatprep.subr.bf16.mxu0 %v2713_v11  ;;  %v1251_v19 = vrot.slane %v1249_v8, 4  ;;  %v2238_v62 = vld [vmem:[%s2951_s17 + $0x30] sm:$0xf]  ;;  %v464_v7 = vshrl.u32 %v3050_v51, 16  ;;  %v2729_v8 = vld [vmem:[%s2929_s8 + $0xd8] sm:$0xff]  }
  0x2a   : > { %v420_v22 = vrot.slane %v419_v9, 4  ;;  %v3060_v1 = vrot.slane %v1260_v50, 4  ;;  %v2241_v50 = vld [vmem:[%s2951_s17 + $0x3c] sm:$0xf] }
  0x2b   : > { %2495 = vmatpush3.bf16.msra.mxu1 %v2712_v10  ;;  %v2270_v10 = vcombine.low %v2232_v53, %v2233_v54  ;;  %v1252_v27 = vor.u32 %v1251_v19, %v3019_v18  ;;  %v448_v54 = vrot.slane %v446_v31, 5  ;;  %v3081_v31 = vld [vmem:[%s2951_s17 + $0x30] sm:$0xf] }
  0x2c   : > { %2559 = vmatpush3.bf16.msra.mxu0 %v2713_v11  ;;  %2496 = vmatprep.subr.bf16.mxu1 %v2714_v29  ;;  %v1238_v11 = vrot.slane %v1236_v2, 4  ;;  %v425_v35 = vsel %vm2981_vm2, %v420_v22, %v424_v6  ;;  %v1273_v2 = vshrl.u32 %v2236_v32, 16  ;;  %v460_v6 = vshll.u32 %v3050_v51, 16 }
  0x2d   : > { %2560 = vmatprep.subr.bf16.mxu0 %v2715_v34  ;;  %v2196_v42 = vcombine.low %v415_v17, %v425_v35  ;;  %v3045_v46 = vrot.slane %v1252_v27, 4  ;;  %v2728_v17 = vld [vmem:[%s2929_s8 + $0x18] sm:$0xff]   ;;  %v466_v22 = vrot.slane %v464_v7, 4 }
  0x2e   : > { %v1242_v23 = vor.u32 %v1241_v14, %v1238_v11  ;;  %v1284_v14 = vshrl.u32 %v2238_v62, 16  ;;  %v3078_v25 = vrot.slane %v1273_v2, 4  ;;  %v2735_v2 = vld [vmem:[%s2929_s8 + $0xe8] sm:$0xff]  }
  0x2f   : > { %2497 = vmatpush3.bf16.msra.mxu1 %v2714_v29  ;;  %v429_v29 = vrot.slane %v427_v21, 4  ;;  %v462_v21 = vrot.slane %v460_v6, 5  ;;  %v3112_v6 = vld [vmem:[%s2951_s17 + $0x40] sm:$0xf] }
  0x30   : > { %2561 = vmatpush3.bf16.msra.mxu0 %v2715_v34  ;;  %2498 = vmatprep.subr.bf16.mxu1 %v2716_v39  ;;  %v3032_v34 = vrot.slane %v1218_v60, 4  ;;  %v3042_v43 = vrot.slane %v1242_v23, 4  ;;  %v1269_v60 = vshll.u32 %v2236_v32, 16  ;;  %v3074_v23 = vrot.slane %v1263_v59, 5  ;;  %v3084_v32 = vld [vmem:[%s2951_s17 + $0x34] sm:$0xf] }
  0x31   : > { %2562 = vmatprep.subr.bf16.mxu0 %v2717_v45  ;;  %v433_v47 = vor.u32 %v432_v37, %v429_v29  ;;  %v467_v29 = vor.u32 %v466_v22, %v462_v21  ;;  %v3086_v35 = vrot.slane %v1284_v14, 4  ;;  %v349_v37 = vld [vmem:[%s2951_s17 + $0x38] sm:$0x1]  ;;  %v1311_v22 = vshll.u32 %v2241_v50, 16 }
  0x32   : > { %v3076_v24 = vrot.slane %v1269_v60, 5 }
  0x33   : > { %2499 = vmatpush3.bf16.msra.mxu1 %v2716_v39  ;;  %v3038_v39 = vld [vmem:[%s2951_s17 + $0x24] sm:$0xf]  ;;  %v434_v58 = vrot.slane %v433_v47, 4 }
  0x34   : > { %2563 = vmatpush3.bf16.msra.mxu0 %v2717_v45  ;;  %2516 = vmatprep.subr.bf16.mxu1 %v3006_v63  ;;  %v442_v45 = vrot.slane %v440_v30, 4  ;;  %v451_v56 = vshrl.u32 %v3038_v39, 16  ;;  %v454_v61 = vshll.u32 %v3038_v39, 16  ;;  %v1287_v30 = vshll.u32 %v2238_v62, 16 }
  0x35   : > { %2580 = vmatprep.subr.bf16.mxu0 %v2721_v4 }
  0x36   : > { %2501 = vmatmul.mubr.bf16.vlgmr.msra.gmra.mrb[0].mxu1 %v2196_v42  ;;  %v443_v53 = vor.u32 %v442_v45, %v438_v38  ;;  %v453_v3 = vrot.slane %v451_v56, 4  ;;  %v456_v5 = vrot.slane %v454_v61, 5  ;;  %v478_v42 = vshll.u32 %v3081_v31, 16 }
  0x37   : > { %2565 = vmatmul.mubr.bf16.vlgmr.msra.gmra.mrb[0].mxu0 %v2270_v10  ;;  %2517 = vmatpush3.bf16.msra.mxu1 %v3006_v63  ;;  %v439_v63 = vsel %vm2981_vm2, %v434_v58, %v438_v38  ;;  %v470_v10 = vshll.u32 %v346_v55, 16  ;;  %v475_v38 = vshrl.u32 %v3081_v31, 16  ;;  %v468_v45 = vrot.slane %v467_v29, 4  ;;  %v2242_v58 = vld [vmem:[%s2951_s17 + $0x40] sm:$0xf] }
  0x38   : > { %2581 = vmatpush3.bf16.msra.mxu0 %v2721_v4  ;;  %2518 = vmatprep.subr.bf16.mxu1 %v2722_v44  ;;  %v444_v0 = vrot.slane %v443_v53, 4  ;;  %v3063_v4 = vld [vmem:[%s2951_s17 + $0x34] sm:$0xf]  ;;  %v457_v20 = vor.u32 %v456_v5, %v453_v3  ;;  %v488_v55 = vshrl.u32 %v3084_v32, 16  ;;  %v494_v56 = vshll.u32 %v349_v37, 16 }
  0x39   : > { %2582 = vmatprep.subr.bf16.mxu0 %v2723_v36  ;;  %2568 = vmatprep.mubr.bf16.mxu0 %v2271_v49  ;;  %v2272_v11 = vcombine.low %v2238_v62, %v3063_v4  ;;  %v472_v26 = vrot.slane %v470_v10, 5  ;;  %v1297_v47 = vshrl.u32 %v3063_v4, 16  ;;  %v484_v49 = vshll.u32 %v3084_v32, 16  ;;  %v3105_v62 = vld [vmem:[%s2951_s17 + $0x3c] sm:$0xf] }
  0x3a   : > { %v449_v9 = vsel %vm2981_vm2, %v444_v0, %v448_v54  ;;  %v458_v27 = vrot.slane %v457_v20, 4  ;;  %v477_v53 = vrot.slane %v475_v38, 4  ;;  %v480_v54 = vrot.slane %v478_v42, 5  ;;  %v2733_v0 = vld [vmem:[%s2929_s8 + $0xe0] sm:$0xff]   ;;  %v3123_v29 = vld [vmem:[%s2951_s17 + $0x4c] sm:$0xf] }
  0x3b   : > { %2519 = vmatpush3.bf16.msra.mxu1 %v2722_v44  ;;  %v2197_v19 = vcombine.low %v439_v63, %v449_v9  ;;  %v473_v59 = vsel %vm2981_vm2, %v468_v45, %v472_v26  ;;  %v3102_v60 = vrot.slane %v1287_v30, 5  ;;  %v2273_v61 = vcombine.low %v2241_v50, %v2242_v58  ;;  %v352_v10 = vld [vmem:[%s2951_s17 + $0x44] sm:$0x1] }
  0x3c   : > { %2583 = vmatpush3.bf16.msra.mxu0 %v2723_v36  ;;  %2520 = vmatprep.subr.bf16.mxu1 %v2725_v57  ;;  %v1293_v36 = vshll.u32 %v3063_v4, 16  ;;  %v463_v44 = vsel %vm2981_vm2, %v458_v27, %v462_v21  ;;  %v481_v63 = vor.u32 %v480_v54, %v477_v53  ;;  %v490_v5 = vrot.slane %v488_v55, 4  ;;  %v2734_v21 = vld [vmem:[%s2929_s8 + $0x28] sm:$0xff]  }
  0x3d   : > { %2584 = vmatprep.subr.bf16.mxu0 %v2727_v52  ;;  %2504 = vmatprep.mubr.bf16.mxu1 %v2197_v19  ;;  %v2198_v3 = vcombine.low %v463_v44, %v473_v59  ;;  %v496_v7 = vrot.slane %v494_v56, 5  ;;  %v1308_v9 = vshrl.u32 %v2241_v50, 16  ;;  %v499_v19 = vshrl.u32 %v3105_v62, 16  ;;  %v2737_v50 = vld [vmem:[%s2929_s8 + $0x30] sm:$0xff]  }
  0x3e   : > { %v3109_v4 = vrot.slane %v1293_v36, 5  ;;  %v502_v20 = vshll.u32 %v3105_v62, 16  ;;  %v1317_v26 = vshll.u32 %v2242_v58, 16  ;;  %v508_v27 = vshll.u32 %v3112_v6, 16  ;;  %v2739_v56 = vld [vmem:[%s2929_s8 + $0xf0] sm:$0xff]  }
  0x3f   : > { %2569 = vmatmul.mubr.bf16.gmra.mrb[4].mxu0 %v2272_v11  ;;  %2521 = vmatpush3.bf16.msra.mxu1 %v2725_v57  ;;  %v486_v57 = vrot.slane %v484_v49, 5  ;;  %v482_v11 = vrot.slane %v481_v63, 4  ;;  %v501_v37 = vrot.slane %v499_v19, 4  ;;  %v512_v44 = vshrl.u32 %v3112_v6, 16 }
  0x40   : > { %2585 = vmatpush3.bf16.msra.mxu0 %v2727_v52  ;;  %v2731_v52 = vld [vmem:[%s2929_s8 + $0x20] sm:$0xff]   ;;  %2522 = vmatprep.subr.bf16.mxu1 %v2728_v17  ;;  %v504_v38 = vrot.slane %v502_v20, 5  ;;  %v510_v42 = vrot.slane %v508_v27, 5  ;;  %v518_v45 = vshll.u32 %v352_v10, 16  ;;  %v3131_v53 = vrot.slane %v1297_v47, 4  ;;  %v2741_v10 = vld [vmem:[%s2929_s8 + $0xf8] sm:$0xff]  }
  0x41   : > { %2586 = vmatprep.subr.bf16.mxu0 %v2729_v8  ;;  %2572 = vmatprep.mubr.bf16.mxu0 %v2273_v61  ;;  %v491_v14 = vor.u32 %v490_v5, %v486_v57  ;;  %v487_v30 = vsel %vm2981_vm2, %v482_v11, %v486_v57  ;;  %v3136_v59 = vrot.slane %v1308_v9, 4  ;;  %v3138_v57 = vrot.slane %v1311_v22, 5  ;;  %v3149_v9 = vld [vmem:[%s2951_s17 + $0x4c] sm:$0xf]  ;;  %v355_v20 = vld [vmem:[%s2951_s17 + $0x50] sm:$0x1] }
  0x42   : > { %2505 = vmatmul.mubr.bf16.gmra.mrb[4].mxu1 %v2198_v3  ;;  %v505_v55 = vor.u32 %v504_v38, %v501_v37  ;;  %v514_v61 = vrot.slane %v512_v44, 4  ;;  %v520_v5 = vrot.slane %v518_v45, 5  ;;  %v532_v27 = vshll.u32 %v3149_v9, 16  ;;  %v2247_v37 = vld [vmem:[%s2951_s17 + $0x54] sm:$0xf] }
  0x43   : > { %2523 = vmatpush3.bf16.msra.mxu1 %v2728_v17  ;;  %v1321_v17 = vshrl.u32 %v2242_v58, 16  ;;  %v492_v36 = vrot.slane %v491_v14, 4  ;;  %v2248_v45 = vld [vmem:[%s2951_s17 + $0x58] sm:$0xf] }
  0x44   : > { %2587 = vmatpush3.bf16.msra.mxu0 %v2729_v8  ;;  %2524 = vmatprep.subr.bf16.mxu1 %v2731_v52  ;;  %v3118_v8 = vld [vmem:[%s2951_s17 + $0x48] sm:$0xf]  ;;  %v515_v63 = vor.u32 %v514_v61, %v510_v42  ;;  %v3176_v61 = vld [vmem:[%s2951_s17 + $0x54] sm:$0xf] }
  0x45   : > { %2588 = vmatprep.subr.bf16.mxu0 %v2733_v0  ;;  %v2274_v49 = vcombine.low %v3118_v8, %v3123_v29  ;;  %v497_v54 = vsel %vm2981_vm2, %v492_v36, %v496_v7  ;;  %v3142_v47 = vrot.slane %v1321_v17, 4  ;;  %v1332_v3 = vshrl.u32 %v3118_v8, 16  ;;  %v3146_v7 = vld [vmem:[%s2951_s17 + $0x48] sm:$0xf]  ;;  %3560 = vst [vmem:[#allocation3_spill] sm:$0xff] %v3176_v61 }
  0x46   : > { %v2199_v58 = vcombine.low %v487_v30, %v497_v54  ;;  %v1335_v19 = vshll.u32 %v3118_v8, 16  ;;  %v526_v22 = vshll.u32 %v3146_v7, 16  ;;  %v516_v17 = vrot.slane %v515_v63, 4 }
  0x47   : > { %2525 = vmatpush3.bf16.msra.mxu1 %v2731_v52  ;;  %2573 = vmatmul.mubr.bf16.gmra.mrb[8].mxu0 %v2274_v49  ;;  %v3140_v52 = vrot.slane %v1317_v26, 5  ;;  %v2740_v26 = vld [vmem:[%s2929_s8 + $0x38] sm:$0xff]   ;;  %v536_v30 = vshrl.u32 %v3149_v9, 16  ;;  %v542_v36 = vshll.u32 %v355_v20, 16  ;;  %v3168_v38 = vrot.slane %v1332_v3, 4  ;;  %s2170_s8 = sshll.u32 %s3577_s22, 5 }
  0x48   : > { %2589 = vmatpush3.bf16.msra.mxu0 %v2733_v0  ;;  %2526 = vmatprep.subr.bf16.mxu1 %v2734_v21  ;;  %v506_v0 = vrot.slane %v505_v55, 4  ;;  %v1341_v8 = vshll.u32 %v3123_v29, 16  ;;  %v528_v44 = vrot.slane %v526_v22, 5  ;;  %v521_v49 = vsel %vm2981_vm2, %v516_v17, %v520_v5  ;;  %v358_v17 = vld [vmem:[%s2951_s17 + $0x5c] sm:$0x1]  ;;  %s313_s9 = sadd.s32 %s2170_s8, %s2169_s7 }
  0x49   : > { %2590 = vmatprep.subr.bf16.mxu0 %v2735_v2  ;;  %2508 = vmatprep.mubr.bf16.mxu1 %v2199_v58  ;;  %v1345_v54 = vshrl.u32 %v3123_v29, 16  ;;  %v534_v55 = vrot.slane %v532_v27, 5  ;;  %v538_v58 = vrot.slane %v536_v30, 4  ;;  %v2275_v63 = vcombine.low %v2247_v37, %v2248_v45  ;;  %v3194_v29 = vld [vmem:[%s2951_s17 + $0x64] sm:$0xf]  ;;  %s2171_s10 = sshll.u32 %s313_s9, 2 }
  0x4a   : > { %v1356_v20 = vshrl.u32 %v2247_v37, 16  ;;  %v544_v22 = vrot.slane %v542_v36, 5  ;;  %v1359_v5 = vshll.u32 %v2247_v37, 16  ;;  %v3189_v37 = vld [vmem:[%s2951_s17 + $0x60] sm:$0xf]  ;;  %v566_v11 = vshll.u32 %v358_v17, 16  ;;  %s3429_s14 = scalar_lea.vmem %s3554_s4, %s2171_s10 }
  0x4b   : > { %2527 = vmatpush3.bf16.msra.mxu1 %v2734_v21  ;;  %v523_v21 = vshrl.u32 %v3146_v7, 16  ;;  %2576 = vmatprep.mubr.bf16.mxu0 %v2275_v63 }
  0x4c   : > { %2591 = vmatpush3.bf16.msra.mxu0 %v2735_v2  ;;  %v511_v2 = vsel %vm2981_vm2, %v506_v0, %v510_v42  ;;  %2528 = vmatprep.subr.bf16.mxu1 %v2737_v50 }
  0x4d   : > { %2592 = vmatprep.subr.bf16.mxu0 %v2739_v56  ;;  %v525_v42 = vrot.slane %v523_v21, 4  ;;  %v2200_v0 = vcombine.low %v511_v2, %v521_v49  ;;  %v3179_v21 = vld [vmem:[%s2951_s17 + $0x58] sm:$0xf]  ;;  %v550_v2 = vshll.u32 %v3176_v61, 16  ;;  %v1369_v49 = vshrl.u32 %v2248_v45, 16 }
  0x4e   : > { %v556_v30 = vshll.u32 %v3179_v21, 16  ;;  %v560_v36 = vshrl.u32 %v3179_v21, 16 }
  0x4f   : > { %2529 = vmatpush3.bf16.msra.mxu1 %v2737_v50  ;;  %v529_v3 = vor.u32 %v528_v44, %v525_v42  ;;  %v547_v50 = vshrl.u32 %v3176_v61, 16  ;;  %v1365_v44 = vshll.u32 %v2248_v45, 16  ;;  %v2276_v45 = vcombine.low %v3189_v37, %v3194_v29 }
  0x50   : > { %2593 = vmatpush3.bf16.msra.mxu0 %v2739_v56  ;;  %2530 = vmatprep.subr.bf16.mxu1 %v2740_v26  ;;  %v539_v56 = vor.u32 %v538_v58, %v534_v55  ;;  %v558_v63 = vrot.slane %v556_v30, 5  ;;  %v3200_v61 = vrot.slane %v1335_v19, 5  ;;  %v3210_v19 = vrot.slane %v1356_v20, 4  ;;  %v2234_v20 = vld [vmem:[%s2951_s17 + $0x20] sm:$0x1] }
  0x51   : > { %2594 = vmatprep.subr.bf16.mxu0 %v2741_v10  ;;  %2509 = vmatmul.mubr.bf16.gmra.mrb[8].mxu1 %v2200_v0  ;;  %v530_v27 = vrot.slane %v529_v3, 4  ;;  %v549_v0 = vrot.slane %v547_v50, 4  ;;  %v552_v3 = vrot.slane %v550_v2, 5  ;;  %v568_v2 = vrot.slane %v566_v11, 5 }
  0x52   : > { %v540_v42 = vrot.slane %v539_v56, 4  ;;  %v562_v56 = vrot.slane %v560_v36, 4  ;;  %2577 = vmatmul.mubr.bf16.gmra.mrb[12].mxu0 %v2276_v45  ;;  %v3218_v11 = vrot.slane %v1369_v49, 4  ;;  %v1276_v36 = vor.u32 %v3078_v25, %v3076_v24 }
  0x53   : > { %2531 = vmatpush3.bf16.msra.mxu1 %v2740_v26  ;;  %v535_v58 = vsel %vm2981_vm2, %v530_v27, %v534_v55  ;;  %v3202_v26 = vrot.slane %v1341_v8, 5  ;;  %v553_v55 = vor.u32 %v552_v3, %v549_v0  ;;  %v3204_v27 = vrot.slane %v1345_v54, 4  ;;  %v2240_v3 = vld [vmem:[%s2951_s17 + $0x38] sm:$0x1] }
  0x54   : > { %2595 = vmatpush3.bf16.msra.mxu0 %v2741_v10  ;;  %v545_v14 = vsel %vm2981_vm2, %v540_v42, %v544_v22  ;;  %v563_v50 = vor.u32 %v562_v56, %v558_v63  ;;  %v1248_v22 = vsel %vm2981_vm2, %v3042_v43, %v3019_v18  ;;  %v3212_v8 = vrot.slane %v1359_v5, 5  ;;  %v2231_v42 = vld [vmem:[%s2951_s17 + $0x14] sm:$0x1] }
  0x55   : > { %v2201_v10 = vcombine.low %v535_v58, %v545_v14  ;;  %v554_v17 = vrot.slane %v553_v55, 4  ;;  %v1266_v14 = vor.u32 %v3074_v23, %v3060_v1  ;;  %v3216_v54 = vrot.slane %v1365_v44, 5  ;;  %v2237_v58 = vld [vmem:[%s2951_s17 + $0x2c] sm:$0x1] }
  0x56   : > { %v564_v30 = vrot.slane %v563_v50, 4  ;;  %v1231_v43 = vshll.u32 %v2231_v42, 16  ;;  %v2213_v5 = vcombine.low %v3012_v15, %v3015_v16  ;;  %v1255_v44 = vshll.u32 %v2234_v20, 16 }
  0x57   : > { %2512 = vmatprep.mubr.bf16.mxu1 %v2201_v10  ;;  %v559_v18 = vsel %vm2981_vm2, %v554_v17, %v558_v63  ;;  %v1267_v1 = vrot.slane %v1266_v14, 4  ;;  %v1277_v49 = vrot.slane %v1276_v36, 4  ;;  %v1279_v0 = vshll.u32 %v2237_v58, 16  ;;  %v2243_v14 = vld [vmem:[%s2951_s17 + $0x44] sm:$0x1] }
  0x58   : > { %v569_v23 = vsel %vm2981_vm2, %v564_v30, %v568_v2  ;;  %v1233_v25 = vrot.slane %v1231_v43, 5  ;;  %v1290_v45 = vor.u32 %v3102_v60, %v3086_v35  ;;  %v1257_v15 = vrot.slane %v1255_v44, 5  ;;  %v2246_v36 = vld [vmem:[%s2951_s17 + $0x50] sm:$0x1]  ;;  %v2249_v58 = vld [vmem:[%s2951_s17 + $0x5c] sm:$0x1] }
  0x59   : > { %v2202_v56 = vcombine.low %v559_v18, %v569_v23  ;;  %v1272_v63 = vsel %vm2981_vm2, %v1267_v1, %v3076_v24  ;;  %v1281_v16 = vrot.slane %v1279_v0, 5  ;;  %v1300_v10 = vor.u32 %v3131_v53, %v3109_v4 }
  0x5a   : > { %v1303_v55 = vshll.u32 %v2240_v3, 16  ;;  %v1380_v50 = vshrl.u32 %v3189_v37, 16  ;;  %v1234_v2 = vsel %vm2981_vm2, %v3040_v41, %v1233_v25  ;;  %v1291_v17 = vrot.slane %v1290_v45, 4 }
  0x5b   : > { %2513 = vmatmul.mubr.bf16.gmra.mrb[12].mxu1 %v2202_v56  ;;  %v1314_v24 = vor.u32 %v3138_v57, %v3136_v59  ;;  %v3561_v35 = vcombine.low %v2956_v12, %v2959_v13  ;;  %v3562_v60 = vsel %vm2981_vm2, %v3032_v34, %v2991_v48  ;;  %v1258_v30 = vsel %vm2981_vm2, %v3045_v46, %v1257_v15 }
  0x5c   : > { %v2301_v53 = vcombine.low %v3562_v60, %v1234_v2  ;;  %v1282_v41 = vsel %vm2981_vm2, %v1277_v49, %v1281_v16  ;;  %v1301_v42 = vrot.slane %v1300_v10, 4  ;;  %v1383_v59 = vshll.u32 %v3189_v37, 16 }
  0x5d   : > { %2532 = vmatprep.mubr.bf16.mxu1 %v3561_v35  ;;  %v2302_v57 = vcombine.low %v1248_v22, %v1258_v30  ;;  %v2303_v12 = vcombine.low %v1272_v63, %v1282_v41  ;;  %v1305_v13 = vrot.slane %v1303_v55, 5  ;;  %v1389_v18 = vshll.u32 %v3194_v29, 16  ;;  %v2252_v55 = vld [vmem:[%s2951_s17 + $0x68] sm:$0x1]  ;;  %v3564_v41 = vld [vmem:[#allocation3_spill] sm:$0xff]  ;;  %s322_s17 = sadd.s32 %s2172_s16, %s320_s15 }
  0x5e   : > { %2596 = vmatprep.mubr.bf16.mxu0 %v2301_v53  ;;  %v1315_v48 = vrot.slane %v1314_v24, 4  ;;  %v1324_v34 = vor.u32 %v3142_v47, %v3140_v52  ;;  %v1327_v43 = vshll.u32 %v2243_v14, 16  ;;  %v1393_v46 = vshrl.u32 %v3194_v29, 16  ;;  %s2173_s18 = sshll.u32 %s322_s17, 3 }
  0x5f   : > { %2597 = vmatmul.mubr.bf16.vlgmr.msra.gmra.mrb[0].mxu0 %v2302_v57  ;;  %v1296_v20 = vsel %vm2981_vm2, %v1291_v17, %v3109_v4  ;;  %v1306_v37 = vsel %vm2981_vm2, %v1301_v42, %v1305_v13  ;;  %v1338_v22 = vor.u32 %v3200_v61, %v3168_v38  ;;  %v1348_v47 = vor.u32 %v3204_v27, %v3202_v26  ;;  %v3320_v13 = vld [vmem:[%s3553_s3] ss:$0 sm:$0xff]  ;;  %s324_s22 = scalar_lea.vmem %s3555_s5, %s2173_s18 }
  0x60   : > { %2600 = vmatprep.mubr.bf16.mxu0 %v2303_v12  ;;  %v1325_v1 = vrot.slane %v1324_v34, 4  ;;  %v1329_v23 = vrot.slane %v1327_v43, 5  ;;  %v1351_v44 = vshll.u32 %v2246_v36, 16  ;;  %v1382_v29 = vrot.slane %v1380_v50, 4 }
  0x61   : > { %v1320_v49 = vsel %vm2981_vm2, %v1315_v48, %v3140_v52  ;;  %v1362_v0 = vor.u32 %v3212_v8, %v3210_v19  ;;  %v1372_v38 = vor.u32 %v3218_v11, %v3216_v54  ;;  %v1375_v61 = vshll.u32 %v2249_v58, 16 }
  0x62   : > { %v1330_v4 = vsel %vm2981_vm2, %v1325_v1, %v1329_v23  ;;  %v1385_v3 = vrot.slane %v1383_v59, 5  ;;  %v1391_v56 = vrot.slane %v1389_v18, 5  ;;  %v3563_v27 = vcombine.low %v2969_v28, %v2975_v33 }
  0x63   : > { %v2304_v25 = vcombine.low %v1296_v20, %v1306_v37  ;;  %v1339_v63 = vrot.slane %v1338_v22, 4  ;;  %v1395_v52 = vrot.slane %v1393_v46, 4  ;;  %v2305_v45 = vcombine.low %v1320_v49, %v1330_v4 }
  0x64   : > { %2533 = vmatmul.mubr.bf16.vlgmr.msra.gmra.mrb[0].mxu1 %v3563_v27  ;;  %v1349_v15 = vrot.slane %v1348_v47, 4  ;;  %v1353_v16 = vrot.slane %v1351_v44, 5  ;;  %v1363_v10 = vrot.slane %v1362_v0, 4  ;;  %v1373_v19 = vrot.slane %v1372_v38, 4 }
  0x65   : > { %2536 = vmatprep.mubr.bf16.mxu1 %v2213_v5  ;;  %v1377_v8 = vrot.slane %v1375_v61, 5  ;;  %v2214_v11 = vcombine.low %v3038_v39, %v3050_v51  ;;  %v2215_v50 = vcombine.low %v3081_v31, %v3084_v32  ;;  %v1344_v28 = vsel %vm2981_vm2, %v1339_v63, %v3202_v26 }
  0x66   : > { %v1354_v33 = vsel %vm2981_vm2, %v1349_v15, %v1353_v16  ;;  %v1386_v5 = vor.u32 %v1385_v3, %v1382_v29  ;;  %v1396_v2 = vor.u32 %v1395_v52, %v1391_v56  ;;  %v1399_v17 = vshll.u32 %v2252_v55, 16 }
  0x67   : > { %2601 = vmatmul.mubr.bf16.gmra.mrb[4].mxu0 %v2304_v25  ;;  %v1368_v14 = vsel %vm2981_vm2, %v1363_v10, %v3216_v54  ;;  %v1378_v39 = vsel %vm2981_vm2, %v1373_v19, %v1377_v8  ;;  %v2306_v51 = vcombine.low %v1344_v28, %v1354_v33  ;;  %v2216_v35 = vcombine.low %v3105_v62, %v3112_v6 }
  0x68   : > { %2604 = vmatprep.mubr.bf16.mxu0 %v2305_v45  ;;  %v2307_v31 = vcombine.low %v1368_v14, %v1378_v39  ;;  %v1387_v32 = vrot.slane %v1386_v5, 4  ;;  %v1397_v26 = vrot.slane %v1396_v2, 4  ;;  %v1401_v24 = vrot.slane %v1399_v17, 5 }
  0x69   : > { %v2217_v60 = vcombine.low %v3146_v7, %v3149_v9  ;;  %v2218_v42 = vcombine.low %v3564_v41, %v3179_v21  ;;  %v3315_v9 = vld [vmem:[%s3552_s2] ss:$0 sm:$0xff] }
  0x6a   : > { %v1392_v54 = vsel %vm2981_vm2, %v1387_v32, %v1391_v56  ;;  %v1402_v53 = vsel %vm2981_vm2, %v1397_v26, %v1401_v24 }
  0x6b   : > { %v2308_v30 = vcombine.low %v1392_v54, %v1402_v53 }
  0x6c   : > { %2537 = vmatmul.mubr.bf16.gmra.mrb[4].mxu1 %v2214_v11 }
  0x6d   : > { %2540 = vmatprep.mubr.bf16.mxu1 %v2215_v50 }
  0x6f   : > { %2605 = vmatmul.mubr.bf16.gmra.mrb[8].mxu0 %v2306_v51 }
  0x70   : > { %2608 = vmatprep.mubr.bf16.mxu0 %v2307_v31 }
  0x74   : > { %2541 = vmatmul.mubr.bf16.gmra.mrb[8].mxu1 %v2216_v35 }
  0x75   : > { %2544 = vmatprep.mubr.bf16.mxu1 %v2217_v60 }
  0x77   : > { %2609 = vmatmul.mubr.bf16.gmra.mrb[12].mxu0 %v2308_v30 }
  0x7c   : > { %2545 = vmatmul.mubr.bf16.gmra.mrb[12].mxu1 %v2218_v42 }
 0x132   : > { %v2598_v62 = vpop.f32.mrb[0].mxu0 }
 0x133   : > { %v1534_v6 = vpop.f32.mrb[1].mxu0 }
 0x134   : > { %v2599_v59 = vpop.f32.mrb[2].mxu0 }
 0x135   : > { %v1537_v57 = vpop.f32.mrb[3].mxu0 }
 0x137   : > { %v2534_v7 = vpop.f32.mrb[0].mxu1 }
 0x138   : > { %v2612_v40 = vadd.f32 %v2598_v62, %v2534_v7  ;;  %v894_v12 = vpop.f32.mrb[1].mxu1 }
 0x139   : > { %v2613_v21 = vadd.f32 %v1534_v6, %v894_v12  ;;  %v2535_v36 = vpop.f32.mrb[2].mxu1 }
 0x13a   : > { %v1622_v18 = vmul.f32 %v2612_v40, %v3315_v9  ;;  %v2614_v48 = vadd.f32 %v2599_v59, %v2535_v36  ;;  %v897_v34 = vpop.f32.mrb[3].mxu1  ;;  %v2602_v20 = vpop.f32.mrb[4].mxu0 }
 0x13b   : > { %v1620_v43 = vmul.f32 %v2613_v21, %v3315_v9  ;;  %v2615_v46 = vadd.f32 %v1537_v57, %v897_v34  ;;  %v1550_v58 = vpop.f32.mrb[5].mxu0 }
 0x13c   : > { %v3325_v37 = vadd.f32 %v3320_v13, %v1622_v18  ;;  %v1623_v22 = vmul.f32 %v2614_v48, %v3315_v9  ;;  %v2603_v47 = vpop.f32.mrb[6].mxu0 }
 0x13d   : > { %v3329_v1 = vadd.f32 %v3320_v13, %v1620_v43  ;;  %v1621_v23 = vmul.f32 %v2615_v46, %v3315_v9  ;;  %v1553_v49 = vpop.f32.mrb[7].mxu0 }
 0x13e   : > { %v2321_v44 = vmul.f32 -1.442695, %v3325_v37  ;;  %v3334_v29 = vadd.f32 %v3320_v13, %v1623_v22 }
 0x13f   : > { %v2319_v4 = vmul.f32 -1.442695, %v3329_v1  ;;  %v3338_v0 = vadd.f32 %v3320_v13, %v1621_v23  ;;  %v2538_v38 = vpop.f32.mrb[4].mxu1 }
 0x140   : > { %2750 = vpow2.f32 %v2321_v44  ;;  %v2322_v61 = vmul.f32 -1.442695, %v3334_v29  ;;  %v2616_v3 = vadd.f32 %v2602_v20, %v2538_v38  ;;  %v910_v56 = vpop.f32.mrb[5].mxu1 }
 0x141   : > { %2752 = vpow2.f32 %v2319_v4  ;;  %v2320_v27 = vmul.f32 -1.442695, %v3338_v0  ;;  %v2617_v25 = vadd.f32 %v1550_v58, %v910_v56  ;;  %v2539_v63 = vpop.f32.mrb[6].mxu1 }
 0x142   : > { %2754 = vpow2.f32 %v2322_v61  ;;  %v1626_v52 = vmul.f32 %v2616_v3, %v3315_v9  ;;  %v2618_v45 = vadd.f32 %v2603_v47, %v2539_v63  ;;  %v913_v15 = vpop.f32.mrb[7].mxu1  ;;  %v2606_v19 = vpop.f32.mrb[8].mxu0 }
 0x143   : > { %2756 = vpow2.f32 %v2320_v27  ;;  %v1624_v16 = vmul.f32 %v2617_v25, %v3315_v9  ;;  %v2619_v10 = vadd.f32 %v1553_v49, %v913_v15  ;;  %v1566_v11 = vpop.f32.mrb[9].mxu0 }
 0x144   : > { %v3345_v8 = vadd.f32 %v3320_v13, %v1626_v52  ;;  %v1627_v55 = vmul.f32 %v2618_v45, %v3315_v9  ;;  %v2607_v33 = vpop.f32.mrb[10].mxu0 }
 0x145   : > { %v3349_v50 = vadd.f32 %v3320_v13, %v1624_v16  ;;  %v1625_v28 = vmul.f32 %v2619_v10, %v3315_v9  ;;  %v1569_v17 = vpop.f32.mrb[11].mxu0 }
 0x146   : > { %v2325_v5 = vmul.f32 -1.442695, %v3345_v8  ;;  %v3354_v2 = vadd.f32 %v3320_v13, %v1627_v55 }
 0x147   : > { %v2323_v14 = vmul.f32 -1.442695, %v3349_v50  ;;  %v3359_v39 = vadd.f32 %v3320_v13, %v1625_v28  ;;  %v2542_v51 = vpop.f32.mrb[8].mxu1 }
 0x148   : > { %2758 = vpow2.f32 %v2325_v5  ;;  %v2326_v31 = vmul.f32 -1.442695, %v3354_v2  ;;  %v2620_v32 = vadd.f32 %v2606_v19, %v2542_v51  ;;  %v926_v26 = vpop.f32.mrb[9].mxu1 }
 0x149   : > { %2760 = vpow2.f32 %v2323_v14  ;;  %v2324_v24 = vmul.f32 -1.442695, %v3359_v39  ;;  %v2621_v35 = vadd.f32 %v1566_v11, %v926_v26  ;;  %v2543_v60 = vpop.f32.mrb[10].mxu1 }
 0x14a   : > { %v2751_v54 = vpop.eup %2750  ;;  %2762 = vpow2.f32 %v2326_v31  ;;  %v1630_v53 = vmul.f32 %v2620_v32, %v3315_v9  ;;  %v2622_v30 = vadd.f32 %v2607_v33, %v2543_v60  ;;  %v929_v41 = vpop.f32.mrb[11].mxu1 }
 0x14b   : > { %v2753_v42 = vpop.eup %2752  ;;  %v1709_v62 = vadd.f32 1.0, %v2751_v54  ;;  %2764 = vpow2.f32 %v2324_v24  ;;  %v1628_v6 = vmul.f32 %v2621_v35, %v3315_v9  ;;  %v2623_v59 = vadd.f32 %v1569_v17, %v929_v41  ;;  %v2610_v57 = vpop.f32.mrb[12].mxu0 }
 0x14c   : > { %v2755_v7 = vpop.eup %2754  ;;  %v1707_v40 = vadd.f32 1.0, %v2753_v42  ;;  %v3372_v12 = vadd.f32 %v3320_v13, %v1630_v53  ;;  %v1631_v21 = vmul.f32 %v2622_v30, %v3315_v9  ;;  %v1582_v36 = vpop.f32.mrb[13].mxu0 }
 0x14d   : > { %v2757_v18 = vpop.eup %2756  ;;  %2766 = vrcp.f32 %v1709_v62  ;;  %v1710_v48 = vadd.f32 1.0, %v2755_v7  ;;  %v3376_v34 = vadd.f32 %v3320_v13, %v1628_v6  ;;  %v1629_v43 = vmul.f32 %v2623_v59, %v3315_v9  ;;  %v2611_v46 = vpop.f32.mrb[14].mxu0 }
 0x14e   : > { %2768 = vrcp.f32 %v1707_v40  ;;  %v1708_v20 = vadd.f32 1.0, %v2757_v18  ;;  %v2329_v22 = vmul.f32 -1.442695, %v3372_v12  ;;  %v3387_v58 = vadd.f32 %v3320_v13, %v1631_v21  ;;  %v1585_v23 = vpop.f32.mrb[15].mxu0 }
 0x14f   : > { %2770 = vrcp.f32 %v1710_v48  ;;  %v2327_v47 = vmul.f32 -1.442695, %v3376_v34  ;;  %v3391_v44 = vadd.f32 %v3320_v13, %v1629_v43  ;;  %v2546_v49 = vpop.f32.mrb[12].mxu1 }
 0x150   : > { %2772 = vrcp.f32 %v1708_v20  ;;  %v2330_v4 = vmul.f32 -1.442695, %v3387_v58  ;;  %v2624_v38 = vadd.f32 %v2610_v57, %v2546_v49  ;;  %v942_v61 = vpop.f32.mrb[13].mxu1 }
 0x151   : > { %2774 = vpow2.f32 %v2329_v22  ;;  %v2328_v3 = vmul.f32 -1.442695, %v3391_v44  ;;  %v2625_v56 = vadd.f32 %v1582_v36, %v942_v61  ;;  %v2547_v27 = vpop.f32.mrb[14].mxu1 }
 0x152   : > { %v2759_v25 = vpop.eup %2758  ;;  %2776 = vpow2.f32 %v2327_v47  ;;  %v1634_v63 = vmul.f32 %v2624_v38, %v3315_v9  ;;  %v2626_v52 = vadd.f32 %v2611_v46, %v2547_v27  ;;  %v945_v45 = vpop.f32.mrb[15].mxu1 }
 0x153   : > { %v2761_v15 = vpop.eup %2760  ;;  %v1713_v16 = vadd.f32 1.0, %v2759_v25  ;;  %2778 = vpow2.f32 %v2330_v4  ;;  %v1632_v10 = vmul.f32 %v2625_v56, %v3315_v9  ;;  %v2627_v19 = vadd.f32 %v1585_v23, %v945_v45 }
 0x154   : > { %v2763_v55 = vpop.eup %2762  ;;  %v1711_v11 = vadd.f32 1.0, %v2761_v15  ;;  %2780 = vpow2.f32 %v2328_v3  ;;  %v3400_v28 = vadd.f32 %v3320_v13, %v1634_v63  ;;  %v1635_v33 = vmul.f32 %v2626_v52, %v3315_v9 }
 0x155   : > { %v2765_v5 = vpop.eup %2764  ;;  %2782 = vrcp.f32 %v1713_v16  ;;  %v1714_v17 = vadd.f32 1.0, %v2763_v55  ;;  %v3404_v14 = vadd.f32 %v3320_v13, %v1632_v10  ;;  %v1633_v51 = vmul.f32 %v2627_v19, %v3315_v9 }
 0x156   : > { %2784 = vrcp.f32 %v1711_v11  ;;  %v1712_v31 = vadd.f32 1.0, %v2765_v5  ;;  %v2333_v32 = vmul.f32 -1.442695, %v3400_v28  ;;  %v3409_v26 = vadd.f32 %v3320_v13, %v1635_v33 }
 0x157   : > { %v2767_v24 = vpop.eup %2766  ;;  %2786 = vrcp.f32 %v1714_v17  ;;  %v2331_v35 = vmul.f32 -1.442695, %v3404_v14  ;;  %v3413_v60 = vadd.f32 %v3320_v13, %v1633_v51 }
 0x158   : > { %v2769_v54 = vpop.eup %2768  ;;  %2788 = vrcp.f32 %v1712_v31  ;;  %v2334_v53 = vmul.f32 -1.442695, %v3409_v26  ;;  %v3418_v42 = vmul.f32 %v2767_v24, %v3325_v37 }
 0x159   : > { %v2771_v9 = vpop.eup %2770  ;;  %2790 = vpow2.f32 %v2333_v32  ;;  %v2332_v30 = vmul.f32 -1.442695, %v3413_v60  ;;  %v3424_v13 = vmul.f32 %v2769_v54, %v3329_v1 }
 0x15a   : > { %v2773_v41 = vpop.eup %2772  ;;  %v3421_v62 = vmul.f32 %v2771_v9, %v3334_v29  ;;  %2792 = vpow2.f32 %v2331_v35 }
 0x15b   : > { %v2775_v6 = vpop.eup %2774  ;;  %v3432_v59 = vmul.f32 %v2773_v41, %v3338_v0  ;;  %2794 = vpow2.f32 %v2334_v53 }
 0x15c   : > { %v2777_v37 = vpop.eup %2776  ;;  %v2381_v29 = vpack.c.bf16 %v3421_v62, %v3418_v42  ;;  %v1858_v57 = vadd.f32 %v3421_v62, %v3418_v42  ;;  %v1717_v1 = vadd.f32 1.0, %v2775_v6  ;;  %2796 = vpow2.f32 %v2332_v30 }
 0x15d   : > { %v2779_v7 = vpop.eup %2778  ;;  %v2376_v40 = vpack.c.bf16 %v3432_v59, %v3424_v13  ;;  %v1851_v21 = vadd.f32 %v3432_v59, %v3424_v13  ;;  %v1715_v0 = vadd.f32 1.0, %v2777_v37 }
 0x15e   : > { %v2781_v36 = vpop.eup %2780  ;;  %2413 = vst [vmem:[%s3429_s14 + $0x8] sm:$0xff] %v2381_v29   ;;  %v1859_v18 = vrot.slane %v1858_v57, 4  ;;  %2798 = vrcp.f32 %v1717_v1  ;;  %v1718_v48 = vadd.f32 1.0, %v2779_v7 }
 0x15f   : > { %v2783_v43 = vpop.eup %2782  ;;  %2377 = vst [vmem:[%s3429_s14] sm:$0xff] %v2376_v40   ;;  %v1852_v46 = vrot.slane %v1851_v21, 4  ;;  %2800 = vrcp.f32 %v1715_v0  ;;  %v1716_v20 = vadd.f32 1.0, %v2781_v36 }
 0x160   : > { %v2785_v22 = vpop.eup %2784  ;;  %v1860_v23 = vadd.f32 %v1859_v18, %v1858_v57  ;;  %2802 = vrcp.f32 %v1718_v48  ;;  %v3445_v61 = vmul.f32 %v2783_v43, %v3345_v8 }
 0x161   : > { %v2787_v47 = vpop.eup %2786  ;;  %v1853_v49 = vadd.f32 %v1852_v46, %v1851_v21  ;;  %2804 = vrcp.f32 %v1716_v20  ;;  %v3451_v25 = vmul.f32 %v2785_v22, %v3349_v50 }
 0x162   : > { %v2789_v4 = vpop.eup %2788  ;;  %v1861_v38 = vrot.slane %v1860_v23, 2  ;;  %v3448_v3 = vmul.f32 %v2787_v47, %v3354_v2 }
 0x163   : > { %v2791_v56 = vpop.eup %2790  ;;  %v1854_v27 = vrot.slane %v1853_v49, 2  ;;  %v3454_v63 = vmul.f32 %v2789_v4, %v3359_v39 }
 0x164   : > { %v2793_v52 = vpop.eup %2792  ;;  %v1862_v45 = vadd.f32 %v1861_v38, %v1860_v23  ;;  %v2391_v15 = vpack.c.bf16 %v3448_v3, %v3445_v61  ;;  %v1872_v8 = vadd.f32 %v3448_v3, %v3445_v61  ;;  %v1721_v2 = vadd.f32 1.0, %v2791_v56 }
 0x165   : > { %v2795_v16 = vpop.eup %2794  ;;  %v1855_v10 = vadd.f32 %v1854_v27, %v1853_v49  ;;  %v2386_v19 = vpack.c.bf16 %v3454_v63, %v3451_v25  ;;  %v1865_v50 = vadd.f32 %v3454_v63, %v3451_v25  ;;  %v1719_v39 = vadd.f32 1.0, %v2793_v52 }
 0x166   : > { %v2797_v55 = vpop.eup %2796  ;;  %v1863_v11 = vrot.slane %v1862_v45, 1  ;;  %2415 = vst [vmem:[%s3429_s14 + $0x18] sm:$0xff] %v2391_v15   ;;  %v1873_v33 = vrot.slane %v1872_v8, 4  ;;  %2806 = vrcp.f32 %v1721_v2  ;;  %v1722_v5 = vadd.f32 1.0, %v2795_v16 }
 0x167   : > { %v1856_v17 = vrot.slane %v1855_v10, 1  ;;  %2414 = vst [vmem:[%s3429_s14 + $0x10] sm:$0xff] %v2386_v19   ;;  %v1866_v51 = vrot.slane %v1865_v50, 4  ;;  %2808 = vrcp.f32 %v1719_v39  ;;  %v1720_v31 = vadd.f32 1.0, %v2797_v55 }
 0x168   : > { %v2799_v32 = vpop.eup %2798  ;;  %v1864_v24 = vadd.f32 %v1863_v11, %v1862_v45  ;;  %v1874_v35 = vadd.f32 %v1873_v33, %v1872_v8  ;;  %2810 = vrcp.f32 %v1722_v5 }
 0x169   : > { %v2801_v54 = vpop.eup %2800  ;;  %v1857_v53 = vadd.f32 %v1856_v17, %v1855_v10  ;;  %v1867_v9 = vadd.f32 %v1866_v51, %v1865_v50  ;;  %2812 = vrcp.f32 %v1720_v31  ;;  %v3467_v1 = vmul.f32 %v2799_v32, %v3372_v12 }
 0x16a   : > { %v2803_v30 = vpop.eup %2802  ;;  %v1909_v41 = vmul.f32 0.0625, %v1864_v24  ;;  %v1875_v6 = vrot.slane %v1874_v35, 2  ;;  %v3473_v21 = vmul.f32 %v2801_v54, %v3376_v34 }
 0x16b   : > { %v2805_v37 = vpop.eup %2804  ;;  %v1908_v29 = vmul.f32 0.0625, %v1857_v53  ;;  %v1868_v57 = vrot.slane %v1867_v9, 2  ;;  %v3470_v7 = vmul.f32 %v2803_v30, %v3387_v58 }
 0x16c   : > { %v1876_v40 = vadd.f32 %v1875_v6, %v1874_v35  ;;  %v3476_v0 = vmul.f32 %v2805_v37, %v3391_v44 }
 0x16d   : > { %v1925_v36 = vsel %vm1924_vm3, %v1909_v41, %v1908_v29  ;;  %v1869_v18 = vadd.f32 %v1868_v57, %v1867_v9  ;;  %v2401_v48 = vpack.c.bf16 %v3470_v7, %v3467_v1  ;;  %v1886_v12 = vadd.f32 %v3470_v7, %v3467_v1 }
 0x16e   : > { %v1877_v43 = vrot.slane %v1876_v40, 1  ;;  %v2396_v58 = vpack.c.bf16 %v3476_v0, %v3473_v21  ;;  %v1879_v46 = vadd.f32 %v3476_v0, %v3473_v21 }
 0x16f   : > { %v1870_v34 = vrot.slane %v1869_v18, 1  ;;  %2417 = vst [vmem:[%s3429_s14 + $0x28] sm:$0xff] %v2401_v48   ;;  %v1887_v20 = vrot.slane %v1886_v12, 4 }
 0x170   : > { %v2807_v44 = vpop.eup %2806  ;;  %v1878_v22 = vadd.f32 %v1877_v43, %v1876_v40  ;;  %2416 = vst [vmem:[%s3429_s14 + $0x20] sm:$0xff] %v2396_v58   ;;  %v1880_v23 = vrot.slane %v1879_v46, 4 }
 0x171   : > { %v2809_v47 = vpop.eup %2808  ;;  %v1871_v49 = vadd.f32 %v1870_v34, %v1869_v18  ;;  %v1888_v4 = vadd.f32 %v1887_v20, %v1886_v12  ;;  %v3489_v15 = vmul.f32 %v2807_v44, %v3400_v28 }
 0x172   : > { %v2811_v38 = vpop.eup %2810  ;;  %v1881_v56 = vadd.f32 %v1880_v23, %v1879_v46  ;;  %v1911_v2 = vmul.f32 0.0625, %v1878_v22  ;;  %v3495_v10 = vmul.f32 %v2809_v47, %v3404_v14  ;;  %v2854_v46 = vmov (!%p2351_p8), 0.0  }
 0x173   : > { %v2813_v27 = vpop.eup %2812  ;;  %v1910_v52 = vmul.f32 0.0625, %v1871_v49  ;;  %v1889_v45 = vrot.slane %v1888_v4, 2  ;;  %v3492_v8 = vmul.f32 %v2811_v38, %v3409_v26  ;;  %1944 = vst [vmem:[#allocation2] sm:$0xff] (!%p2351_p8), %v2854_v46  ;;  %1945 = vst [vmem:[#allocation2 + $0x8] sm:$0xff] (!%p2351_p8), %v2854_v46 }
 0x174   : > { %v1882_v16 = vrot.slane %v1881_v56, 2  ;;  %v3498_v19 = vmul.f32 %v2813_v27, %v3413_v60 }
 0x175   : > { %v1927_v50 = vsel %vm1926_vm4, %v1910_v52, %v1925_v36  ;;  %v1890_v39 = vadd.f32 %v1889_v45, %v1888_v4  ;;  %v2411_v55 = vpack.c.bf16 %v3492_v8, %v3489_v15  ;;  %v1900_v28 = vadd.f32 %v3492_v8, %v3489_v15 }
 0x176   : > { %v1883_v26 = vadd.f32 %v1882_v16, %v1881_v56  ;;  %v1929_v11 = vsel %vm1928_vm5, %v1911_v2, %v1927_v50  ;;  %v2406_v33 = vpack.c.bf16 %v3498_v19, %v3495_v10  ;;  %v1893_v14 = vadd.f32 %v3498_v19, %v3495_v10 }
 0x177   : > { %v1891_v60 = vrot.slane %v1890_v39, 1  ;;  %2419 = vst [vmem:[%s3429_s14 + $0x38] sm:$0xff] %v2411_v55   ;;  %v1901_v5 = vrot.slane %v1900_v28, 4 }
 0x178   : > { %v1884_v17 = vrot.slane %v1883_v26, 1  ;;  %2418 = vst [vmem:[%s3429_s14 + $0x30] sm:$0xff] %v2406_v33   ;;  %v1894_v51 = vrot.slane %v1893_v14, 4 }
 0x179   : > { %v1892_v31 = vadd.f32 %v1891_v60, %v1890_v39  ;;  %v1902_v32 = vadd.f32 %v1901_v5, %v1900_v28 }
 0x17a   : > { %v1885_v24 = vadd.f32 %v1884_v17, %v1883_v26  ;;  %v1895_v35 = vadd.f32 %v1894_v51, %v1893_v14 }
 0x17b   : > { %v1903_v54 = vrot.slane %v1902_v32, 2  ;;  %v1913_v30 = vmul.f32 0.0625, %v1892_v31 }
 0x17c   : > { %v1912_v53 = vmul.f32 0.0625, %v1885_v24  ;;  %v1896_v9 = vrot.slane %v1895_v35, 2 }
 0x17d   : > { %v1904_v41 = vadd.f32 %v1903_v54, %v1902_v32 }
 0x17e   : > { %v1931_v6 = vsel %vm1930_vm6, %v1912_v53, %v1929_v11  ;;  %v1897_v37 = vadd.f32 %v1896_v9, %v1895_v35 }
 0x17f   : > { %v1905_v29 = vrot.slane %v1904_v41, 1  ;;  %v1933_v57 = vsel %vm1932_vm7, %v1913_v30, %v1931_v6 }
 0x180   : > { %v1898_v40 = vrot.slane %v1897_v37, 1 }
 0x181   : > { %v1906_v36 = vadd.f32 %v1905_v29, %v1904_v41 }
 0x182   : > { %v1899_v18 = vadd.f32 %v1898_v40, %v1897_v37  ;;  %1943 = sbr.rel (%p2351_p8) target bundleno = 393 (0x189), region = 40 }
 0x183   : > { %v1915_v12 = vmul.f32 0.0625, %v1906_v36 }
 0x184   : > { %v1914_v48 = vmul.f32 0.0625, %v1899_v18 }
 0x186   : > { %v1935_v43 = vsel %vm1934_vm8, %v1914_v48, %v1933_v57 }
 0x187   : > { %v1937_v58 = vsel %vm1936_vm9, %v1915_v12, %v1935_v43 }
 0x188   : > { %1939 = vst [vmem:[%s324_s22] sm:$0xff] %v1937_v58 }
 0x189 PF: > { %v1948_v34 = vadd.f32 %v3418_v42, %v3424_v13  ;;  %v1955_v20 = vadd.f32 %v3421_v62, %v3432_v59  ;;  %v1946_v59 = vld [vmem:[#allocation2] sm:$0xff] }
 0x18b   : > { %v1949_v44 = vadd.f32 %v1948_v34, %v3451_v25  ;;  %v1956_v22 = vadd.f32 %v1955_v20, %v3454_v63  ;;  %v1947_v25 = vld [vmem:[#allocation2 + $0x8] sm:$0xff] }
 0x18d   : > { %v1950_v23 = vadd.f32 %v1949_v44, %v3445_v61  ;;  %v1957_v47 = vadd.f32 %v1956_v22, %v3448_v3 }
 0x18f   : > { %v1951_v49 = vadd.f32 %v1950_v23, %v3473_v21  ;;  %v1958_v4 = vadd.f32 %v1957_v47, %v3476_v0 }
 0x191   : > { %v1952_v38 = vadd.f32 %v1951_v49, %v3467_v1  ;;  %v1959_v42 = vadd.f32 %v1958_v4, %v3470_v7 }
 0x193   : > { %v1953_v62 = vadd.f32 %v1952_v38, %v3495_v10  ;;  %v1960_v13 = vadd.f32 %v1959_v42, %v3498_v19 }
 0x195   : > { %v1954_v61 = vadd.f32 %v1953_v62, %v3489_v15  ;;  %v1961_v3 = vadd.f32 %v1960_v13, %v3492_v8 }
 0x197   : > { %v1962_v63 = vadd.f32 %v1954_v61, %v1946_v59  ;;  %v1963_v21 = vadd.f32 %v1961_v3, %v1947_v25 }
 0x199   : > { %1964 = vst [vmem:[#allocation2] sm:$0xff] %v1962_v63  ;;  %1965 = vst [vmem:[#allocation2 + $0x8] sm:$0xff] %v1963_v21  ;;  %v1968_v0 = vmul.f32 0.0625, %v1962_v63  ;;  %v1969_v56 = vmul.f32 0.0625, %v1963_v21 }
 0x19b   : > { %1970 = vst [vmem:[%s2934_s11] sm:$0xff] %v1968_v0  ;;  %1971 = vst [vmem:[%s2934_s11 + $0x8] sm:$0xff] %v1969_v56 }
 0x19c PF: > { %s17_s25 = sadd.s32 1, %s2852_s25   ;;  %s3566_s21 = smov %s2844_s23 }
 0x19d   : > { %p14_p9 = scmp.ge.s32.totalorder %s17_s25, 6   ;;  %s3567_s22 = smov %s2848_s24 }
 0x19e   : > { %s3568_s23 = smov %s3571_s26  ;;  %s3569_s24 = smov %s3575_s27 }
 0x19f   :  { %16 = sbr.rel (!%p14_p9) target bundleno = 3 (0x3), region = 102 }

// kernel: rfca_forward.5
= control target key start
LH: loop header
LB: loop body
LE: loop exit
PB: predicated region body
PF: predicated region fallthrough
CT: control target
= control target key end

     0   :  { %s3561_s21 = smov 0   ;;  %s3563_s22 = smov 0   ;;  %s4297_s0 = inlined_call_operand.vmem [shape: bf16[2,18,18,128], index: 0, kind: input, shape index: {}]   ;;  %s4298_s1 = inlined_call_operand.vmem [shape: f32[2,18,128], index: 1, kind: input, shape index: {}]   ;;  %s4299_s2 = inlined_call_operand.vmem [shape: f32[2,18,128], index: 2, kind: input, shape index: {}]   ;;  %s4300_s3 = inlined_call_operand.vmem [shape: bf16[9,128,128], index: 3, kind: input, shape index: {}]   ;;  %s4301_s4 = inlined_call_operand.vmem [shape: f32[1,128], index: 4, kind: input, shape index: {}]   ;;  %s4302_s5 = inlined_call_operand.vmem [shape: f32[1,128], index: 5, kind: input, shape index: {}]   ;;  %s4303_s6 = inlined_call_operand.vmem [shape: f32[2,16,16,128], index: 6, kind: output, shape index: {}]  }
   0x1   :  { %s3565_s23 = smov 0   ;;  %s3567_s24 = smov 0  }
   0x2   :  { %s3569_s25 = smov 0  }
   0x3 LB: > { %s25_s26 = sadd.s32 1, %s3515_s23  ;;  %s28_s27 = sadd.s32 1, %s3519_s24  ;;  %s3523_s25 = sphi %s3569_s25, %s16_s25   ;;  %s3519_s24 = sphi %s3567_s24, %s4307_s24   ;;  %s3515_s23 = sphi %s3565_s23, %s4306_s23   ;;  %s3511_s22 = sphi %s3563_s22, %s4305_s22   ;;  %s3507_s21 = sphi %s3561_s21, %s4304_s21  }
   0x4   : > { %p26_p0 = scmp.ge.s32.totalorder %s25_s26, 2  ;;  %p2552_p1 = scmp.ge.s32.totalorder %s3523_s25, 1 }
   0x5   : > { %p246_p2 = scmp.lt.s32.totalorder %s3523_s25, 5 }
   0x6   : > { %s4309_s26 = smov (%p26_p0, %s25_s26), 0  ;;  %s4311_s27 = smov (!%p26_p0, %s28_s27), %s3519_s24 }
   0x7   : > { %p247_p3 = pnand %p2552_p1, %p246_p2  ;;  %p30_p4 = scmp.ge.s32.totalorder %s4311_s27, 2 }
   0x8   : > { %v3412_v0 = vld [vmem:[%s4300_s3 + $0x40] sm:$0xff] (!%p247_p3)   ;;  %p291_p5 = scmp.lt.s32.totalorder (!%p247_p3), %s3511_s22, 1  ;;  %v3414_v2 = vld [vmem:[%s4300_s3 + $0x48] sm:$0xff] (!%p247_p3)   ;;  %s3603_s10 = sshll.u32 (!%p247_p3), %s3507_s21, 3  ;;  %v3416_v4 = vld [vmem:[%s4300_s3 + $0x50] sm:$0xff] (!%p247_p3)   ;;  %v394_v10 = vlaneseq (!%p247_p3)  ;;  %vm1035_vm1 = vcmask (!%p247_p3), 1046528  }
   0x9   : > { %s4313_s27 = smov (%p30_p4, %s4311_s27), 0  ;;  %250 = sbr.rel (%p247_p3) target bundleno = 414 (0x19e), region = 44 }
   0xa   : > { %v3413_v1 = vld [vmem:[%s4300_s3 + $0x100] sm:$0xff] (!%p247_p3)   ;;  %2937 = vmatprep.subr.bf16.mxu1 (!%p247_p3), %v3412_v0  ;;  %v3415_v3 = vld [vmem:[%s4300_s3 + $0x108] sm:$0xff] (!%p247_p3)   ;;  %p309_p6 = scmp.lt.s32.totalorder (!%p247_p3), %s3603_s10, 15  ;;  %v3417_v5 = vld [vmem:[%s4300_s3 + $0x110] sm:$0xff] (!%p247_p3)   ;;  %s2768_s11 = smul.u32 (!%p247_p3), 96, %s3507_s21  ;;  %v395_v19 = vshrl.u32 (!%p247_p3), %v394_v10, 7 }
   0xb   : > { %3065 = vmatprep.subr.bf16.mxu0 (!%p247_p3), %v3413_v1  ;;  %2938 = vmatpush3.bf16.msra.mxu1 (!%p247_p3), %v3412_v0  ;;  %v3418_v6 = vld [vmem:[%s4300_s3 + $0x58] sm:$0xff] (!%p247_p3)   ;;  %v3420_v8 = vld [vmem:[%s4300_s3 + $0x60] sm:$0xff] (!%p247_p3)   ;;  %v3422_v11 = vld [vmem:[%s4300_s3 + $0x68] sm:$0xff] (!%p247_p3)   ;;  %v3525_v17 = vmov (!%p247_p3), 1966171168  }
   0xc   : > { %3066 = vmatpush3.bf16.msra.mxu0 (!%p247_p3), %v3413_v1  ;;  %2939 = vmatprep.subr.bf16.mxu1 (!%p247_p3), %v3414_v2  ;;  %v3419_v7 = vld [vmem:[%s4300_s3 + $0x118] sm:$0xff] (!%p247_p3)   ;;  %v3421_v9 = vld [vmem:[%s4300_s3 + $0x120] sm:$0xff] (!%p247_p3)   ;;  %v3423_v12 = vld [vmem:[%s4300_s3 + $0x128] sm:$0xff] (!%p247_p3)   ;;  %v392_v18 = vunpack.c.l.s4 (!%p247_p3), %v3525_v17  ;;  %v3674_v25 = vsub.s32 (!%p247_p3), 0, %v395_v19  ;;  %vm607_vm0 = vsmask.f32 (!%p247_p3), 7424 }
   0xd   : > { %3067 = vmatprep.subr.bf16.mxu0 (!%p247_p3), %v3415_v3  ;;  %v3424_v13 = vld [vmem:[%s4300_s3 + $0x70] sm:$0xff] (!%p247_p3)   ;;  %v3426_v29 = vld [vmem:[%s4300_s3 + $0x78] sm:$0xff] (!%p247_p3)   ;;  %v3738_v63 = vld [vmem:[%s4300_s3] sm:$0xff] (!%p247_p3)  }
   0xe   : > { %v3425_v20 = vld [vmem:[%s4300_s3 + $0x130] sm:$0xff] (!%p247_p3)   ;;  %v393_v22 = vunpack.c.0.s8 (!%p247_p3), %v392_v18  ;;  %v3427_v36 = vld [vmem:[%s4300_s3 + $0x138] sm:$0xff] (!%p247_p3)  }
   0xf   : > { %2940 = vmatpush3.bf16.msra.mxu1 (!%p247_p3), %v3414_v2 }
  0x10   : > { %s4315_s22 = smov (!%p291_p5, %s3511_s22), 1  ;;  %3068 = vmatpush3.bf16.msra.mxu0 %v3415_v3  ;;  %2941 = vmatprep.subr.bf16.mxu1 %v3416_v4  ;;  %v3679_v27 = vsub.s32 %v393_v22, %v395_v19 }
  0x11   : > { %s3369_s17 = smul.u32 216, %s4315_s22  ;;  %s2558_s19 = sshll.u32 %s4315_s22, 5  ;;  %3069 = vmatprep.subr.bf16.mxu0 %v3417_v5 }
  0x12   : > { %s3370_s18 = smul.u32 24, %s4315_s22 }
  0x13   : > { %s310_s29 = scalar_select %p309_p6, %s3603_s10, 15  ;;  %2942 = vmatpush3.bf16.msra.mxu1 %v3416_v4 }
  0x14   : > { %3070 = vmatpush3.bf16.msra.mxu0 %v3417_v5  ;;  %2943 = vmatprep.subr.bf16.mxu1 %v3418_v6  ;;  %s295_s16 = scalar_lea.vmem %s4297_s0, %s3369_s17  ;;  %s300_s30 = scalar_lea.vmem %s4298_s1, %s3370_s18 }
  0x15   : > { %s2557_s8 = sshll.u32 %s310_s29, 1  ;;  %3071 = vmatprep.subr.bf16.mxu0 %v3419_v7  ;;  %s3644_s21 = scalar_lea.vmem %s295_s16, %s2768_s11 }
  0x16   : > { %s3627_s9 = sadd.s32 %s2558_s19, %s2557_s8  ;;  %s3647_s7 = scalar_lea.vmem %s300_s30, %s3603_s10  ;;  %v3659_v14 = vld [vmem:[%s3644_s21] sm:$0xff]   ;;  %v3662_v15 = vld [vmem:[%s3644_s21 + $0x8] sm:$0x1]  ;;  %v3669_v21 = vld [vmem:[%s3644_s21 + $0xc] sm:$0xff]  }
  0x17   : > { %2944 = vmatpush3.bf16.msra.mxu1 %v3418_v6  ;;  %v383_v16 = vld [vmem:[%s3647_s7] sm:$0xff]  ;;  %v3672_v23 = vld [vmem:[%s3644_s21 + $0x14] sm:$0x1]  ;;  %v3677_v26 = vld [vmem:[%s3644_s21 + $0x18] sm:$0xff]   ;;  %v2771_v30 = vunpack.c.l.bf16 %v3659_v14  ;;  %v2772_v31 = vunpack.c.h.bf16 %v3659_v14  ;;  %v354_v32 = vunpack.c.l.bf16 %v3662_v15  ;;  %v355_v33 = vunpack.c.l.bf16 %v3669_v21  ;;  %s305_s17 = scalar_lea.vmem %s4299_s2, %s3370_s18 }
  0x18   : > { %3072 = vmatpush3.bf16.msra.mxu0 %v3419_v7  ;;  %2945 = vmatprep.subr.bf16.mxu1 %v3420_v8  ;;  %v390_v24 = vcombine.high %v383_v16, %v383_v16  ;;  %v3682_v28 = vld [vmem:[%s3644_s21 + $0x20] sm:$0x1]  ;;  %v3692_v34 = vld [vmem:[%s3644_s21 + $0x24] sm:$0xff]   ;;  %v3695_v35 = vld [vmem:[%s3644_s21 + $0x2c] sm:$0x1]  ;;  %v397_v37 = vrot.slane %v383_v16, %v3679_v27  ;;  %v356_v38 = vunpack.c.h.bf16 %v3669_v21  ;;  %v357_v39 = vunpack.c.l.bf16 %v3672_v23 }
  0x19   : > { %3073 = vmatprep.subr.bf16.mxu0 %v3421_v9  ;;  %v2775_v40 = vunpack.c.l.bf16 %v3677_v26  ;;  %v2776_v41 = vunpack.c.h.bf16 %v3677_v26  ;;  %v360_v42 = vunpack.c.l.bf16 %v3682_v28  ;;  %v361_v43 = vunpack.c.l.bf16 %v3692_v34  ;;  %v2790_v44 = vld [vmem:[%s3644_s21 + $0x30] sm:$0xff]   ;;  %v3714_v45 = vld [vmem:[%s3644_s21 + $0x38] sm:$0x1]  ;;  %v3720_v51 = vld [vmem:[%s305_s17] sm:$0xff] }
  0x1a   : > { %v404_v46 = vrot.slane %v390_v24, %v3679_v27  ;;  %v413_v47 = vrot.slane %v397_v37, %v3679_v27  ;;  %v405_v48 = vcombine.high %v397_v37, %v397_v37  ;;  %v362_v49 = vunpack.c.h.bf16 %v3692_v34  ;;  %v3722_v52 = vld [vmem:[%s305_s17 + $0x8] sm:$0xff]  ;;  %v3727_v57 = vld [vmem:[%s305_s17 + $0x10] sm:$0x3]  ;;  %v3733_v62 = vld [vmem:[%s3644_s21 + $0x3c] sm:$0xff]  }
  0x1b   : > { %2946 = vmatpush3.bf16.msra.mxu1 %v3420_v8  ;;  %v363_v50 = vunpack.c.l.bf16 %v3695_v35  ;;  %v2779_v53 = vunpack.c.l.bf16 %v2790_v44  ;;  %v2780_v54 = vunpack.c.h.bf16 %v2790_v44  ;;  %v366_v61 = vunpack.c.l.bf16 %v3714_v45  ;;  %v3751_v8 = vld [vmem:[%s4300_s3 + $0x140] sm:$0xff]   ;;  %v3431_v35 = vld [vmem:[%s4300_s3 + $0x8] sm:$0xff]  }
  0x1c   : > { %3074 = vmatpush3.bf16.msra.mxu0 %v3421_v9  ;;  %2947 = vmatprep.subr.bf16.mxu1 %v3422_v11  ;;  %v3725_v55 = vrot.slane %v404_v46, %v3679_v27  ;;  %v406_v56 = vcombine.high %v404_v46, %v404_v46  ;;  %v464_v58 = vrot.slane %v413_v47, %v3674_v25  ;;  %v367_v1 = vunpack.c.l.bf16 %v3733_v62 }
  0x1d   : > { %3075 = vmatprep.subr.bf16.mxu0 %v3423_v12  ;;  %v427_v59 = vrot.slane %v405_v48, %v3679_v27  ;;  %v435_v60 = vcombine.high %v413_v47, %v413_v47  ;;  %v368_v2 = vunpack.c.h.bf16 %v3733_v62 }
  0x1e   : > { %v480_v0 = vrot.slane %v3725_v55, %v3674_v25  ;;  %v3745_v3 = vrot.slane %v406_v56, %v3679_v27  ;;  %v511_v4 = vmul.f32 %v2771_v30, %v464_v58  ;;  %v512_v5 = vmul.f32 %v2772_v31, %v464_v58 }
  0x1f   : > { %2948 = vmatpush3.bf16.msra.mxu1 %v3422_v11  ;;  %v513_v6 = vmul.f32 %v464_v58, %v354_v32  ;;  %v468_v7 = vrot.slane %v427_v59, %v3674_v25  ;;  %v472_v9 = vrot.slane %v435_v60, %v3674_v25  ;;  %v437_v10 = vcombine.high %v427_v59, %v427_v59  ;;  %v339_v60 = vld [vmem:[%s3644_s21 + $0x44] sm:$0x1] }
  0x20   : > { %3076 = vmatpush3.bf16.msra.mxu0 %v3423_v12  ;;  %2949 = vmatprep.subr.bf16.mxu1 %v3424_v13  ;;  %v523_v11 = vmul.f32 %v2779_v53, %v480_v0  ;;  %v524_v12 = vmul.f32 %v2780_v54, %v480_v0  ;;  %v542_v14 = vmul.f32 %v512_v5, %v3722_v52 }
  0x21   : > { %3077 = vmatprep.subr.bf16.mxu0 %v3425_v20  ;;  %v543_v15 = vmul.f32 %v513_v6, %v3727_v57  ;;  %v514_v16 = vmul.f32 %v468_v7, %v355_v33  ;;  %v515_v17 = vmul.f32 %v468_v7, %v356_v38  ;;  %v516_v18 = vmul.f32 %v468_v7, %v357_v39 }
  0x22   : > { %v517_v19 = vmul.f32 %v2775_v40, %v472_v9  ;;  %v519_v24 = vmul.f32 %v472_v9, %v360_v42  ;;  %v476_v40 = vrot.slane %v437_v10, %v3674_v25  ;;  %v525_v45 = vmul.f32 %v480_v0, %v366_v61 }
  0x23   : > { %2950 = vmatpush3.bf16.msra.mxu1 %v3424_v13  ;;  %v541_v13 = vmul.f32 %v511_v4, %v3720_v51  ;;  %v3760_v22 = vpack.c.bf16 %v543_v15, %v543_v15  ;;  %v544_v23 = vmul.f32 %v514_v16, %v3720_v51  ;;  %v545_v26 = vmul.f32 %v515_v17, %v3722_v52 }
  0x24   : > { %3078 = vmatpush3.bf16.msra.mxu0 %v3425_v20  ;;  %2951 = vmatprep.subr.bf16.mxu1 %v3426_v29  ;;  %v518_v20 = vmul.f32 %v2776_v41, %v472_v9  ;;  %v546_v28 = vmul.f32 %v516_v18, %v3727_v57  ;;  %v520_v59 = vmul.f32 %v476_v40, %v361_v43  ;;  %v369_v17 = vunpack.c.l.bf16 %v339_v60 }
  0x25   : > { %3079 = vmatprep.subr.bf16.mxu0 %v3427_v36  ;;  %v3758_v21 = vpack.c.bf16 %v542_v14, %v541_v13  ;;  %v616_v33 = vshll.u32 %v3760_v22, 16  ;;  %v3772_v37 = vpack.c.bf16 %v545_v26, %v544_v23  ;;  %v521_v0 = vmul.f32 %v476_v40, %v362_v49  ;;  %v3797_v13 = vld [vmem:[%s3644_s21 + $0x48] sm:$0xff]  }
  0x26   : > { %v548_v30 = vmul.f32 %v518_v20, %v3722_v52  ;;  %v3774_v38 = vpack.c.bf16 %v546_v28, %v546_v28  ;;  %v522_v5 = vmul.f32 %v476_v40, %v363_v50  ;;  %v550_v10 = vmul.f32 %v520_v59, %v3720_v51  ;;  %v345_v59 = vld [vmem:[%s3644_s21 + $0x5c] sm:$0x1] }
  0x27   : > { %2952 = vmatpush3.bf16.msra.mxu1 %v3426_v29  ;;  %v547_v29 = vmul.f32 %v517_v19, %v3720_v51  ;;  %v609_v31 = vshrl.u32 %v3758_v21, 16  ;;  %v611_v32 = vshll.u32 %v3758_v21, 16  ;;  %v618_v42 = vrot.slane %v616_v33, 1  ;;  %v3432_v19 = vld [vmem:[%s4300_s3 + $0x148] sm:$0xff]  }
  0x28   : > { %3080 = vmatpush3.bf16.msra.mxu0 %v3427_v36  ;;  %2969 = vmatprep.subr.bf16.mxu1 %v3738_v63  ;;  %v549_v36 = vmul.f32 %v519_v24, %v3727_v57  ;;  %v621_v46 = vshrl.u32 %v3772_v37, 16  ;;  %v623_v47 = vshll.u32 %v3772_v37, 16  ;;  %v628_v48 = vshll.u32 %v3774_v38, 16  ;;  %v3433_v24 = vld [vmem:[%s4300_s3 + $0x10] sm:$0xff]  }
  0x29   : > { %3097 = vmatprep.subr.bf16.mxu0 %v3751_v8  ;;  %v3776_v39 = vpack.c.bf16 %v548_v30, %v547_v29  ;;  %v613_v41 = vrot.slane %v611_v32, 1  ;;  %v551_v43 = vmul.f32 %v521_v0, %v3722_v52  ;;  %v552_v15 = vmul.f32 %v522_v5, %v3727_v57  ;;  %v342_v30 = vld [vmem:[%s3644_s21 + $0x50] sm:$0x1]  ;;  %v3435_v0 = vld [vmem:[%s4300_s3 + $0x18] sm:$0xff]  }
  0x2a   : > { %v3779_v44 = vpack.c.bf16 %v549_v36, %v549_v36  ;;  %v625_v4 = vrot.slane %v623_v47, 1  ;;  %v630_v61 = vrot.slane %v628_v48, 1  ;;  %v553_v34 = vmul.f32 %v523_v11, %v3720_v51  ;;  %v3434_v36 = vld [vmem:[%s4300_s3 + $0x150] sm:$0xff]  }
  0x2b   : > { %v633_v53 = vshrl.u32 %v3776_v39, 16  ;;  %v614_v54 = vor.u32 %v613_v41, %v609_v31  ;;  %v635_v56 = vshll.u32 %v3776_v39, 16  ;;  %v554_v50 = vmul.f32 %v524_v12, %v3722_v52 }
  0x2c   : > { %v640_v58 = vshll.u32 %v3779_v44, 16  ;;  %v626_v14 = vor.u32 %v625_v4, %v621_v46  ;;  %v555_v16 = vmul.f32 %v525_v45, %v3727_v57  ;;  %v3811_v20 = vpack.c.bf16 %v551_v43, %v550_v10  ;;  %v343_v46 = vld [vmem:[%s3644_s21 + $0x54] sm:$0xff]  }
  0x2d   : > { %v619_v6 = vsel %vm607_vm0, %v614_v54, %v618_v42  ;;  %v637_v7 = vrot.slane %v635_v56, 1  ;;  %v3813_v11 = vpack.c.bf16 %v552_v15, %v552_v15  ;;  %v484_v23 = vrot.slane %v3745_v3, %v3674_v25  ;;  %v3436_v10 = vld [vmem:[%s4300_s3 + $0x158] sm:$0xff]  }
  0x2e   : > { %v642_v9 = vrot.slane %v640_v58, 1  ;;  %2953 = vmatprep.mubr.bf16.mxu1 %v619_v6  ;;  %v631_v18 = vsel %vm607_vm0, %v626_v14, %v630_v61  ;;  %v3823_v26 = vpack.c.bf16 %v554_v50, %v553_v34  ;;  %v3825_v28 = vpack.c.bf16 %v555_v16, %v555_v16  ;;  %v3437_v50 = vld [vmem:[%s4300_s3 + $0x20] sm:$0xff]  }
  0x2f   : > { %v638_v49 = vor.u32 %v637_v7, %v633_v53  ;;  %3081 = vmatprep.mubr.bf16.mxu0 %v631_v18  ;;  %2954 = vmatmul.mubr.bf16.vlgmr.msra.gmra.mrb[0].mxu1 %v631_v18  ;;  %v2783_v29 = vunpack.c.l.bf16 %v3797_v13  ;;  %v645_v31 = vshrl.u32 %v3811_v20, 16  ;;  %v647_v32 = vshll.u32 %v3811_v20, 16 }
  0x30   : > { %2970 = vmatpush3.bf16.msra.mxu1 %v3738_v63  ;;  %v652_v33 = vshll.u32 %v3813_v11, 16  ;;  %v526_v40 = vmul.f32 %v484_v23, %v367_v1  ;;  %v657_v41 = vshrl.u32 %v3823_v26, 16  ;;  %v659_v63 = vshll.u32 %v3823_v26, 16 }
  0x31   : > { %v3818_v12 = vsel %vm607_vm0, %v638_v49, %v642_v9  ;;  %2971 = vmatprep.subr.bf16.mxu1 %v3431_v35  ;;  %v664_v42 = vshll.u32 %v3825_v28, 16  ;;  %v527_v45 = vmul.f32 %v484_v23, %v368_v2  ;;  %v649_v47 = vrot.slane %v647_v32, 1  ;;  %v2792_v32 = vld [vmem:[%s3644_s21 + $0x60] sm:$0xff]  }
  0x32   : > { %3082 = vmatmul.mubr.bf16.vlgmr.msra.gmra.mrb[0].mxu0 %v3818_v12  ;;  %2957 = vmatprep.mubr.bf16.mxu1 %v3818_v12  ;;  %v654_v48 = vrot.slane %v652_v33, 1  ;;  %v528_v1 = vmul.f32 %v484_v23, %v369_v17  ;;  %v661_v53 = vrot.slane %v659_v63, 1  ;;  %v2784_v58 = vunpack.c.h.bf16 %v3797_v13  ;;  %v3892_v33 = vld.sshfl [vmem:[%s3647_s7 + $0x8] sm:$0x11 pattern:$0x75316420] }
  0x33   : > { %3098 = vmatpush3.bf16.msra.mxu0 %v3751_v8  ;;  %v556_v8 = vmul.f32 %v526_v40, %v3720_v51  ;;  %v666_v54 = vrot.slane %v664_v42, 1  ;;  %v557_v56 = vmul.f32 %v527_v45, %v3722_v52  ;;  %v650_v60 = vor.u32 %v649_v47, %v645_v31 }
  0x34   : > { %3099 = vmatprep.subr.bf16.mxu0 %v3432_v19  ;;  %2972 = vmatpush3.bf16.msra.mxu1 %v3431_v35  ;;  %v558_v62 = vmul.f32 %v528_v1, %v3727_v57  ;;  %v372_v2 = vunpack.c.l.bf16 %v342_v30  ;;  %v436_v4 = vcombine.high %v3725_v55, %v3725_v55  ;;  %v662_v61 = vor.u32 %v661_v53, %v657_v41 }
  0x35   : > { %2973 = vmatprep.subr.bf16.mxu1 %v3433_v24  ;;  %v3857_v5 = vpack.c.bf16 %v557_v56, %v556_v8  ;;  %v373_v6 = vunpack.c.l.bf16 %v343_v46  ;;  %v374_v7 = vunpack.c.h.bf16 %v343_v46  ;;  %v3860_v9 = vsel %vm607_vm0, %v650_v60, %v654_v48  ;;  %v348_v46 = vld [vmem:[%s3644_s21 + $0x68] sm:$0x1] }
  0x36   : > { %v3865_v55 = vpack.c.bf16 %v558_v62, %v558_v62  ;;  %v488_v13 = vrot.slane %v436_v4, %v3674_v25  ;;  %v375_v14 = vunpack.c.l.bf16 %v345_v59  ;;  %3085 = vmatprep.mubr.bf16.mxu0 %v3860_v9  ;;  %v3871_v43 = vsel %vm607_vm0, %v662_v61, %v666_v54  ;;  %v3439_v48 = vld [vmem:[%s4300_s3 + $0x28] sm:$0xff]  }
  0x37   : > { %3100 = vmatpush3.bf16.msra.mxu0 %v3432_v19  ;;  %2958 = vmatmul.mubr.bf16.gmra.mrb[4].mxu1 %v3860_v9  ;;  %v669_v15 = vshrl.u32 %v3857_v5, 16  ;;  %v671_v34 = vshll.u32 %v3857_v5, 16  ;;  %v438_v49 = vcombine.high %v3745_v3, %v3745_v3  ;;  %v3438_v3 = vld [vmem:[%s4300_s3 + $0x160] sm:$0xff]   ;;  %v2787_v53 = vunpack.c.l.bf16 %v2792_v32  ;;  %v3440_v59 = vld [vmem:[%s4300_s3 + $0x168] sm:$0xff]  }
  0x38   : > { %3101 = vmatprep.subr.bf16.mxu0 %v3434_v36  ;;  %2974 = vmatpush3.bf16.msra.mxu1 %v3433_v24  ;;  %v676_v35 = vshll.u32 %v3865_v55, 16  ;;  %v529_v16 = vmul.f32 %v2783_v29, %v488_v13  ;;  %v530_v17 = vmul.f32 %v2784_v58, %v488_v13  ;;  %v531_v18 = vmul.f32 %v488_v13, %v372_v2 }
  0x39   : > { %2975 = vmatprep.subr.bf16.mxu1 %v3435_v0  ;;  %v673_v19 = vrot.slane %v671_v34, 1  ;;  %v492_v23 = vrot.slane %v438_v49, %v3674_v25  ;;  %2961 = vmatprep.mubr.bf16.mxu1 %v3871_v43  ;;  %v2788_v2 = vunpack.c.h.bf16 %v2792_v32  ;;  %v378_v4 = vunpack.c.l.bf16 %v348_v46  ;;  %v3441_v49 = vld [vmem:[%s4300_s3 + $0x30] sm:$0xff]  }
  0x3a   : > { %3086 = vmatmul.mubr.bf16.gmra.mrb[4].mxu0 %v3871_v43  ;;  %v678_v24 = vrot.slane %v676_v35, 1  ;;  %v559_v30 = vmul.f32 %v529_v16, %v3720_v51  ;;  %v560_v29 = vmul.f32 %v530_v17, %v3722_v52  ;;  %v561_v31 = vmul.f32 %v531_v18, %v3727_v57  ;;  %v3442_v18 = vld [vmem:[%s4300_s3 + $0x170] sm:$0xff]  }
  0x3b   : > { %3102 = vmatpush3.bf16.msra.mxu0 %v3434_v36  ;;  %v674_v36 = vor.u32 %v673_v19, %v669_v15  ;;  %v532_v40 = vmul.f32 %v492_v23, %v373_v6  ;;  %v533_v41 = vmul.f32 %v492_v23, %v374_v7  ;;  %v534_v63 = vmul.f32 %v492_v23, %v375_v14 }
  0x3c   : > { %3103 = vmatprep.subr.bf16.mxu0 %v3436_v10  ;;  %2976 = vmatpush3.bf16.msra.mxu1 %v3435_v0  ;;  %v3894_v42 = vpack.c.bf16 %v560_v29, %v559_v30  ;;  %v3896_v45 = vpack.c.bf16 %v561_v31, %v561_v31  ;;  %v453_v61 = vrot.slane %v3892_v33, %v3679_v27  ;;  %v3443_v31 = vld [vmem:[%s4300_s3 + $0x38] sm:$0xff]  }
  0x3d   : > { %v3900_v47 = vsel %vm607_vm0, %v674_v36, %v678_v24  ;;  %2977 = vmatprep.subr.bf16.mxu1 %v3437_v50  ;;  %v562_v1 = vmul.f32 %v532_v40, %v3720_v51  ;;  %v563_v8 = vmul.f32 %v533_v41, %v3722_v52  ;;  %v564_v60 = vmul.f32 %v534_v63, %v3727_v57  ;;  %v3444_v41 = vld [vmem:[%s4300_s3 + $0x178] sm:$0xff]  }
  0x3e   : > { %3089 = vmatprep.mubr.bf16.mxu0 %v3900_v47  ;;  %v681_v54 = vshrl.u32 %v3894_v42, 16  ;;  %v683_v56 = vshll.u32 %v3894_v42, 16  ;;  %v688_v58 = vshll.u32 %v3896_v45, 16  ;;  %v496_v14 = vrot.slane %v453_v61, %v3674_v25 }
  0x3f   : > { %3104 = vmatpush3.bf16.msra.mxu0 %v3436_v10  ;;  %2962 = vmatmul.mubr.bf16.gmra.mrb[8].mxu1 %v3900_v47  ;;  %v3916_v62 = vpack.c.bf16 %v563_v8, %v562_v1  ;;  %v3920_v7 = vpack.c.bf16 %v564_v60, %v564_v60  ;;  %v446_v36 = vcombine.high %v3892_v33, %v3892_v33  ;;  %v3445_v33 = vld [vmem:[%s4300_s3 + $0x80] sm:$0xff]  }
  0x40   : > { %3105 = vmatprep.subr.bf16.mxu0 %v3438_v3  ;;  %v685_v0 = vrot.slane %v683_v56, 1  ;;  %v690_v6 = vrot.slane %v688_v58, 1  ;;  %2978 = vmatpush3.bf16.msra.mxu1 %v3437_v50  ;;  %v535_v50 = vmul.f32 %v2787_v53, %v496_v14  ;;  %v536_v16 = vmul.f32 %v2788_v2, %v496_v14  ;;  %v3446_v1 = vld [vmem:[%s4300_s3 + $0x180] sm:$0xff]  }
  0x41   : > { %2979 = vmatprep.subr.bf16.mxu1 %v3439_v48  ;;  %v693_v10 = vshrl.u32 %v3916_v62, 16  ;;  %v695_v13 = vshll.u32 %v3916_v62, 16  ;;  %v700_v34 = vshll.u32 %v3920_v7, 16  ;;  %v537_v17 = vmul.f32 %v496_v14, %v378_v4  ;;  %v349_v4 = vld [vmem:[%s3644_s21 + $0x6c] sm:$0xff]  }
  0x42   : > { %v686_v15 = vor.u32 %v685_v0, %v681_v54  ;;  %v565_v24 = vmul.f32 %v535_v50, %v3720_v51  ;;  %v566_v30 = vmul.f32 %v536_v16, %v3722_v52  ;;  %v1039_v53 = vrot.slane %v3772_v37, 1 }
  0x43   : > { %3106 = vmatpush3.bf16.msra.mxu0 %v3438_v3  ;;  %v697_v35 = vrot.slane %v695_v13, 1  ;;  %v702_v3 = vrot.slane %v700_v34, 1  ;;  %v567_v29 = vmul.f32 %v537_v17, %v3727_v57  ;;  %v1040_v54 = vrot.slane %v3774_v38, 1  ;;  %v3449_v13 = vld [vmem:[%s4300_s3 + $0x90] sm:$0xff]  }
  0x44   : > { %3107 = vmatprep.subr.bf16.mxu0 %v3440_v59  ;;  %v3933_v19 = vsel %vm607_vm0, %v686_v15, %v690_v6  ;;  %2980 = vmatpush3.bf16.msra.mxu1 %v3439_v48  ;;  %v3948_v40 = vpack.c.bf16 %v566_v30, %v565_v24  ;;  %v1036_v56 = vrot.slane %v3758_v21, 1  ;;  %v460_v60 = vrot.slane %v446_v36, %v3679_v27  ;;  %v3450_v36 = vld [vmem:[%s4300_s3 + $0x190] sm:$0xff]  }
  0x45   : > { %3090 = vmatmul.mubr.bf16.gmra.mrb[8].mxu0 %v3933_v19  ;;  %2965 = vmatprep.mubr.bf16.mxu1 %v3933_v19  ;;  %v698_v23 = vor.u32 %v697_v35, %v693_v10  ;;  %v3955_v63 = vpack.c.bf16 %v567_v29, %v567_v29  ;;  %v379_v6 = vunpack.c.l.bf16 %v349_v4  ;;  %v380_v10 = vunpack.c.h.bf16 %v349_v4 }
  0x46   : > { %2981 = vmatprep.subr.bf16.mxu1 %v3441_v49  ;;  %v1425_v46 = vshrl.u32 %v3948_v40, 16  ;;  %v1427_v48 = vshll.u32 %v3948_v40, 16  ;;  %v3977_v38 = vsel %vm1035_vm1, %v1039_v53, %v1040_v54  ;;  %v500_v27 = vrot.slane %v460_v60, %v3674_v25 }
  0x47   : > { %3108 = vmatpush3.bf16.msra.mxu0 %v3440_v59  ;;  %v3944_v32 = vsel %vm607_vm0, %v698_v23, %v702_v3  ;;  %v1432_v8 = vshll.u32 %v3955_v63, 16  ;;  %v1037_v59 = vrot.slane %v3760_v22, 1  ;;  %v1042_v34 = vrot.slane %v3776_v39, 1  ;;  %v351_v3 = vld [vmem:[%s3644_s21 + $0x74] sm:$0x1]  ;;  %s2559_s21 = sshll.u32 %s3627_s9, 3 }
  0x48   : > { %3109 = vmatprep.subr.bf16.mxu0 %v3442_v18  ;;  %3093 = vmatprep.mubr.bf16.mxu0 %v3944_v32  ;;  %v1429_v58 = vrot.slane %v1427_v48, 1  ;;  %v538_v14 = vmul.f32 %v500_v27, %v379_v6  ;;  %v539_v15 = vmul.f32 %v500_v27, %v380_v10  ;;  %v1043_v25 = vrot.slane %v3779_v44, 1  ;;  %v3448_v44 = vld [vmem:[%s4300_s3 + $0x188] sm:$0xff]   ;;  %v3454_v6 = vld [vmem:[%s4300_s3 + $0x1a0] sm:$0xff]   ;;  %s4231_s30 = scalar_lea.vmem %s4303_s6, %s2559_s21 }
  0x49   : > { %2966 = vmatmul.mubr.bf16.gmra.mrb[12].mxu1 %v3944_v32  ;;  %v1434_v2 = vrot.slane %v1432_v8, 1  ;;  %v3974_v0 = vsel %vm1035_vm1, %v1036_v56, %v1037_v59  ;;  %v1046_v35 = vrot.slane %v3813_v11, 1  ;;  %v381_v11 = vunpack.c.l.bf16 %v351_v3  ;;  %v3455_v59 = vld [vmem:[%s4300_s3 + $0xa8] sm:$0xff]   ;;  %v3465_v3 = vld [vmem:[%s4300_s3 + $0xd0] sm:$0xff]  }
  0x4a   : > { %2982 = vmatpush3.bf16.msra.mxu1 %v3441_v49  ;;  %2985 = vmatprep.mubr.bf16.mxu1 %v3758_v21  ;;  %v1430_v61 = vor.u32 %v1429_v58, %v1425_v46  ;;  %v3447_v21 = vld [vmem:[%s4300_s3 + $0x88] sm:$0xff]   ;;  %v1045_v49 = vrot.slane %v3811_v20, 1  ;;  %v568_v50 = vmul.f32 %v538_v14, %v3720_v51  ;;  %v569_v16 = vmul.f32 %v539_v15, %v3722_v52  ;;  %v3451_v52 = vld [vmem:[%s4300_s3 + $0x98] sm:$0xff]  }
  0x4b   : > { %3110 = vmatpush3.bf16.msra.mxu0 %v3442_v18  ;;  %2983 = vmatprep.subr.bf16.mxu1 %v3443_v31  ;;  %v4002_v18 = vsel %vm1035_vm1, %v1042_v34, %v1043_v25  ;;  %v540_v24 = vmul.f32 %v500_v27, %v381_v11  ;;  %v1048_v30 = vrot.slane %v3823_v26, 1  ;;  %v1049_v29 = vrot.slane %v3825_v28, 1  ;;  %v3453_v28 = vld [vmem:[%s4300_s3 + $0xa0] sm:$0xff]   ;;  %v3456_v14 = vld [vmem:[%s4300_s3 + $0x1a8] sm:$0xff]   ;;  %v3459_v15 = vld [vmem:[%s4300_s3 + $0xb8] sm:$0xff]  }
  0x4c   : > { %3111 = vmatprep.subr.bf16.mxu0 %v3444_v41  ;;  %v3984_v22 = vsel %vm607_vm0, %v1430_v61, %v1434_v2  ;;  %v3999_v17 = vpack.c.bf16 %v569_v16, %v568_v50  ;;  %v4009_v23 = vsel %vm1035_vm1, %v1045_v49, %v1046_v35  ;;  %v1054_v4 = vrot.slane %v3894_v42, 1  ;;  %v3458_v49 = vld [vmem:[%s4300_s3 + $0x1b0] sm:$0xff]   ;;  %v3461_v35 = vld [vmem:[%s4300_s3 + $0xc0] sm:$0xff]  }
  0x4d   : > { %3094 = vmatmul.mubr.bf16.gmra.mrb[12].mxu0 %v3984_v22  ;;  %v570_v46 = vmul.f32 %v540_v24, %v3727_v57  ;;  %v4033_v53 = vsel %vm1035_vm1, %v1048_v30, %v1049_v29  ;;  %v3452_v57 = vld [vmem:[%s4300_s3 + $0x198] sm:$0xff]   ;;  %v1055_v61 = vrot.slane %v3896_v45, 1  ;;  %v1057_v10 = vrot.slane %v3916_v62, 1  ;;  %v3457_v45 = vld [vmem:[%s4300_s3 + $0xb0] sm:$0xff]   ;;  %v3462_v16 = vld [vmem:[%s4300_s3 + $0x1c0] sm:$0xff]  }
  0x4e   : > { %2984 = vmatpush3.bf16.msra.mxu1 %v3443_v31  ;;  %3113 = vmatprep.mubr.bf16.mxu0 %v3977_v38  ;;  %v1980_v51 = vshll.u32 %v3999_v17, 16  ;;  %v1051_v31 = vrot.slane %v3857_v5, 1  ;;  %v1978_v48 = vshrl.u32 %v3999_v17, 16  ;;  %v2170_v8 = vrot.slane %v3999_v17, 1  ;;  %v3466_v11 = vld [vmem:[%s4300_s3 + $0x1d0] sm:$0xff]   ;;  %v3471_v24 = vld [vmem:[%s4300_s3 + $0xe8] sm:$0xff]  }
  0x4f   : > { %3112 = vmatpush3.bf16.msra.mxu0 %v3444_v41  ;;  %3001 = vmatprep.subr.bf16.mxu1 %v3445_v33  ;;  %v1052_v41 = vrot.slane %v3865_v55, 1  ;;  %v1617_v34 = vrot.slane %v3948_v40, 1  ;;  %v1618_v25 = vrot.slane %v3955_v63, 1  ;;  %v3460_v63 = vld [vmem:[%s4300_s3 + $0x1b8] sm:$0xff]   ;;  %v3470_v30 = vld [vmem:[%s4300_s3 + $0x1e0] sm:$0xff]   ;;  %v3473_v29 = vld [vmem:[%s4300_s3 + $0xf0] sm:$0xff]  }
  0x50   : > { %3129 = vmatprep.subr.bf16.mxu0 %v3446_v1 }
  0x51   : > { %2986 = vmatmul.mubr.bf16.vlgmr.msra.gmra.mrb[0].mxu1 %v3772_v37  ;;  %v4039_v55 = vsel %vm1035_vm1, %v1051_v31, %v1052_v41  ;;  %v4089_v50 = vsel %vm1035_vm1, %v1617_v34, %v1618_v25  ;;  %v3472_v31 = vld [vmem:[%s4300_s3 + $0x1e8] sm:$0xff]   ;;  %v3474_v41 = vld [vmem:[%s4300_s3 + $0x1f0] sm:$0xff]   ;;  %v4221_v25 = vld [vmem:[%s4302_s5] ss:$0 sm:$0xff] }
  0x52   : > { %3002 = vmatpush3.bf16.msra.mxu1 %v3445_v33  ;;  %2989 = vmatprep.mubr.bf16.mxu1 %v3776_v39  ;;  %v1982_v33 = vrot.slane %v1980_v51, 1  ;;  %v3469_v51 = vld [vmem:[%s4300_s3 + $0xe0] sm:$0xff]  }
  0x53   : > { %3003 = vmatprep.subr.bf16.mxu1 %v3447_v21 }
  0x54   : > { %v1983_v54 = vor.u32 %v1982_v33, %v1978_v48  ;;  %v3476_v48 = vld [vmem:[%s4300_s3 + $0x1f8] sm:$0xff]   ;;  %v3478_v33 = vld [vmem:[%s4300_s3 + $0x208] sm:$0xff]  }
  0x55   : > { %3114 = vmatmul.mubr.bf16.vlgmr.msra.gmra.mrb[0].mxu0 %v4002_v18 }
  0x56   : > { %3004 = vmatpush3.bf16.msra.mxu1 %v3447_v21  ;;  %3130 = vmatpush3.bf16.msra.mxu0 %v3446_v1  ;;  %v590_v1 = vpack.c.bf16 %v570_v46, %v570_v46  ;;  %v1058_v21 = vrot.slane %v3920_v7, 1  ;;  %v3477_v46 = vld [vmem:[%s4300_s3 + $0x200] sm:$0xff]  }
  0x57   : > { %3005 = vmatprep.subr.bf16.mxu1 %v3449_v13  ;;  %3117 = vmatprep.mubr.bf16.mxu0 %v4009_v23 }
  0x58   : > { %3131 = vmatprep.subr.bf16.mxu0 %v3448_v44  ;;  %v1985_v56 = vshll.u32 %v590_v1, 16  ;;  %v2171_v58 = vrot.slane %v590_v1, 1  ;;  %v4071_v7 = vsel %vm1035_vm1, %v1057_v10, %v1058_v21 }
  0x59   : > { %2990 = vmatmul.mubr.bf16.gmra.mrb[4].mxu1 %v3811_v20 }
  0x5a   : > { %3006 = vmatpush3.bf16.msra.mxu1 %v3449_v13  ;;  %2993 = vmatprep.mubr.bf16.mxu1 %v3823_v26  ;;  %v1987_v60 = vrot.slane %v1985_v56, 1  ;;  %v4047_v2 = vsel %vm1035_vm1, %v2170_v8, %v2171_v58  ;;  %v4065_v13 = vsel %vm1035_vm1, %v1054_v4, %v1055_v61 }
  0x5b   : > { %3007 = vmatprep.subr.bf16.mxu1 %v3451_v52  ;;  %3132 = vmatpush3.bf16.msra.mxu0 %v3448_v44  ;;  %v3464_v44 = vld [vmem:[%s4300_s3 + $0x1c8] sm:$0xff]  }
  0x5c   : > { %3133 = vmatprep.subr.bf16.mxu0 %v3450_v36  ;;  %v4058_v27 = vsel %vm607_vm0, %v1983_v54, %v1987_v60 }
  0x5d   : > { %3118 = vmatmul.mubr.bf16.gmra.mrb[4].mxu0 %v4033_v53 }
  0x5e   : > { %3008 = vmatpush3.bf16.msra.mxu1 %v3451_v52  ;;  %3121 = vmatprep.mubr.bf16.mxu0 %v4039_v55  ;;  %v3468_v52 = vld [vmem:[%s4300_s3 + $0x1d8] sm:$0xff]  }
  0x5f   : > { %3009 = vmatprep.subr.bf16.mxu1 %v3453_v28  ;;  %3134 = vmatpush3.bf16.msra.mxu0 %v3450_v36  ;;  %v3475_v36 = vld [vmem:[%s4300_s3 + $0xf8] sm:$0xff]  }
  0x60   : > { %3135 = vmatprep.subr.bf16.mxu0 %v3452_v57 }
  0x61   : > { %2994 = vmatmul.mubr.bf16.gmra.mrb[8].mxu1 %v3857_v5 }
  0x62   : > { %3010 = vmatpush3.bf16.msra.mxu1 %v3453_v28  ;;  %2997 = vmatprep.mubr.bf16.mxu1 %v3894_v42 }
  0x63   : > { %3011 = vmatprep.subr.bf16.mxu1 %v3455_v59  ;;  %3136 = vmatpush3.bf16.msra.mxu0 %v3452_v57 }
  0x64   : > { %3137 = vmatprep.subr.bf16.mxu0 %v3454_v6 }
  0x65   : > { %3122 = vmatmul.mubr.bf16.gmra.mrb[8].mxu0 %v4065_v13 }
  0x66   : > { %3012 = vmatpush3.bf16.msra.mxu1 %v3455_v59  ;;  %3125 = vmatprep.mubr.bf16.mxu0 %v4071_v7 }
  0x67   : > { %3013 = vmatprep.subr.bf16.mxu1 %v3457_v45  ;;  %3138 = vmatpush3.bf16.msra.mxu0 %v3454_v6 }
  0x68   : > { %3139 = vmatprep.subr.bf16.mxu0 %v3456_v14 }
  0x69   : > { %2998 = vmatmul.mubr.bf16.gmra.mrb[12].mxu1 %v3916_v62 }
  0x6a   : > { %3014 = vmatpush3.bf16.msra.mxu1 %v3457_v45  ;;  %3017 = vmatprep.mubr.bf16.mxu1 %v3974_v0  ;;  %v3463_v0 = vld [vmem:[%s4300_s3 + $0xc8] sm:$0xff]  }
  0x6b   : > { %3015 = vmatprep.subr.bf16.mxu1 %v3459_v15  ;;  %3140 = vmatpush3.bf16.msra.mxu0 %v3456_v14 }
  0x6c   : > { %3141 = vmatprep.subr.bf16.mxu0 %v3458_v49 }
  0x6d   : > { %3126 = vmatmul.mubr.bf16.gmra.mrb[12].mxu0 %v4089_v50 }
  0x6e   : > { %3016 = vmatpush3.bf16.msra.mxu1 %v3459_v15  ;;  %3145 = vmatprep.mubr.bf16.mxu0 %v3776_v39 }
  0x6f   : > { %3033 = vmatprep.subr.bf16.mxu1 %v3461_v35  ;;  %3142 = vmatpush3.bf16.msra.mxu0 %v3458_v49 }
  0x70   : > { %3143 = vmatprep.subr.bf16.mxu0 %v3460_v63 }
  0x71   : > { %3018 = vmatmul.mubr.bf16.vlgmr.msra.gmra.mrb[0].mxu1 %v3977_v38  ;;  %v3467_v38 = vld [vmem:[%s4300_s3 + $0xd8] sm:$0xff]  }
  0x72   : > { %3034 = vmatpush3.bf16.msra.mxu1 %v3461_v35  ;;  %3021 = vmatprep.mubr.bf16.mxu1 %v4002_v18 }
  0x73   : > { %3035 = vmatprep.subr.bf16.mxu1 %v3463_v0  ;;  %3144 = vmatpush3.bf16.msra.mxu0 %v3460_v63 }
  0x74   : > { %3161 = vmatprep.subr.bf16.mxu0 %v3462_v16 }
  0x76   : > { %3036 = vmatpush3.bf16.msra.mxu1 %v3463_v0  ;;  %3146 = vmatmul.mubr.bf16.vlgmr.msra.gmra.mrb[0].mxu0 %v3811_v20 }
  0x77   : > { %3037 = vmatprep.subr.bf16.mxu1 %v3465_v3  ;;  %3162 = vmatpush3.bf16.msra.mxu0 %v3462_v16 }
  0x78   : > { %3149 = vmatprep.mubr.bf16.mxu0 %v3823_v26  ;;  %3163 = vmatprep.subr.bf16.mxu0 %v3464_v44 }
  0x79   : > { %3022 = vmatmul.mubr.bf16.gmra.mrb[4].mxu1 %v4009_v23 }
  0x7a   : > { %3038 = vmatpush3.bf16.msra.mxu1 %v3465_v3  ;;  %3025 = vmatprep.mubr.bf16.mxu1 %v4033_v53 }
  0x7b   : > { %3039 = vmatprep.subr.bf16.mxu1 %v3467_v38  ;;  %3164 = vmatpush3.bf16.msra.mxu0 %v3464_v44 }
  0x7c   : > { %3165 = vmatprep.subr.bf16.mxu0 %v3466_v11 }
  0x7e   : > { %3040 = vmatpush3.bf16.msra.mxu1 %v3467_v38  ;;  %3150 = vmatmul.mubr.bf16.gmra.mrb[4].mxu0 %v3857_v5 }
  0x7f   : > { %3041 = vmatprep.subr.bf16.mxu1 %v3469_v51  ;;  %3166 = vmatpush3.bf16.msra.mxu0 %v3466_v11 }
  0x80   : > { %3153 = vmatprep.mubr.bf16.mxu0 %v3894_v42  ;;  %3167 = vmatprep.subr.bf16.mxu0 %v3468_v52 }
  0x81   : > { %3026 = vmatmul.mubr.bf16.gmra.mrb[8].mxu1 %v4039_v55 }
  0x82   : > { %3042 = vmatpush3.bf16.msra.mxu1 %v3469_v51  ;;  %3029 = vmatprep.mubr.bf16.mxu1 %v4065_v13 }
  0x83   : > { %3043 = vmatprep.subr.bf16.mxu1 %v3471_v24  ;;  %3168 = vmatpush3.bf16.msra.mxu0 %v3468_v52 }
  0x84   : > { %3169 = vmatprep.subr.bf16.mxu0 %v3470_v30 }
  0x86   : > { %3044 = vmatpush3.bf16.msra.mxu1 %v3471_v24  ;;  %3154 = vmatmul.mubr.bf16.gmra.mrb[8].mxu0 %v3916_v62 }
  0x87   : > { %3045 = vmatprep.subr.bf16.mxu1 %v3473_v29  ;;  %3170 = vmatpush3.bf16.msra.mxu0 %v3470_v30 }
  0x88   : > { %3157 = vmatprep.mubr.bf16.mxu0 %v3948_v40  ;;  %3171 = vmatprep.subr.bf16.mxu0 %v3472_v31 }
  0x89   : > { %3030 = vmatmul.mubr.bf16.gmra.mrb[12].mxu1 %v4071_v7 }
  0x8a   : > { %3046 = vmatpush3.bf16.msra.mxu1 %v3473_v29  ;;  %3049 = vmatprep.mubr.bf16.mxu1 %v3772_v37  ;;  %v3479_v37 = vld [vmem:[%s4300_s3 + $0x210] sm:$0xff]  }
  0x8b   : > { %3047 = vmatprep.subr.bf16.mxu1 %v3475_v36  ;;  %3172 = vmatpush3.bf16.msra.mxu0 %v3472_v31 }
  0x8c   : > { %3173 = vmatprep.subr.bf16.mxu0 %v3474_v41 }
  0x8e   : > { %3048 = vmatpush3.bf16.msra.mxu1 %v3475_v36  ;;  %3158 = vmatmul.mubr.bf16.gmra.mrb[12].mxu0 %v3999_v17 }
  0x8f   : > { %3225 = vmatprep.subr.bf16.mxu1 %v3477_v46  ;;  %3174 = vmatpush3.bf16.msra.mxu0 %v3474_v41 }
  0x90   : > { %3177 = vmatprep.mubr.bf16.mxu0 %v3818_v12  ;;  %3175 = vmatprep.subr.bf16.mxu0 %v3476_v48  ;;  %v3480_v12 = vld [vmem:[%s4300_s3 + $0x218] sm:$0xff]  }
  0x91   : > { %3050 = vmatmul.mubr.bf16.vlgmr.msra.gmra.mrb[0].mxu1 %v3776_v39  ;;  %v3481_v39 = vld [vmem:[%s4300_s3 + $0x220] sm:$0xff]  }
  0x92   : > { %3233 = vmatpush3.bf16.msra.mxu1 %v3477_v46  ;;  %3053 = vmatprep.mubr.bf16.mxu1 %v3811_v20  ;;  %v3482_v20 = vld [vmem:[%s4300_s3 + $0x228] sm:$0xff]  }
  0x93   : > { %3226 = vmatprep.subr.bf16.mxu1 %v3478_v33  ;;  %3176 = vmatpush3.bf16.msra.mxu0 %v3476_v48 }
  0x94   : > { %3193 = vmatprep.subr.bf16.mxu0 %v3477_v46 }
  0x96   : > { %3234 = vmatpush3.bf16.msra.mxu1 %v3478_v33  ;;  %3178 = vmatmul.mubr.bf16.vlgmr.msra.gmra.mrb[0].mxu0 %v3860_v9 }
  0x97   : > { %3227 = vmatprep.subr.bf16.mxu1 %v3479_v37  ;;  %3194 = vmatpush3.bf16.msra.mxu0 %v3477_v46 }
  0x98   : > { %3181 = vmatprep.mubr.bf16.mxu0 %v3871_v43  ;;  %3195 = vmatprep.subr.bf16.mxu0 %v3478_v33 }
  0x99   : > { %3054 = vmatmul.mubr.bf16.gmra.mrb[4].mxu1 %v3823_v26  ;;  %v3483_v26 = vld [vmem:[%s4300_s3 + $0x230] sm:$0xff]  }
  0x9a   : > { %3235 = vmatpush3.bf16.msra.mxu1 %v3479_v37  ;;  %3057 = vmatprep.mubr.bf16.mxu1 %v3857_v5  ;;  %v3484_v5 = vld [vmem:[%s4300_s3 + $0x238] sm:$0xff]  }
  0x9b   : > { %3228 = vmatprep.subr.bf16.mxu1 %v3480_v12  ;;  %3196 = vmatpush3.bf16.msra.mxu0 %v3478_v33 }
  0x9c   : > { %3197 = vmatprep.subr.bf16.mxu0 %v3479_v37 }
  0x9e   : > { %3236 = vmatpush3.bf16.msra.mxu1 %v3480_v12  ;;  %3182 = vmatmul.mubr.bf16.gmra.mrb[4].mxu0 %v3900_v47 }
  0x9f   : > { %3229 = vmatprep.subr.bf16.mxu1 %v3481_v39  ;;  %3198 = vmatpush3.bf16.msra.mxu0 %v3479_v37 }
  0xa0   : > { %3185 = vmatprep.mubr.bf16.mxu0 %v3933_v19  ;;  %3199 = vmatprep.subr.bf16.mxu0 %v3480_v12 }
  0xa1   : > { %3058 = vmatmul.mubr.bf16.gmra.mrb[8].mxu1 %v3894_v42 }
  0xa2   : > { %3237 = vmatpush3.bf16.msra.mxu1 %v3481_v39  ;;  %3061 = vmatprep.mubr.bf16.mxu1 %v3916_v62 }
  0xa3   : > { %3230 = vmatprep.subr.bf16.mxu1 %v3482_v20  ;;  %3200 = vmatpush3.bf16.msra.mxu0 %v3480_v12 }
  0xa4   : > { %3201 = vmatprep.subr.bf16.mxu0 %v3481_v39 }
  0xa6   : > { %3238 = vmatpush3.bf16.msra.mxu1 %v3482_v20  ;;  %3186 = vmatmul.mubr.bf16.gmra.mrb[8].mxu0 %v3944_v32 }
  0xa7   : > { %3231 = vmatprep.subr.bf16.mxu1 %v3483_v26  ;;  %3202 = vmatpush3.bf16.msra.mxu0 %v3481_v39 }
  0xa8   : > { %3189 = vmatprep.mubr.bf16.mxu0 %v3984_v22  ;;  %3203 = vmatprep.subr.bf16.mxu0 %v3482_v20 }
  0xa9   : > { %3062 = vmatmul.mubr.bf16.gmra.mrb[12].mxu1 %v3948_v40 }
  0xaa   : > { %3239 = vmatpush3.bf16.msra.mxu1 %v3483_v26  ;;  %3217 = vmatprep.mubr.bf16.mxu1 %v4065_v13 }
  0xab   : > { %3232 = vmatprep.subr.bf16.mxu1 %v3484_v5  ;;  %3204 = vmatpush3.bf16.msra.mxu0 %v3482_v20 }
  0xac   : > { %3205 = vmatprep.subr.bf16.mxu0 %v3483_v26 }
  0xae   : > { %3240 = vmatpush3.bf16.msra.mxu1 %v3484_v5  ;;  %3190 = vmatmul.mubr.bf16.gmra.mrb[12].mxu0 %v4058_v27  ;;  %v4216_v27 = vld [vmem:[%s4301_s4] ss:$0 sm:$0xff] }
  0xaf   : > { %3206 = vmatpush3.bf16.msra.mxu0 %v3483_v26  ;;  %3209 = vmatprep.mubr.bf16.mxu0 %v4002_v18 }
  0xb0   : > { %3207 = vmatprep.subr.bf16.mxu0 %v3484_v5 }
  0xb1   : > { %3218 = vmatmul.mubr.bf16.vlgmr.msra.gmra.mrb[16].mxu1 %v4071_v7 }
  0xb2   : > { %3221 = vmatprep.mubr.bf16.mxu1 %v4089_v50 }
  0xb3   : > { %3208 = vmatpush3.bf16.msra.mxu0 %v3484_v5 }
  0xb6   : > { %3210 = vmatmul.mubr.bf16.vlgmr.msra.gmra.mrb[0].mxu0 %v4009_v23 }
  0xb7   : > { %3213 = vmatprep.mubr.bf16.mxu0 %v4033_v53 }
  0xb9   : > { %3222 = vmatmul.mubr.bf16.gmra.mrb[20].mxu1 %v4047_v2 }
  0xbe   : > { %3214 = vmatmul.mubr.bf16.gmra.mrb[4].mxu0 %v4039_v55 }
 0x164   : > { %v3051_v9 = vpop.f32.mrb[0].mxu1 }
 0x165   : > { %v1345_v43 = vpop.f32.mrb[1].mxu1 }
 0x166   : > { %v3052_v42 = vpop.f32.mrb[2].mxu1 }
 0x167   : > { %v4203_v47 = vpop.f32.mrb[3].mxu1 }
 0x16c   : > { %v4205_v62 = vpop.f32.mrb[4].mxu1 }
 0x16d   : > { %v4207_v19 = vpop.f32.mrb[5].mxu1 }
 0x16e   : > { %v4209_v32 = vpop.f32.mrb[6].mxu1 }
 0x16f   : > { %v4211_v40 = vpop.f32.mrb[7].mxu1 }
 0x174   : > { %v3059_v22 = vpop.f32.mrb[8].mxu1 }
 0x175   : > { %v1377_v17 = vpop.f32.mrb[9].mxu1 }
 0x176   : > { %v3060_v18 = vpop.f32.mrb[10].mxu1 }
 0x177   : > { %v1380_v23 = vpop.f32.mrb[11].mxu1 }
 0x179   : > { %v3187_v28 = vpop.f32.mrb[8].mxu0 }
 0x17a   : > { %v3249_v1 = vadd.f32 %v3187_v28, %v3059_v22  ;;  %v2121_v8 = vpop.f32.mrb[9].mxu0 }
 0x17b   : > { %v3251_v53 = vadd.f32 %v2121_v8, %v1377_v17  ;;  %v3188_v57 = vpop.f32.mrb[10].mxu0 }
 0x17c   : > { %v3063_v55 = vpop.f32.mrb[12].mxu1  ;;  %v3253_v54 = vadd.f32 %v3188_v57, %v3060_v18  ;;  %v2124_v56 = vpop.f32.mrb[11].mxu0 }
 0x17d   : > { %v1393_v58 = vpop.f32.mrb[13].mxu1  ;;  %v3255_v59 = vadd.f32 %v2124_v56, %v1380_v23 }
 0x17e   : > { %v3064_v60 = vpop.f32.mrb[14].mxu1 }
 0x17f   : > { %v1396_v2 = vpop.f32.mrb[15].mxu1 }
 0x181   : > { %v3191_v4 = vpop.f32.mrb[12].mxu0 }
 0x182   : > { %v3257_v61 = vadd.f32 %v3191_v4, %v3063_v55  ;;  %v2137_v6 = vpop.f32.mrb[13].mxu0 }
 0x183   : > { %v3259_v10 = vadd.f32 %v2137_v6, %v1393_v58  ;;  %v3192_v21 = vpop.f32.mrb[14].mxu0 }
 0x184   : > { %v3219_v45 = vpop.f32.mrb[16].mxu1  ;;  %v3261_v13 = vadd.f32 %v3192_v21, %v3064_v60  ;;  %v2140_v14 = vpop.f32.mrb[15].mxu0 }
 0x185   : > { %v3250_v7 = vadd.f32 %v3249_v1, %v3219_v45  ;;  %v2305_v15 = vpop.f32.mrb[17].mxu1  ;;  %v3263_v34 = vadd.f32 %v2140_v14, %v1396_v2 }
 0x186   : > { %v3252_v49 = vadd.f32 %v3251_v53, %v2305_v15  ;;  %v3220_v35 = vpop.f32.mrb[18].mxu1 }
 0x187   : > { %v2369_v50 = vmul.f32 %v3250_v7, %v4216_v27  ;;  %v3254_v63 = vadd.f32 %v3253_v54, %v3220_v35  ;;  %v2308_v0 = vpop.f32.mrb[19].mxu1 }
 0x188   : > { %v2367_v16 = vmul.f32 %v3252_v49, %v4216_v27  ;;  %v3256_v3 = vadd.f32 %v3255_v59, %v2308_v0 }
 0x189   : > { %v2392_v44 = vadd.f32 %v4221_v25, %v2369_v50  ;;  %v2370_v38 = vmul.f32 %v3254_v63, %v4216_v27  ;;  %v3211_v11 = vpop.f32.mrb[0].mxu0 }
 0x18a   : > { %v2390_v51 = vadd.f32 %v4221_v25, %v2367_v16  ;;  %v2368_v52 = vmul.f32 %v3256_v3, %v4216_v27  ;;  %v3241_v24 = vadd.f32 %v3211_v11, %v3051_v9  ;;  %v2273_v29 = vpop.f32.mrb[1].mxu0 }
 0x18b   : > { %v2408_v30 = vmax.f32 %v2392_v44, 0.0  ;;  %v2393_v31 = vadd.f32 %v4221_v25, %v2370_v38  ;;  %v3242_v36 = vadd.f32 %v2273_v29, %v1345_v43  ;;  %v3212_v46 = vpop.f32.mrb[2].mxu0 }
 0x18c   : > { %v2406_v41 = vmax.f32 %v2390_v51, 0.0  ;;  %v2391_v48 = vadd.f32 %v4221_v25, %v2368_v52  ;;  %v3223_v33 = vpop.f32.mrb[20].mxu1  ;;  %v2361_v37 = vmul.f32 %v3241_v24, %v4216_v27  ;;  %v3243_v12 = vadd.f32 %v3212_v46, %v3052_v42  ;;  %v2276_v20 = vpop.f32.mrb[3].mxu0 }
 0x18d   : > { %2424 = vst [vmem:[%s4231_s30 + $0x50] sm:$0xff] %v2408_v30  ;;  %v2409_v39 = vmax.f32 %v2393_v31, 0.0  ;;  %v3258_v26 = vadd.f32 %v3257_v61, %v3223_v33  ;;  %v2321_v5 = vpop.f32.mrb[21].mxu1  ;;  %v2359_v9 = vmul.f32 %v3242_v36, %v4216_v27  ;;  %v3244_v43 = vadd.f32 %v2276_v20, %v4203_v47 }
 0x18e   : > { %2422 = vst [vmem:[%s4231_s30 + $0x40] sm:$0xff] %v2406_v41  ;;  %v2407_v22 = vmax.f32 %v2391_v48, 0.0  ;;  %v3260_v17 = vadd.f32 %v3259_v10, %v2321_v5  ;;  %v3224_v18 = vpop.f32.mrb[22].mxu1  ;;  %v2384_v23 = vadd.f32 %v4221_v25, %v2361_v37  ;;  %v2362_v28 = vmul.f32 %v3243_v12, %v4216_v27 }
 0x18f   : > { %2425 = vst [vmem:[%s4231_s30 + $0x58] sm:$0xff] %v2409_v39  ;;  %v2373_v42 = vmul.f32 %v3258_v26, %v4216_v27  ;;  %v3262_v1 = vadd.f32 %v3261_v13, %v3224_v18  ;;  %v2324_v8 = vpop.f32.mrb[23].mxu1  ;;  %v2382_v53 = vadd.f32 %v4221_v25, %v2359_v9  ;;  %v2360_v57 = vmul.f32 %v3244_v43, %v4216_v27 }
 0x190   : > { %2423 = vst [vmem:[%s4231_s30 + $0x48] sm:$0xff] %v2407_v22  ;;  %v2371_v47 = vmul.f32 %v3260_v17, %v4216_v27  ;;  %v3264_v55 = vadd.f32 %v3263_v34, %v2324_v8  ;;  %v2400_v54 = vmax.f32 %v2384_v23, 0.0  ;;  %v2385_v56 = vadd.f32 %v4221_v25, %v2362_v28 }
 0x191   : > { %v2396_v58 = vadd.f32 %v4221_v25, %v2373_v42  ;;  %v2374_v59 = vmul.f32 %v3262_v1, %v4216_v27  ;;  %v2398_v60 = vmax.f32 %v2382_v53, 0.0  ;;  %v2383_v2 = vadd.f32 %v4221_v25, %v2360_v57  ;;  %v3215_v4 = vpop.f32.mrb[4].mxu0 }
 0x192   : > { %v2394_v61 = vadd.f32 %v4221_v25, %v2371_v47  ;;  %v2372_v6 = vmul.f32 %v3264_v55, %v4216_v27  ;;  %2416 = vst [vmem:[%s4231_s30 + $0x10] sm:$0xff] %v2400_v54  ;;  %v2401_v10 = vmax.f32 %v2385_v56, 0.0  ;;  %v3245_v21 = vadd.f32 %v3215_v4, %v4205_v62  ;;  %v2289_v13 = vpop.f32.mrb[5].mxu0 }
 0x193   : > { %v2412_v45 = vmax.f32 %v2396_v58, 0.0  ;;  %v2397_v14 = vadd.f32 %v4221_v25, %v2374_v59  ;;  %2414 = vst [vmem:[%s4231_s30] sm:$0xff] %v2398_v60  ;;  %v2399_v7 = vmax.f32 %v2383_v2, 0.0  ;;  %v3246_v15 = vadd.f32 %v2289_v13, %v4207_v19  ;;  %v3216_v49 = vpop.f32.mrb[6].mxu0 }
 0x194   : > { %v2410_v34 = vmax.f32 %v2394_v61, 0.0  ;;  %v2395_v35 = vadd.f32 %v4221_v25, %v2372_v6  ;;  %2417 = vst [vmem:[%s4231_s30 + $0x18] sm:$0xff] %v2401_v10  ;;  %v2365_v50 = vmul.f32 %v3245_v21, %v4216_v27  ;;  %v3247_v62 = vadd.f32 %v3216_v49, %v4209_v32  ;;  %v2292_v0 = vpop.f32.mrb[7].mxu0 }
 0x195   : > { %2428 = vst [vmem:[%s4231_s30 + $0x70] sm:$0xff] %v2412_v45  ;;  %v2413_v63 = vmax.f32 %v2397_v14, 0.0  ;;  %2415 = vst [vmem:[%s4231_s30 + $0x8] sm:$0xff] %v2399_v7  ;;  %v2363_v16 = vmul.f32 %v3246_v15, %v4216_v27  ;;  %v3248_v19 = vadd.f32 %v2292_v0, %v4211_v40 }
 0x196   : > { %2426 = vst [vmem:[%s4231_s30 + $0x60] sm:$0xff] %v2410_v34  ;;  %v2411_v3 = vmax.f32 %v2395_v35, 0.0  ;;  %v2388_v44 = vadd.f32 %v4221_v25, %v2365_v50  ;;  %v2366_v38 = vmul.f32 %v3247_v62, %v4216_v27 }
 0x197   : > { %2429 = vst [vmem:[%s4231_s30 + $0x78] sm:$0xff] %v2413_v63  ;;  %v2386_v32 = vadd.f32 %v4221_v25, %v2363_v16  ;;  %v2364_v11 = vmul.f32 %v3248_v19, %v4216_v27 }
 0x198   : > { %2427 = vst [vmem:[%s4231_s30 + $0x68] sm:$0xff] %v2411_v3  ;;  %v2404_v51 = vmax.f32 %v2388_v44, 0.0  ;;  %v2389_v52 = vadd.f32 %v4221_v25, %v2366_v38 }
 0x199   : > { %v2402_v24 = vmax.f32 %v2386_v32, 0.0  ;;  %v2387_v30 = vadd.f32 %v4221_v25, %v2364_v11 }
 0x19a   : > { %2420 = vst [vmem:[%s4231_s30 + $0x30] sm:$0xff] %v2404_v51  ;;  %v2405_v40 = vmax.f32 %v2389_v52, 0.0 }
 0x19b   : > { %2418 = vst [vmem:[%s4231_s30 + $0x20] sm:$0xff] %v2402_v24  ;;  %v2403_v29 = vmax.f32 %v2387_v30, 0.0 }
 0x19c   : > { %2421 = vst [vmem:[%s4231_s30 + $0x38] sm:$0xff] %v2405_v40 }
 0x19d   : > { %2419 = vst [vmem:[%s4231_s30 + $0x28] sm:$0xff] %v2403_v29 }
 0x19e PF: > { %s16_s25 = sadd.s32 1, %s3523_s25   ;;  %s4304_s21 = smov %s3515_s23 }
 0x19f   : > { %p13_p7 = scmp.ge.s32.totalorder %s16_s25, 6   ;;  %s4305_s22 = smov %s3519_s24 }
 0x1a0   : > { %s4306_s23 = smov %s4309_s26  ;;  %s4307_s24 = smov %s4313_s27 }
 0x1a1   :  { %15 = sbr.rel (!%p13_p7) target bundleno = 3 (0x3), region = 90 }

</bundles_post_ra>
